<compile_context>
chip_gen: v5e
topology: v5e:2x2
jax: 0.10.0
libtpu: 0.0.40
codegen_flags: <defaults>
</compile_context>

<pallas_src>
import functools

import jax
import jax.numpy as jnp
from jax import lax
from jax.experimental import pallas as pl
from jax.experimental.pallas import tpu as pltpu


# ----------------------------------------------------------------------------
# Pallas kernel: one grid step per batch block.
#   inputs : cls rows (precomputed), hid tokens as (Bb, hout, 2, wout, 2*dim),
#            folded weights W_A/W_B (3, 2*dim, 2*dim), folded bias (1, 2*dim)
#   output : (Bb, 1 + hout*wout, 2*dim)   (cls row 0, hid rows 1..)
# ----------------------------------------------------------------------------
def _pool_kernel(cls_ref, hid_ref, wa_ref, wb_ref, b_ref, out_ref, acc_ref,
                 *, hout, wout):
    f32 = jnp.float32
    bblk = hid_ref.shape[0]
    c2 = hid_ref.shape[4]            # 2*dim
    hw = hout * wout
    m = bblk * hw

    # cls row: projection precomputed by XLA, just placed into output row 0.
    out_ref[:, 0, :] = cls_ref[:, 0, :].astype(out_ref.dtype)

    # Row-parity slabs, flattened to (m, 2*dim).  Lanes already pack
    # [col-parity-0 channels | col-parity-1 channels] (free reshape).
    s0 = hid_ref[:, :, 0, :, :].reshape(m, c2)   # source image rows 2*ho'
    s1 = hid_ref[:, :, 1, :, :].reshape(m, c2)   # source image rows 2*ho' + 1

    def mm(x, w):
        return jnp.dot(x, w, preferred_element_type=f32)

    shp = (bblk, hout, wout, c2)

    # Taps grouped by (output-row offset, output-col offset):
    #   (0, 0):  kh=1 kw in {1,2} from s0   +   kh=2 kw in {1,2} from s1
    acc_ref[...] = (mm(s0, wa_ref[1]) + mm(s1, wa_ref[2])
                    + b_ref[...]).reshape(shp)
    #   (0, +1): kh=1 kw=0 from s0          +   kh=2 kw=0 from s1
    acc_ref[:, :, 1:, :] += (
        mm(s0, wb_ref[1]) + mm(s1, wb_ref[2])).reshape(shp)[:, :, :wout - 1, :]
    #   (+1, 0): kh=0 kw in {1,2} from s1
    acc_ref[:, 1:, :, :] += mm(s1, wa_ref[0]).reshape(shp)[:, :hout - 1, :, :]
    #   (+1, +1): kh=0 kw=0 from s1
    acc_ref[:, 1:, 1:, :] += (
        mm(s1, wb_ref[0]).reshape(shp)[:, :hout - 1, :wout - 1, :])

    out_ref[:, 1:, :] = acc_ref[...].reshape(bblk, hw, c2).astype(out_ref.dtype)


# ----------------------------------------------------------------------------
# Wrapper: cheap XLA prolog (cls matmul, token slice + bf16 cast), one
# batch-blocked pallas_call producing the fused output directly.
# ----------------------------------------------------------------------------
def pool_forward(x, kp, *, dim, height, width, block_b=None,
                 compute_dtype=jnp.bfloat16):
    B, N, d = x.shape
    assert d == dim and N == 1 + height * width
    assert height % 2 == 0 and width % 2 == 0
    c_out = 2 * dim
    hout, wout = height // 2, width // 2
    hw = hout * wout
    out_dtype = x.dtype

    if block_b is None:
        block_b = max(1, 512 // hw)          # aim for MXU/DMA-friendly M ~ 512
        if B >= 2:
            block_b = min(block_b, B // 2)   # keep >= 2 grid steps (megacore)
        block_b = max(1, min(block_b, B))
        while B % block_b:
            block_b -= 1
    assert B % block_b == 0
    nblk = B // block_b

    # cls projection: tiny (B, dim) x (dim, 2*dim) matmul, done by XLA in f32.
    cls_out = (jnp.matmul(x[:, :1, :].astype(jnp.float32), kp["w_cls_t"])
               + kp["b_cls"]).astype(out_dtype)

    # hid tokens: one fused XLA pass (slice + cast); the 5-D view is a pure
    # row-major reshape: (B, hout, row-parity, wout, [col-par0 | col-par1]).
    hid3 = x[:, 1:, :].reshape(B, hout, 2, wout, c_out).astype(compute_dtype)

    w_a = kp["w_a"].astype(compute_dtype)        # MXU weights in compute dtype
    w_b = kp["w_b"].astype(compute_dtype)
    b_eff = kp["b_eff"].astype(jnp.float32)      # f32 accumulation path

    itm_in = jnp.dtype(compute_dtype).itemsize
    itm_out = jnp.dtype(out_dtype).itemsize
    blk_in = block_b * 4 * hw * dim * itm_in
    blk_out = block_b * (1 + hw) * c_out * itm_out
    # double-buffered I/O blocks + f32 scratch + matmul temporaries, headroom;
    # capped at 32 MiB so it is valid on v5e/v6e (128 MiB) and v7x (64 MiB).
    vmem_limit = int(min(32 * 1024 * 1024,
                         max(16 * 1024 * 1024, 6 * (blk_in + blk_out))))

    kernel = functools.partial(_pool_kernel, hout=hout, wout=wout)

    out = pl.pallas_call(
        kernel,
        out_shape=jax.ShapeDtypeStruct((B, 1 + hw, c_out), out_dtype),
        grid=(nblk,),
        in_specs=[
            pl.BlockSpec((block_b, 1, c_out), lambda b: (b, 0, 0)),        # cls rows
            pl.BlockSpec((block_b, hout, 2, wout, c_out),
                         lambda b: (b, 0, 0, 0, 0)),                       # hid tokens
            pl.BlockSpec((3, c_out, c_out), lambda b: (0, 0, 0)),          # W_A
            pl.BlockSpec((3, c_out, c_out), lambda b: (0, 0, 0)),          # W_B
            pl.BlockSpec((1, c_out), lambda b: (0, 0)),                    # folded bias
        ],
        out_specs=pl.BlockSpec((block_b, 1 + hw, c_out), lambda b: (b, 0, 0)),
        scratch_shapes=[pltpu.VMEM((block_b, hout, wout, c_out), jnp.float32)],
        compiler_params=pltpu.CompilerParams(
            dimension_semantics=("parallel",),
            vmem_limit_bytes=vmem_limit),
    )(cls_out, hid3, w_a, w_b, b_eff)
    return out


# ----------------------------------------------------------------------------
# Deterministic parameter init (shapes follow the PyTorch module __init__)
# plus the exact linear-algebra folding used by the kernel.
# ----------------------------------------------------------------------------
def init_params(key, dim):
    c_out = 2 * dim
    ks = jax.random.split(key, 10)
    p = {
        "w_cls": jax.random.normal(ks[0], (c_out, dim), jnp.float32) * 0.05,
        "b_cls": jax.random.normal(ks[1], (c_out,), jnp.float32) * 0.05,
        # grouped conv weight: (out_ch, in_ch/groups=1, 3, 3)
        "w_dw": jax.random.normal(ks[2], (c_out, 1, 3, 3), jnp.float32) * 0.1,
        "b_dw": jax.random.normal(ks[3], (c_out,), jnp.float32) * 0.05,
        # BatchNorm2d (eval-mode semantics with these running stats)
        "gamma": 1.0 + 0.1 * jax.random.normal(ks[4], (c_out,), jnp.float32),
        "beta": 0.1 * jax.random.normal(ks[5], (c_out,), jnp.float32),
        "run_mean": 0.1 * jax.random.normal(ks[6], (c_out,), jnp.float32),
        "run_var": jnp.abs(jax.random.normal(ks[7], (c_out,), jnp.float32)) + 0.5,
        # 1x1 conv weight: (out_ch, in_ch, 1, 1)
        "w_pw": jax.random.normal(ks[8], (c_out, c_out, 1, 1), jnp.float32) * 0.05,
        "b_pw": jax.random.normal(ks[9], (c_out,), jnp.float32) * 0.05,
    }
    eps = 1e-5
    bn_scale = p["gamma"] / jnp.sqrt(p["run_var"] + eps)
    bn_shift = p["beta"] - p["run_mean"] * bn_scale

    # BN-scaled depthwise taps: (c_out, 9), tap index t = 3*kh + kw.
    # PyTorch grouped conv: output channel o reads input channel o // 2.
    w_dw_s = p["w_dw"][:, 0].reshape(c_out, 9) * bn_scale[:, None]
    w_pw_mat = p["w_pw"][:, :, 0, 0]                       # (n_out, o_in)
    w_pw_t = w_pw_mat.T                                    # (o_in, n_out)

    # Fold depthwise tap t + 1x1 conv into one (dim, c_out) matrix per tap:
    #   W_fold[t, c, n] = Wpw[n,2c]*wdw_s[2c,t] + Wpw[n,2c+1]*wdw_s[2c+1,t]
    w_fold = (w_pw_t[0::2][None, :, :] * w_dw_s[0::2].T[:, :, None]
              + w_pw_t[1::2][None, :, :] * w_dw_s[1::2].T[:, :, None])  # (9, dim, c_out)

    # Column-parity stacking for the kernel's full-lane (2*dim) operands:
    #   W_A[kh] = [W_fold[3kh+1] ; W_fold[3kh+2]]   (output column offset 0)
    #   W_B[kh] = [0             ; W_fold[3kh+0]]   (output column offset +1)
    zero = jnp.zeros((dim, c_out), jnp.float32)
    w_a = jnp.stack([jnp.concatenate([w_fold[3 * kh + 1], w_fold[3 * kh + 2]], axis=0)
                     for kh in range(3)])
    w_b = jnp.stack([jnp.concatenate([zero, w_fold[3 * kh + 0]], axis=0)
                     for kh in range(3)])

    # Per-channel additive term (depthwise bias through BN) folded into the
    # 1x1 bias (exact, since the 1x1 conv is linear).
    shift = p["b_dw"] * bn_scale + bn_shift
    b_eff = p["b_pw"] + w_pw_mat @ shift

    kp = {
        "w_cls_t": p["w_cls"].T,               # (dim, 2*dim)
        "b_cls": p["b_cls"],                   # (2*dim,)
        "w_a": w_a,                            # (3, 2*dim, 2*dim)
        "w_b": w_b,                            # (3, 2*dim, 2*dim)
        "b_eff": b_eff.reshape(1, c_out),      # (1, 2*dim), carries BN shift
    }
    return p, kp


# ----------------------------------------------------------------------------
# Pure-JAX reference (mirrors the PyTorch NCHW graph) for validation.
# ----------------------------------------------------------------------------
def pool_reference(x, p, *, dim, height, width):
    B = x.shape[0]
    c_out = 2 * dim
    eps = 1e-5
    cls = x[:, :1, :] @ p["w_cls"].T + p["b_cls"]
    hid = x[:, 1:, :].reshape(B, height, width, dim).transpose(0, 3, 1, 2)  # NCHW
    y = lax.conv_general_dilated(
        hid, p["w_dw"], window_strides=(2, 2), padding=((1, 1), (1, 1)),
        feature_group_count=dim, dimension_numbers=("NCHW", "OIHW", "NCHW"))
    y = y + p["b_dw"][None, :, None, None]
    y = (y - p["run_mean"][None, :, None, None]) / jnp.sqrt(
        p["run_var"][None, :, None, None] + eps)
    y = y * p["gamma"][None, :, None, None] + p["beta"][None, :, None, None]
    y = jnp.einsum("oc,bchw->bohw", p["w_pw"][:, :, 0, 0], y) \
        + p["b_pw"][None, :, None, None]
    y = y.transpose(0, 2, 3, 1).reshape(B, -1, c_out)          # b (h w) c
    return jnp.concatenate([cls, y], axis=1)


if __name__ == "__main__":
    # small but lane/MXU-friendly shapes: c_out = 128 lanes, 2 grid steps,
    # M = block_b*hout*wout = 512 rows per step.
    B, dim, H, W = 16, 64, 16, 16
    key = jax.random.PRNGKey(0)
    kx, kparam = jax.random.split(key)
    x = jax.random.normal(kx, (B, 1 + H * W, dim), jnp.float32)

    ref_params, kernel_params = init_params(kparam, dim)

    fwd = jax.jit(functools.partial(pool_forward, dim=dim, height=H, width=W))
    out = jax.block_until_ready(fwd(x, kernel_params))

    ref = pool_reference(x, ref_params, dim=dim, height=H, width=W)
    assert out.shape == ref.shape == (B, 1 + (H // 2) * (W // 2), 2 * dim)
    err = float(jnp.max(jnp.abs(out - ref)))
    # bf16 operands (inputs + folded weights) with f32 accumulation
    assert jnp.allclose(out, ref, atol=3e-2, rtol=3e-2), err

    print("KERNEL_OK")
</pallas_src>

<mosaic_0001>
module attributes {stable_mosaic.version = 11 : i64} {
  func.func @_pool_kernel(%arg0: i32, %arg1: memref<8x1x128xf32, #tpu.memory_space<vmem>>, %arg2: memref<8x8x2x8x128xbf16, #tpu.memory_space<vmem>>, %arg3: memref<3x128x128xbf16, #tpu.memory_space<vmem>>, %arg4: memref<3x128x128xbf16, #tpu.memory_space<vmem>>, %arg5: memref<1x128xf32, #tpu.memory_space<vmem>>, %arg6: memref<8x65x128xf32, #tpu.memory_space<vmem>>, %arg7: memref<8x8x8x128xf32, #tpu.memory_space<vmem>>) attributes {dimension_semantics = [#tpu.dimension_semantics<parallel>], iteration_bounds = array<i64: 2>, scalar_prefetch = 0 : i64, scratch_operands = 1 : i64, tpu.core_type = #tpu.core_type<tc>, window_params = [{transform_indices = @transform_0, window_bounds = array<i64: 8, 1, 128>}, {transform_indices = @transform_1, window_bounds = array<i64: 8, 8, 2, 8, 128>}, {pipeline_mode = #tpu.pipeline_mode<synchronous>, transform_indices = @transform_2, window_bounds = array<i64: 3, 128, 128>}, {pipeline_mode = #tpu.pipeline_mode<synchronous>, transform_indices = @transform_3, window_bounds = array<i64: 3, 128, 128>}, {pipeline_mode = #tpu.pipeline_mode<synchronous>, transform_indices = @transform_4, window_bounds = array<i64: 1, 128>}, {transform_indices = @transform_5, window_bounds = array<i64: 8, 65, 128>}]} {
    %c0 = arith.constant 0 : index
    %c0_0 = arith.constant 0 : index
    %c0_1 = arith.constant 0 : index
    %0 = vector.load %arg1[%c0, %c0_0, %c0_1] : memref<8x1x128xf32, #tpu.memory_space<vmem>>, vector<8x1x128xf32>
    %1 = vector.shape_cast %0 : vector<8x1x128xf32> to vector<8x128xf32>
    %c0_2 = arith.constant 0 : index
    %c0_3 = arith.constant 0 : index
    %c0_4 = arith.constant 0 : index
    %2 = vector.load %arg6[%c0_2, %c0_3, %c0_4] : memref<8x65x128xf32, #tpu.memory_space<vmem>>, vector<8x1x128xf32>
    %3 = vector.shape_cast %2 : vector<8x1x128xf32> to vector<8x128xf32>
    %4 = vector.shape_cast %1 : vector<8x128xf32> to vector<8x1x128xf32>
    tpu.vector_store %arg6[%c0_2, %c0_3, %c0_4], %4 {strides = array<i32>} : memref<8x65x128xf32, #tpu.memory_space<vmem>>, vector<8x1x128xf32>,
    %c0_5 = arith.constant 0 : index
    %c0_6 = arith.constant 0 : index
    %c0_7 = arith.constant 0 : index
    %c0_8 = arith.constant 0 : index
    %c0_9 = arith.constant 0 : index
    %5 = vector.load %arg2[%c0_5, %c0_6, %c0_7, %c0_8, %c0_9] : memref<8x8x2x8x128xbf16, #tpu.memory_space<vmem>>, vector<8x8x1x8x128xbf16>
    %6 = vector.shape_cast %5 : vector<8x8x1x8x128xbf16> to vector<8x8x8x128xbf16>
    %7 = vector.shape_cast %6 : vector<8x8x8x128xbf16> to vector<512x128xbf16>
    %c0_10 = arith.constant 0 : index
    %c0_11 = arith.constant 0 : index
    %c1 = arith.constant 1 : index
    %c0_12 = arith.constant 0 : index
    %c0_13 = arith.constant 0 : index
    %8 = vector.load %arg2[%c0_10, %c0_11, %c1, %c0_12, %c0_13] : memref<8x8x2x8x128xbf16, #tpu.memory_space<vmem>>, vector<8x8x1x8x128xbf16>
    %9 = vector.shape_cast %8 : vector<8x8x1x8x128xbf16> to vector<8x8x8x128xbf16>
    %10 = vector.shape_cast %9 : vector<8x8x8x128xbf16> to vector<512x128xbf16>
    %c1_14 = arith.constant 1 : index
    %c0_15 = arith.constant 0 : index
    %c0_16 = arith.constant 0 : index
    %11 = vector.load %arg3[%c1_14, %c0_15, %c0_16] : memref<3x128x128xbf16, #tpu.memory_space<vmem>>, vector<1x128x128xbf16>
    %12 = vector.shape_cast %11 : vector<1x128x128xbf16> to vector<128x128xbf16>
    %cst = arith.constant dense<0.000000e+00> : vector<512x128xf32>
    %13 = tpu.matmul %7, %12, %cst {dimension_numbers = #tpu.dot_dimension_numbers<[1], [0], [0], [1], [0, 0, 1, 1], [], []>} : vector<512x128xbf16>, vector<128x128xbf16>, vector<512x128xf32> -> vector<512x128xf32>
    %c2 = arith.constant 2 : index
    %c0_17 = arith.constant 0 : index
    %c0_18 = arith.constant 0 : index
    %14 = vector.load %arg3[%c2, %c0_17, %c0_18] : memref<3x128x128xbf16, #tpu.memory_space<vmem>>, vector<1x128x128xbf16>
    %15 = vector.shape_cast %14 : vector<1x128x128xbf16> to vector<128x128xbf16>
    %cst_19 = arith.constant dense<0.000000e+00> : vector<512x128xf32>
    %16 = tpu.matmul %10, %15, %cst_19 {dimension_numbers = #tpu.dot_dimension_numbers<[1], [0], [0], [1], [0, 0, 1, 1], [], []>} : vector<512x128xbf16>, vector<128x128xbf16>, vector<512x128xf32> -> vector<512x128xf32>
    %17 = arith.addf %13, %16 : vector<512x128xf32>
    %c0_20 = arith.constant 0 : index
    %c0_21 = arith.constant 0 : index
    %18 = vector.load %arg5[%c0_20, %c0_21] : memref<1x128xf32, #tpu.memory_space<vmem>>, vector<1x128xf32>
    %19 = vector.broadcast %18 : vector<1x128xf32> to vector<512x128xf32>
    %20 = arith.addf %17, %19 : vector<512x128xf32>
    %21 = vector.shape_cast %20 : vector<512x128xf32> to vector<8x8x8x128xf32>
    %c0_22 = arith.constant 0 : index
    %c0_23 = arith.constant 0 : index
    %c0_24 = arith.constant 0 : index
    %c0_25 = arith.constant 0 : index
    %22 = vector.load %arg7[%c0_22, %c0_23, %c0_24, %c0_25] : memref<8x8x8x128xf32, #tpu.memory_space<vmem>>, vector<8x8x8x128xf32>
    tpu.vector_store %arg7[%c0_22, %c0_23, %c0_24, %c0_25], %21 {strides = array<i32>} : memref<8x8x8x128xf32, #tpu.memory_space<vmem>>, vector<8x8x8x128xf32>,
    %c0_26 = arith.constant 0 : index
    %c0_27 = arith.constant 0 : index
    %c1_28 = arith.constant 1 : index
    %c0_29 = arith.constant 0 : index
    %23 = vector.load %arg7[%c0_26, %c0_27, %c1_28, %c0_29] : memref<8x8x8x128xf32, #tpu.memory_space<vmem>>, vector<8x8x7x128xf32>
    %c1_30 = arith.constant 1 : index
    %c0_31 = arith.constant 0 : index
    %c0_32 = arith.constant 0 : index
    %24 = vector.load %arg4[%c1_30, %c0_31, %c0_32] : memref<3x128x128xbf16, #tpu.memory_space<vmem>>, vector<1x128x128xbf16>
    %25 = vector.shape_cast %24 : vector<1x128x128xbf16> to vector<128x128xbf16>
    %cst_33 = arith.constant dense<0.000000e+00> : vector<512x128xf32>
    %26 = tpu.matmul %7, %25, %cst_33 {dimension_numbers = #tpu.dot_dimension_numbers<[1], [0], [0], [1], [0, 0, 1, 1], [], []>} : vector<512x128xbf16>, vector<128x128xbf16>, vector<512x128xf32> -> vector<512x128xf32>
    %c2_34 = arith.constant 2 : index
    %c0_35 = arith.constant 0 : index
    %c0_36 = arith.constant 0 : index
    %27 = vector.load %arg4[%c2_34, %c0_35, %c0_36] : memref<3x128x128xbf16, #tpu.memory_space<vmem>>, vector<1x128x128xbf16>
    %28 = vector.shape_cast %27 : vector<1x128x128xbf16> to vector<128x128xbf16>
    %cst_37 = arith.constant dense<0.000000e+00> : vector<512x128xf32>
    %29 = tpu.matmul %10, %28, %cst_37 {dimension_numbers = #tpu.dot_dimension_numbers<[1], [0], [0], [1], [0, 0, 1, 1], [], []>} : vector<512x128xbf16>, vector<128x128xbf16>, vector<512x128xf32> -> vector<512x128xf32>
    %30 = arith.addf %26, %29 : vector<512x128xf32>
    %31 = vector.shape_cast %30 : vector<512x128xf32> to vector<8x8x8x128xf32>
    %32 = vector.extract_strided_slice %31 {offsets = [0, 0, 0, 0], sizes = [8, 8, 7, 128], strides = [1, 1, 1, 1]} : vector<8x8x8x128xf32> to vector<8x8x7x128xf32>
    %33 = arith.addf %23, %32 : vector<8x8x7x128xf32>
    %c0_38 = arith.constant 0 : index
    %c0_39 = arith.constant 0 : index
    %c1_40 = arith.constant 1 : index
    %c0_41 = arith.constant 0 : index
    %34 = vector.load %arg7[%c0_38, %c0_39, %c1_40, %c0_41] : memref<8x8x8x128xf32, #tpu.memory_space<vmem>>, vector<8x8x7x128xf32>
    tpu.vector_store %arg7[%c0_38, %c0_39, %c1_40, %c0_41], %33 {strides = array<i32>} : memref<8x8x8x128xf32, #tpu.memory_space<vmem>>, vector<8x8x7x128xf32>,
    %c0_42 = arith.constant 0 : index
    %c1_43 = arith.constant 1 : index
    %c0_44 = arith.constant 0 : index
    %c0_45 = arith.constant 0 : index
    %35 = vector.load %arg7[%c0_42, %c1_43, %c0_44, %c0_45] : memref<8x8x8x128xf32, #tpu.memory_space<vmem>>, vector<8x7x8x128xf32>
    %c0_46 = arith.constant 0 : index
    %c0_47 = arith.constant 0 : index
    %c0_48 = arith.constant 0 : index
    %36 = vector.load %arg3[%c0_46, %c0_47, %c0_48] : memref<3x128x128xbf16, #tpu.memory_space<vmem>>, vector<1x128x128xbf16>
    %37 = vector.shape_cast %36 : vector<1x128x128xbf16> to vector<128x128xbf16>
    %cst_49 = arith.constant dense<0.000000e+00> : vector<512x128xf32>
    %38 = tpu.matmul %10, %37, %cst_49 {dimension_numbers = #tpu.dot_dimension_numbers<[1], [0], [0], [1], [0, 0, 1, 1], [], []>} : vector<512x128xbf16>, vector<128x128xbf16>, vector<512x128xf32> -> vector<512x128xf32>
    %39 = vector.shape_cast %38 : vector<512x128xf32> to vector<8x8x8x128xf32>
    %40 = vector.extract_strided_slice %39 {offsets = [0, 0, 0, 0], sizes = [8, 7, 8, 128], strides = [1, 1, 1, 1]} : vector<8x8x8x128xf32> to vector<8x7x8x128xf32>
    %41 = arith.addf %35, %40 : vector<8x7x8x128xf32>
    %c0_50 = arith.constant 0 : index
    %c1_51 = arith.constant 1 : index
    %c0_52 = arith.constant 0 : index
    %c0_53 = arith.constant 0 : index
    %42 = vector.load %arg7[%c0_50, %c1_51, %c0_52, %c0_53] : memref<8x8x8x128xf32, #tpu.memory_space<vmem>>, vector<8x7x8x128xf32>
    tpu.vector_store %arg7[%c0_50, %c1_51, %c0_52, %c0_53], %41 {strides = array<i32>} : memref<8x8x8x128xf32, #tpu.memory_space<vmem>>, vector<8x7x8x128xf32>,
    %c0_54 = arith.constant 0 : index
    %c1_55 = arith.constant 1 : index
    %c1_56 = arith.constant 1 : index
    %c0_57 = arith.constant 0 : index
    %43 = vector.load %arg7[%c0_54, %c1_55, %c1_56, %c0_57] : memref<8x8x8x128xf32, #tpu.memory_space<vmem>>, vector<8x7x7x128xf32>
    %c0_58 = arith.constant 0 : index
    %c0_59 = arith.constant 0 : index
    %c0_60 = arith.constant 0 : index
    %44 = vector.load %arg4[%c0_58, %c0_59, %c0_60] : memref<3x128x128xbf16, #tpu.memory_space<vmem>>, vector<1x128x128xbf16>
    %45 = vector.shape_cast %44 : vector<1x128x128xbf16> to vector<128x128xbf16>
    %cst_61 = arith.constant dense<0.000000e+00> : vector<512x128xf32>
    %46 = tpu.matmul %10, %45, %cst_61 {dimension_numbers = #tpu.dot_dimension_numbers<[1], [0], [0], [1], [0, 0, 1, 1], [], []>} : vector<512x128xbf16>, vector<128x128xbf16>, vector<512x128xf32> -> vector<512x128xf32>
    %47 = vector.shape_cast %46 : vector<512x128xf32> to vector<8x8x8x128xf32>
    %48 = vector.extract_strided_slice %47 {offsets = [0, 0, 0, 0], sizes = [8, 7, 7, 128], strides = [1, 1, 1, 1]} : vector<8x8x8x128xf32> to vector<8x7x7x128xf32>
    %49 = arith.addf %43, %48 : vector<8x7x7x128xf32>
    %c0_62 = arith.constant 0 : index
    %c1_63 = arith.constant 1 : index
    %c1_64 = arith.constant 1 : index
    %c0_65 = arith.constant 0 : index
    %50 = vector.load %arg7[%c0_62, %c1_63, %c1_64, %c0_65] : memref<8x8x8x128xf32, #tpu.memory_space<vmem>>, vector<8x7x7x128xf32>
    tpu.vector_store %arg7[%c0_62, %c1_63, %c1_64, %c0_65], %49 {strides = array<i32>} : memref<8x8x8x128xf32, #tpu.memory_space<vmem>>, vector<8x7x7x128xf32>,
    %c0_66 = arith.constant 0 : index
    %c0_67 = arith.constant 0 : index
    %c0_68 = arith.constant 0 : index
    %c0_69 = arith.constant 0 : index
    %51 = vector.load %arg7[%c0_66, %c0_67, %c0_68, %c0_69] : memref<8x8x8x128xf32, #tpu.memory_space<vmem>>, vector<8x8x8x128xf32>
    %52 = vector.shape_cast %51 : vector<8x8x8x128xf32> to vector<8x64x128xf32>
    %c0_70 = arith.constant 0 : index
    %c1_71 = arith.constant 1 : index
    %c0_72 = arith.constant 0 : index
    %53 = vector.load %arg6[%c0_70, %c1_71, %c0_72] : memref<8x65x128xf32, #tpu.memory_space<vmem>>, vector<8x64x128xf32>
    tpu.vector_store %arg6[%c0_70, %c1_71, %c0_72], %52 {strides = array<i32>} : memref<8x65x128xf32, #tpu.memory_space<vmem>>, vector<8x64x128xf32>,
    return
  }
  func.func @transform_0(%arg0: i32) -> (i32, i32, i32) {
    %c0_i32 = arith.constant 0 : i32
    %c0_i32_0 = arith.constant 0 : i32
    %c0_i32_1 = arith.constant 0 : i32
    return %arg0, %c0_i32, %c0_i32_0 : i32, i32, i32
  }
  func.func @transform_1(%arg0: i32) -> (i32, i32, i32, i32, i32) {
    %c0_i32 = arith.constant 0 : i32
    %c0_i32_0 = arith.constant 0 : i32
    %c0_i32_1 = arith.constant 0 : i32
    %c0_i32_2 = arith.constant 0 : i32
    %c0_i32_3 = arith.constant 0 : i32
    return %arg0, %c0_i32, %c0_i32_0, %c0_i32_1, %c0_i32_2 : i32, i32, i32, i32, i32
  }
  func.func @transform_2(%arg0: i32) -> (i32, i32, i32) {
    %c0_i32 = arith.constant 0 : i32
    %c0_i32_0 = arith.constant 0 : i32
    %c0_i32_1 = arith.constant 0 : i32
    %c0_i32_2 = arith.constant 0 : i32
    return %c0_i32, %c0_i32_0, %c0_i32_1 : i32, i32, i32
  }
  func.func @transform_3(%arg0: i32) -> (i32, i32, i32) {
    %c0_i32 = arith.constant 0 : i32
    %c0_i32_0 = arith.constant 0 : i32
    %c0_i32_1 = arith.constant 0 : i32
    %c0_i32_2 = arith.constant 0 : i32
    return %c0_i32, %c0_i32_0, %c0_i32_1 : i32, i32, i32
  }
  func.func @transform_4(%arg0: i32) -> (i32, i32) {
    %c0_i32 = arith.constant 0 : i32
    %c0_i32_0 = arith.constant 0 : i32
    %c0_i32_1 = arith.constant 0 : i32
    return %c0_i32, %c0_i32_0 : i32, i32
  }
  func.func @transform_5(%arg0: i32) -> (i32, i32, i32) {
    %c0_i32 = arith.constant 0 : i32
    %c0_i32_0 = arith.constant 0 : i32
    %c0_i32_1 = arith.constant 0 : i32
    return %arg0, %c0_i32, %c0_i32_0 : i32, i32, i32
  }
}

</mosaic_0001>

<bundles_post_ra>
// kernel: pool_forward.1
= control target key start
LH: loop header
LB: loop body
LE: loop exit
PB: predicated region body
PF: predicated region fallthrough
CT: control target
= control target key end

     0   :  { %s3789_s18 = smov 0   ;;  %s4717_s0 = inlined_call_operand.vmem [shape: f32[16,1,128], index: 0, kind: input, shape index: {}]   ;;  %s4718_s1 = inlined_call_operand.vmem [shape: bf16[16,8,2,8,128], index: 1, kind: input, shape index: {}]   ;;  %s4719_s2 = inlined_call_operand.vmem [shape: bf16[3,128,128], index: 2, kind: input, shape index: {}]   ;;  %s4720_s3 = inlined_call_operand.vmem [shape: bf16[3,128,128], index: 3, kind: input, shape index: {}]   ;;  %s4721_s4 = inlined_call_operand.vmem [shape: f32[1,128], index: 4, kind: input, shape index: {}]   ;;  %s4722_s5 = inlined_call_operand.vmem [shape: f32[16,65,128], index: 5, kind: output, shape index: {}]  }
   0x1 LB: > { %s3023_s19 = sadd.s32 4294967295, %s3757_s18   ;;  %p3027_p0 = scmp.ge.s32.totalorder %s3757_s18, 1  ;;  %s3757_s18 = sphi %s3789_s18, %s15_s18  }
   0x2   : > { %p199_p1 = scmp.lt.s32.totalorder %s3757_s18, 3 }
   0x4   : > { %p200_p2 = pnand %p3027_p0, %p199_p1 }
   0x6   : > { %203 = sbr.rel (%p200_p2) target bundleno = 970 (0x3ca), region = 40 }
   0xb   : > { %v3692_v0 = vld [vmem:[%s4719_s2 + $0xb8] sm:$0xff]  ;;  %v3691_v2 = vld [vmem:[%s4719_s2 + $0xb0] sm:$0xff]  ;;  %v3690_v4 = vld [vmem:[%s4719_s2 + $0xa8] sm:$0xff]  ;;  %s3028_s7 = sshll.u32 %s3023_s19, 3 }
   0xc   : > { %v3684_v1 = vld [vmem:[%s4719_s2 + $0x78] sm:$0xff]  ;;  %3725 = vmatpush.bf16.msra.mxu2 %v3692_v0  ;;  %v3683_v3 = vld [vmem:[%s4719_s2 + $0x70] sm:$0xff]  ;;  %671 = vmatpush.bf16.msra.mxu0 %v3692_v0  ;;  %v3682_v5 = vld [vmem:[%s4719_s2 + $0x68] sm:$0xff]  ;;  %p234_p3 = scmp.lt.s32.totalorder %s3028_s7, 15 }
   0xd   : > { %3733 = vmatpush.bf16.msra.mxu3 %v3684_v1  ;;  %1080 = vmatpush.bf16.msra.mxu1 %v3684_v1  ;;  %v3689_v6 = vld [vmem:[%s4719_s2 + $0xa0] sm:$0xff]  ;;  %v3688_v8 = vld [vmem:[%s4719_s2 + $0x98] sm:$0xff]  ;;  %v3687_v10 = vld [vmem:[%s4719_s2 + $0x90] sm:$0xff] }
   0xe   : > { %v3681_v7 = vld [vmem:[%s4719_s2 + $0x60] sm:$0xff]  ;;  %v3680_v9 = vld [vmem:[%s4719_s2 + $0x58] sm:$0xff]  ;;  %s4783_s7 = smov (!%p234_p3, %s3028_s7), 15  ;;  %v3679_v11 = vld [vmem:[%s4719_s2 + $0x50] sm:$0xff] }
   0xf   : > { %s3612_s21 = sshll.u32 %s4783_s7, 6  ;;  %v3686_v12 = vld [vmem:[%s4719_s2 + $0x88] sm:$0xff]  ;;  %v3685_v14 = vld [vmem:[%s4719_s2 + $0x80] sm:$0xff]  ;;  %v3708_v20 = vld [vmem:[%s4720_s3 + $0xb8] sm:$0xff]  ;;  %s4310_s10 = scalar_lea.vmem %s4717_s0, %s4783_s7 }
  0x10   : > { %3726 = vmatpush.bf16.msra.mxu2 %v3691_v2  ;;  %672 = vmatpush.bf16.msra.mxu0 %v3691_v2  ;;  %v3678_v13 = vld [vmem:[%s4719_s2 + $0x48] sm:$0xff]  ;;  %s3845_s28 = scalar_lea.vmem %s4718_s1, %s3612_s21  ;;  %v3677_v15 = vld [vmem:[%s4719_s2 + $0x40] sm:$0xff]  ;;  %v3700_v21 = vld [vmem:[%s4720_s3 + $0x78] sm:$0xff]  ;;  %s3741_s11 = smul.u32 72, %s4783_s7 }
  0x11   : > { %3734 = vmatpush.bf16.msra.mxu3 %v3683_v3  ;;  %1081 = vmatpush.bf16.msra.mxu1 %v3683_v3  ;;  %v3196_v16 = vld [vmem:[%s3845_s28 + $0x104] sm:$0xf]  ;;  %v3661_v17 = vld [vmem:[%s3845_s28 + $0x108] sm:$0xf0]  ;;  %v3356_v18 = vld [vmem:[%s3845_s28 + $0x100] sm:$0xf] }
  0x12   : > { %v3629_v19 = vld [vmem:[%s3845_s28 + $0x104] sm:$0xf0]  ;;  %v3132_v22 = vld [vmem:[%s3845_s28 + $0x4] sm:$0xf]  ;;  %v3645_v23 = vld [vmem:[%s3845_s28 + $0x8] sm:$0xf0]  ;;  %v3867_v26 = vor.u32 %v3661_v17, %v3196_v16  ;;  %s4323_s14 = scalar_lea.vmem %s4722_s5, %s3741_s11 }
  0x13   : > { %v3292_v24 = vld [vmem:[%s3845_s28] sm:$0xf]  ;;  %v3613_v25 = vld [vmem:[%s3845_s28 + $0x4] sm:$0xf0]  ;;  %v3869_v27 = vor.u32 %v3629_v19, %v3356_v18  ;;  %v3716_v28 = vld [vmem:[%s4719_s2 + $0x38] sm:$0xff]  ;;  %v3874_v29 = vor.u32 %v3645_v23, %v3132_v22 }
  0x14   : > { %3727 = vmatpush.bf16.msra.mxu2 %v3690_v4  ;;  %673 = vmatpush.bf16.msra.mxu0 %v3690_v4  ;;  %v3876_v30 = vor.u32 %v3613_v25, %v3292_v24  ;;  %v3707_v31 = vld [vmem:[%s4720_s3 + $0xb0] sm:$0xff]  ;;  %v3724_v33 = vld [vmem:[%s4720_s3 + $0x38] sm:$0xff]  ;;  %v3204_v47 = vld [vmem:[%s3845_s28 + $0x124] sm:$0xf] }
  0x15   : > { %3735 = vmatpush.bf16.msra.mxu3 %v3682_v5  ;;  %1082 = vmatpush.bf16.msra.mxu1 %v3682_v5  ;;  %v3699_v32 = vld [vmem:[%s4720_s3 + $0x70] sm:$0xff]  ;;  %v3662_v35 = vld [vmem:[%s3845_s28 + $0x118] sm:$0xf0]  ;;  %v3630_v37 = vld [vmem:[%s3845_s28 + $0x114] sm:$0xf0] }
  0x16   : > { %v3200_v34 = vld [vmem:[%s3845_s28 + $0x114] sm:$0xf]  ;;  %v3360_v36 = vld [vmem:[%s3845_s28 + $0x110] sm:$0xf]  ;;  %v3646_v39 = vld [vmem:[%s3845_s28 + $0x18] sm:$0xf0] }
  0x17   : > { %v3136_v38 = vld [vmem:[%s3845_s28 + $0x14] sm:$0xf]  ;;  %v3296_v40 = vld [vmem:[%s3845_s28 + $0x10] sm:$0xf]  ;;  %v3614_v41 = vld [vmem:[%s3845_s28 + $0x14] sm:$0xf0]  ;;  %v3899_v42 = vor.u32 %v3662_v35, %v3200_v34  ;;  %v3901_v43 = vor.u32 %v3630_v37, %v3360_v36 }
  0x18   : > { %3728 = vmatpush.bf16.msra.mxu2 %v3689_v6  ;;  %674 = vmatpush.bf16.msra.mxu0 %v3689_v6  ;;  %v3903_v44 = vor.u32 %v3646_v39, %v3136_v38  ;;  %v3905_v45 = vor.u32 %v3614_v41, %v3296_v40  ;;  %v3715_v46 = vld [vmem:[%s4719_s2 + $0x30] sm:$0xff]  ;;  %v3663_v48 = vld [vmem:[%s3845_s28 + $0x128] sm:$0xf0]  ;;  %v3364_v49 = vld [vmem:[%s3845_s28 + $0x120] sm:$0xf] }
  0x19   : > { %3736 = vmatpush.bf16.msra.mxu3 %v3681_v7  ;;  %1083 = vmatpush.bf16.msra.mxu1 %v3681_v7  ;;  %v3631_v50 = vld [vmem:[%s3845_s28 + $0x124] sm:$0xf0]  ;;  %v3140_v51 = vld [vmem:[%s3845_s28 + $0x24] sm:$0xf]  ;;  %v3647_v52 = vld [vmem:[%s3845_s28 + $0x28] sm:$0xf0]  ;;  %v3922_v55 = vor.u32 %v3663_v48, %v3204_v47 }
  0x1a   : > { %v3300_v53 = vld [vmem:[%s3845_s28 + $0x20] sm:$0xf]  ;;  %v3615_v54 = vld [vmem:[%s3845_s28 + $0x24] sm:$0xf0]  ;;  %v3924_v56 = vor.u32 %v3631_v50, %v3364_v49  ;;  %v3926_v57 = vor.u32 %v3647_v52, %v3140_v51  ;;  %v3723_v61 = vld [vmem:[%s4720_s3 + $0x30] sm:$0xff] }
  0x1b   : > { %v3928_v58 = vor.u32 %v3615_v54, %v3300_v53  ;;  %v3706_v59 = vld [vmem:[%s4720_s3 + $0xa8] sm:$0xff]  ;;  %v3208_v62 = vld [vmem:[%s3845_s28 + $0x134] sm:$0xf]  ;;  %v3664_v63 = vld [vmem:[%s3845_s28 + $0x138] sm:$0xf0] }
  0x1c   : > { %3729 = vmatpush.bf16.msra.mxu2 %v3688_v8  ;;  %675 = vmatpush.bf16.msra.mxu0 %v3688_v8  ;;  %v3698_v60 = vld [vmem:[%s4720_s3 + $0x68] sm:$0xff]  ;;  %v3368_v0 = vld [vmem:[%s3845_s28 + $0x130] sm:$0xf]  ;;  %v3632_v1 = vld [vmem:[%s3845_s28 + $0x134] sm:$0xf0]  ;;  %v3951_v6 = vor.u32 %v3664_v63, %v3208_v62 }
  0x1d   : > { %3737 = vmatpush.bf16.msra.mxu3 %v3680_v9  ;;  %1084 = vmatpush.bf16.msra.mxu1 %v3680_v9  ;;  %v3144_v2 = vld [vmem:[%s3845_s28 + $0x34] sm:$0xf]  ;;  %v3648_v3 = vld [vmem:[%s3845_s28 + $0x38] sm:$0xf0]  ;;  %v3304_v4 = vld [vmem:[%s3845_s28 + $0x30] sm:$0xf]  ;;  %v3953_v7 = vor.u32 %v3632_v1, %v3368_v0 }
  0x1e   : > { %v3616_v5 = vld [vmem:[%s3845_s28 + $0x34] sm:$0xf0]  ;;  %v3955_v8 = vor.u32 %v3648_v3, %v3144_v2  ;;  %v3649_v16 = vld [vmem:[%s3845_s28 + $0x48] sm:$0xf0]  ;;  %v3308_v17 = vld [vmem:[%s3845_s28 + $0x40] sm:$0xf] }
  0x1f   : > { %v3957_v9 = vor.u32 %v3616_v5, %v3304_v4  ;;  %v3617_v18 = vld [vmem:[%s3845_s28 + $0x44] sm:$0xf0]  ;;  %v3705_v23 = vld [vmem:[%s4720_s3 + $0xa0] sm:$0xff]  ;;  %v3152_v34 = vld [vmem:[%s3845_s28 + $0x54] sm:$0xf] }
  0x20   : > { %3730 = vmatpush.bf16.msra.mxu2 %v3687_v10  ;;  %676 = vmatpush.bf16.msra.mxu0 %v3687_v10  ;;  %v3714_v10 = vld [vmem:[%s4719_s2 + $0x28] sm:$0xff]  ;;  %v3980_v22 = vor.u32 %v3617_v18, %v3308_v17  ;;  %v3697_v24 = vld [vmem:[%s4720_s3 + $0x60] sm:$0xff]  ;;  %v3650_v35 = vld [vmem:[%s3845_s28 + $0x58] sm:$0xf0] }
  0x21   : > { %3738 = vmatpush.bf16.msra.mxu3 %v3679_v11  ;;  %1085 = vmatpush.bf16.msra.mxu1 %v3679_v11  ;;  %v3212_v11 = vld [vmem:[%s3845_s28 + $0x144] sm:$0xf]  ;;  %v3722_v25 = vld [vmem:[%s4720_s3 + $0x28] sm:$0xff]  ;;  %v3312_v36 = vld [vmem:[%s3845_s28 + $0x50] sm:$0xf]  ;;  %v4007_v40 = vor.u32 %v3650_v35, %v3152_v34 }
  0x22   : > { %v3618_v37 = vld [vmem:[%s3845_s28 + $0x54] sm:$0xf0]  ;;  %v3220_v47 = vld [vmem:[%s3845_s28 + $0x164] sm:$0xf]  ;;  %v3667_v48 = vld [vmem:[%s3845_s28 + $0x168] sm:$0xf0] }
  0x23   : > { %v4009_v41 = vor.u32 %v3618_v37, %v3312_v36  ;;  %v3380_v49 = vld [vmem:[%s3845_s28 + $0x160] sm:$0xf]  ;;  %v3635_v50 = vld [vmem:[%s3845_s28 + $0x164] sm:$0xf0]  ;;  %v3156_v51 = vld [vmem:[%s3845_s28 + $0x64] sm:$0xf] }
  0x24   : > { %3731 = vmatpush.bf16.msra.mxu2 %v3686_v12  ;;  %677 = vmatpush.bf16.msra.mxu0 %v3686_v12  ;;  %v3665_v12 = vld [vmem:[%s3845_s28 + $0x148] sm:$0xf0]  ;;  %v3316_v53 = vld [vmem:[%s3845_s28 + $0x60] sm:$0xf]  ;;  %v3619_v54 = vld [vmem:[%s3845_s28 + $0x64] sm:$0xf0] }
  0x25   : > { %3739 = vmatpush.bf16.msra.mxu3 %v3678_v13  ;;  %1086 = vmatpush.bf16.msra.mxu1 %v3678_v13  ;;  %v3372_v13 = vld [vmem:[%s3845_s28 + $0x140] sm:$0xf]  ;;  %v3974_v19 = vor.u32 %v3665_v12, %v3212_v11  ;;  %v3651_v52 = vld [vmem:[%s3845_s28 + $0x68] sm:$0xf0]  ;;  %v4032_v62 = vor.u32 %v3619_v54, %v3316_v53  ;;  %v3704_v63 = vld [vmem:[%s4720_s3 + $0x98] sm:$0xff] }
  0x26   : > { %v3696_v0 = vld [vmem:[%s4720_s3 + $0x58] sm:$0xff]  ;;  %v3224_v1 = vld [vmem:[%s3845_s28 + $0x174] sm:$0xf]  ;;  %v3721_v2 = vld [vmem:[%s4720_s3 + $0x20] sm:$0xff] }
  0x27   : > { %v3668_v3 = vld [vmem:[%s3845_s28 + $0x178] sm:$0xf0]  ;;  %v3384_v4 = vld [vmem:[%s3845_s28 + $0x170] sm:$0xf]  ;;  %v3636_v5 = vld [vmem:[%s3845_s28 + $0x174] sm:$0xf0] }
  0x28   : > { %3732 = vmatpush.bf16.msra.mxu2 %v3685_v14  ;;  %678 = vmatpush.bf16.msra.mxu0 %v3685_v14  ;;  %v3633_v14 = vld [vmem:[%s3845_s28 + $0x144] sm:$0xf0]  ;;  %v3652_v11 = vld [vmem:[%s3845_s28 + $0x78] sm:$0xf0]  ;;  %v3320_v12 = vld [vmem:[%s3845_s28 + $0x70] sm:$0xf] }
  0x29   : > { %3740 = vmatpush.bf16.msra.mxu3 %v3677_v15  ;;  %1087 = vmatpush.bf16.msra.mxu1 %v3677_v15  ;;  %v3148_v15 = vld [vmem:[%s3845_s28 + $0x44] sm:$0xf]  ;;  %v3621_v34 = vld [vmem:[%s3845_s28 + $0x84] sm:$0xf0] }
  0x2a   : > { %v3228_v18 = vld [vmem:[%s3845_s28 + $0x184] sm:$0xf] }
  0x2b   : > { %759 = vmatmul.bf16.vlgmr.msra.gmra.mxu2 %v3867_v26  ;;  %679 = vmatmul.bf16.vlgmr.msra.gmra.mxu0 %v3874_v29 }
  0x2c   : > { %1527 = vmatpush.bf16.msrb.mxu2 %v3708_v20  ;;  %1168 = vmatmul.bf16.vlgmr.msra.gmra.mxu3 %v3869_v27  ;;  %v3976_v20 = vor.u32 %v3633_v14, %v3372_v13  ;;  %v3620_v13 = vld [vmem:[%s3845_s28 + $0x74] sm:$0xf0]  ;;  %v4055_v14 = vor.u32 %v3668_v3, %v3224_v1 }
  0x2d   : > { %1744 = vmatpush.bf16.msrb.mxu3 %v3700_v21  ;;  %2162 = vmatpush.bf16.msrb.mxu0 %v3716_v28  ;;  %v3978_v21 = vor.u32 %v3649_v16, %v3148_v15  ;;  %v3216_v28 = vld [vmem:[%s3845_s28 + $0x154] sm:$0xf]  ;;  %v4057_v15 = vor.u32 %v3636_v5, %v3384_v4  ;;  %v4061_v17 = vor.u32 %v3620_v13, %v3320_v12  ;;  %v3392_v12 = vld [vmem:[%s3845_s28 + $0x190] sm:$0xf]  ;;  %v3638_v13 = vld [vmem:[%s3845_s28 + $0x194] sm:$0xf0] }
  0x2e   : > { %1088 = vmatmul.bf16.vlgmr.msra.gmra.mxu1 %v3876_v30  ;;  %4749 = vst [vmem:[#allocation4_spill] sm:$0xff] %v4055_v14  ;;  %v3232_v4 = vld [vmem:[%s3845_s28 + $0x194] sm:$0xf] }
  0x2f   : > { %2555 = vmatpush.bf16.msrb.mxu1 %v3724_v33  ;;  %v3634_v33 = vld [vmem:[%s3845_s28 + $0x154] sm:$0xf0]  ;;  %4750 = vst [vmem:[#allocation5_spill] sm:$0xff] %v4057_v15 }
  0x30   : > { %1528 = vmatpush.bf16.msrb.mxu2 %v3707_v31  ;;  %v3666_v31 = vld [vmem:[%s3845_s28 + $0x158] sm:$0xf0] }
  0x31   : > { %1745 = vmatpush.bf16.msrb.mxu3 %v3699_v32  ;;  %2163 = vmatpush.bf16.msrb.mxu0 %v3715_v46  ;;  %v3376_v32 = vld [vmem:[%s3845_s28 + $0x150] sm:$0xf]  ;;  %v4003_v38 = vor.u32 %v3666_v31, %v3216_v28  ;;  %v3713_v46 = vld [vmem:[%s4719_s2 + $0x20] sm:$0xff]  ;;  %v3637_v28 = vld [vmem:[%s3845_s28 + $0x184] sm:$0xf0] }
  0x32   : > { %v4005_v39 = vor.u32 %v3634_v33, %v3376_v32  ;;  %v3164_v31 = vld [vmem:[%s3845_s28 + $0x84] sm:$0xf]  ;;  %v3653_v32 = vld [vmem:[%s3845_s28 + $0x88] sm:$0xf0]  ;;  %v3324_v33 = vld [vmem:[%s3845_s28 + $0x80] sm:$0xf] }
  0x33   : > { %2556 = vmatpush.bf16.msrb.mxu1 %v3723_v61  ;;  %v4030_v61 = vor.u32 %v3651_v52, %v3156_v51  ;;  %v4082_v37 = vor.u32 %v3653_v32, %v3164_v31  ;;  %v3703_v51 = vld [vmem:[%s4720_s3 + $0x90] sm:$0xff]  ;;  %v3622_v32 = vld [vmem:[%s3845_s28 + $0x94] sm:$0xf0] }
  0x34   : > { %1529 = vmatpush.bf16.msrb.mxu2 %v3706_v59  ;;  %v4026_v59 = vor.u32 %v3667_v48, %v3220_v47  ;;  %v3695_v52 = vld [vmem:[%s4720_s3 + $0x50] sm:$0xff] }
  0x35   : > { %1746 = vmatpush.bf16.msrb.mxu3 %v3698_v60  ;;  %2164 = vmatpush.bf16.msrb.mxu0 %v3714_v10  ;;  %v4028_v60 = vor.u32 %v3635_v50, %v3380_v49  ;;  %v3160_v10 = vld [vmem:[%s3845_s28 + $0x74] sm:$0xf]  ;;  %v4091_v49 = vld [vmem:[%s4721_s4] ss:$0 sm:$0xff]  ;;  %v3328_v31 = vld [vmem:[%s3845_s28 + $0x90] sm:$0xf] }
  0x36   : > { %v4059_v16 = vor.u32 %v3652_v11, %v3160_v10  ;;  %v3720_v10 = vld [vmem:[%s4720_s3 + $0x18] sm:$0xff] }
  0x37   : > { %2557 = vmatpush.bf16.msrb.mxu1 %v3722_v25  ;;  %4748 = vst [vmem:[#allocation3_spill] sm:$0xff] %v4028_v60  ;;  %v3388_v25 = vld [vmem:[%s3845_s28 + $0x180] sm:$0xf]  ;;  %v3670_v11 = vld [vmem:[%s3845_s28 + $0x198] sm:$0xf0] }
  0x38   : > { %1530 = vmatpush.bf16.msrb.mxu2 %v3705_v23  ;;  %v3712_v23 = vld [vmem:[%s4719_s2 + $0x18] sm:$0xff]  ;;  %v4080_v36 = vor.u32 %v3637_v28, %v3388_v25 }
  0x39   : > { %1747 = vmatpush.bf16.msrb.mxu3 %v3697_v24  ;;  %2165 = vmatpush.bf16.msrb.mxu0 %v3713_v46  ;;  %v3669_v24 = vld [vmem:[%s3845_s28 + $0x188] sm:$0xf0]  ;;  %v4084_v46 = vor.u32 %v3621_v34, %v3324_v33  ;;  %v3654_v28 = vld [vmem:[%s3845_s28 + $0x98] sm:$0xf0]  ;;  %v4115_v34 = vor.u32 %v3670_v11, %v3232_v4 }
  0x3a   : > { %v4078_v35 = vor.u32 %v3669_v24, %v3228_v18  ;;  %4752 = vst [vmem:[#allocation7_spill] sm:$0xff] %v4080_v36 }
  0x3b   : > { %764 = vmatmul.bf16.gmra.mxu2 %v3899_v42  ;;  %684 = vmatmul.bf16.gmra.mxu0 %v3903_v44  ;;  %4753 = vst [vmem:[#allocation8_spill] sm:$0xff] %v4115_v34 }
  0x3c   : > { %1173 = vmatmul.bf16.gmra.mxu3 %v3901_v43  ;;  %1531 = vmatpush.bf16.msrb.mxu2 %v3704_v63  ;;  %4751 = vst [vmem:[#allocation6_spill] sm:$0xff] %v4078_v35 }
  0x3d   : > { %1748 = vmatpush.bf16.msrb.mxu3 %v3696_v0  ;;  %2558 = vmatpush.bf16.msrb.mxu1 %v3721_v2 }
  0x3e   : > { %1093 = vmatmul.bf16.gmra.mxu1 %v3905_v45  ;;  %2166 = vmatpush.bf16.msrb.mxu0 %v3712_v23  ;;  %v3168_v23 = vld [vmem:[%s3845_s28 + $0x94] sm:$0xf] }
  0x40   : > { %1532 = vmatpush.bf16.msrb.mxu2 %v3703_v51  ;;  %v4122_v51 = vor.u32 %v3622_v32, %v3328_v31  ;;  %v3655_v32 = vld [vmem:[%s3845_s28 + $0xa8] sm:$0xf0] }
  0x41   : > { %1749 = vmatpush.bf16.msrb.mxu3 %v3695_v52  ;;  %2559 = vmatpush.bf16.msrb.mxu1 %v3720_v10  ;;  %v3236_v10 = vld [vmem:[%s3845_s28 + $0x1a4] sm:$0xf] }
  0x4b   : > { %769 = vmatmul.bf16.gmra.mxu2 %v3922_v55  ;;  %689 = vmatmul.bf16.gmra.mxu0 %v3926_v57 }
  0x4c   : > { %1178 = vmatmul.bf16.gmra.mxu3 %v3924_v56 }
  0x4e   : > { %1098 = vmatmul.bf16.gmra.mxu1 %v3928_v58 }
  0x5b   : > { %774 = vmatmul.bf16.gmra.mxu2 %v3951_v6  ;;  %694 = vmatmul.bf16.gmra.mxu0 %v3955_v8 }
  0x5c   : > { %1183 = vmatmul.bf16.gmra.mxu3 %v3953_v7 }
  0x5e   : > { %1103 = vmatmul.bf16.gmra.mxu1 %v3957_v9 }
  0x6b   : > { %779 = vmatmul.bf16.gmra.mxu2 %v3974_v19  ;;  %699 = vmatmul.bf16.gmra.mxu0 %v3978_v21 }
  0x6c   : > { %1188 = vmatmul.bf16.gmra.mxu3 %v3976_v20 }
  0x6e   : > { %1108 = vmatmul.bf16.gmra.mxu1 %v3980_v22 }
  0x7b   : > { %784 = vmatmul.bf16.gmra.mxu2 %v4003_v38  ;;  %704 = vmatmul.bf16.gmra.mxu0 %v4007_v40 }
  0x7c   : > { %1193 = vmatmul.bf16.gmra.mxu3 %v4005_v39 }
  0x7e   : > { %1113 = vmatmul.bf16.gmra.mxu1 %v4009_v41 }
  0x8b   : > { %789 = vmatmul.bf16.gmra.mxu2 %v4026_v59  ;;  %709 = vmatmul.bf16.gmra.mxu0 %v4030_v61 }
  0x8c   : > { %1198 = vmatmul.bf16.gmra.mxu3 %v4028_v60 }
  0x8e   : > { %1118 = vmatmul.bf16.gmra.mxu1 %v4032_v62 }
  0x9b   : > { %794 = vmatmul.bf16.gmra.mxu2 %v4055_v14  ;;  %714 = vmatmul.bf16.gmra.mxu0 %v4059_v16 }
  0x9c   : > { %1203 = vmatmul.bf16.gmra.mxu3 %v4057_v15 }
  0x9e   : > { %1123 = vmatmul.bf16.gmra.mxu1 %v4061_v17 }
  0xa8   : > { %v680_v47 = vpop.f32.mrf.mxu0 }
  0xab   : > { %v1089_v48 = vpop.f32.mrf.mxu1  ;;  %799 = vmatmul.bf16.gmra.mxu2 %v4078_v35  ;;  %719 = vmatmul.bf16.gmra.mxu0 %v4082_v37 }
  0xac   : > { %1208 = vmatmul.bf16.gmra.mxu3 %v4080_v36  ;;  %v1090_v50 = vadd.f32 %v1089_v48, %v680_v47  ;;  %v4117_v47 = vor.u32 %v3638_v13, %v3392_v12  ;;  %v3711_v12 = vld [vmem:[%s4719_s2 + $0x10] sm:$0xff]  ;;  %v3671_v13 = vld [vmem:[%s3845_s28 + $0x1a8] sm:$0xf0] }
  0xad   : > { %2167 = vmatpush.bf16.msrb.mxu0 %v3711_v12 }
  0xae   : > { %v1253_v53 = vadd.f32 %v4091_v49, %v1090_v50  ;;  %1128 = vmatmul.bf16.gmra.mxu1 %v4084_v46  ;;  %v760_v54 = vpop.f32.mrf.mxu2  ;;  %4754 = vst [vmem:[#allocation9_spill] sm:$0xff] %v4117_v47  ;;  %v4120_v50 = vor.u32 %v3654_v28, %v3168_v23  ;;  %v3639_v23 = vld [vmem:[%s3845_s28 + $0x1a4] sm:$0xf0] }
  0xaf   : > { %v1169_v63 = vpop.f32.mrf.mxu3 }
  0xb0   : > { %v1170_v0 = vadd.f32 %v1169_v63, %v760_v54  ;;  %1317 = vst [vmem:[#allocation2] sm:$0xff] %v1253_v53  ;;  %v682_v2 = vpop.f32.mrf.mxu0 }
  0xb2   : > { %v1285_v1 = vadd.f32 %v4091_v49, %v1170_v0 }
  0xb3   : > { %v1091_v3 = vpop.f32.mrf.mxu1 }
  0xb4   : > { %1349 = vst [vmem:[#allocation2 + $0x100] sm:$0xff] %v1285_v1  ;;  %v1092_v5 = vadd.f32 %v1091_v3, %v682_v2 }
  0xb6   : > { %v1254_v18 = vadd.f32 %v4091_v49, %v1092_v5  ;;  %v762_v24 = vpop.f32.mrf.mxu2 }
  0xb7   : > { %v1171_v25 = vpop.f32.mrf.mxu3 }
  0xb8   : > { %v1172_v33 = vadd.f32 %v1171_v25, %v762_v24  ;;  %1318 = vst [vmem:[#allocation2 + $0x8] sm:$0xff] %v1254_v18  ;;  %v685_v52 = vpop.f32.mrf.mxu0  ;;  %v3396_v18 = vld [vmem:[%s3845_s28 + $0x1a0] sm:$0xf]  ;;  %v3172_v25 = vld [vmem:[%s3845_s28 + $0xa4] sm:$0xf] }
  0xba   : > { %v1286_v48 = vadd.f32 %v4091_v49, %v1172_v33  ;;  %v3332_v33 = vld [vmem:[%s3845_s28 + $0xa0] sm:$0xf] }
  0xbb   : > { %v1094_v53 = vpop.f32.mrf.mxu1  ;;  %804 = vmatmul.bf16.gmra.mxu2 %v4115_v34  ;;  %724 = vmatmul.bf16.gmra.mxu0 %v4120_v50 }
  0xbc   : > { %1350 = vst [vmem:[#allocation2 + $0x108] sm:$0xff] %v1286_v48  ;;  %1213 = vmatmul.bf16.gmra.mxu3 %v4117_v47  ;;  %v1095_v54 = vadd.f32 %v1094_v53, %v685_v52  ;;  %v3623_v48 = vld [vmem:[%s3845_s28 + $0xa4] sm:$0xf0]  ;;  %v4142_v53 = vor.u32 %v3671_v13, %v3236_v10 }
  0xbd   : > { %v3694_v10 = vld [vmem:[%s4720_s3 + $0x48] sm:$0xff] }
  0xbe   : > { %v1255_v63 = vadd.f32 %v4091_v49, %v1095_v54  ;;  %1133 = vmatmul.bf16.gmra.mxu1 %v4122_v51  ;;  %v765_v0 = vpop.f32.mrf.mxu2  ;;  %4755 = vst [vmem:[#allocation10_spill] sm:$0xff] %v4142_v53  ;;  %v4144_v54 = vor.u32 %v3639_v23, %v3396_v18  ;;  %1750 = vmatpush.bf16.msrb.mxu3 %v3694_v10  ;;  %v3336_v10 = vld [vmem:[%s3845_s28 + $0xb0] sm:$0xf] }
  0xbf   : > { %v1174_v1 = vpop.f32.mrf.mxu3 }
  0xc0   : > { %v1175_v2 = vadd.f32 %v1174_v1, %v765_v0  ;;  %1319 = vst [vmem:[#allocation2 + $0x10] sm:$0xff] %v1255_v63  ;;  %v687_v4 = vpop.f32.mrf.mxu0  ;;  %v4147_v0 = vor.u32 %v3655_v32, %v3172_v25  ;;  %v4149_v1 = vor.u32 %v3623_v48, %v3332_v33  ;;  %v3719_v32 = vld [vmem:[%s4720_s3 + $0x10] sm:$0xff]  ;;  %v3672_v33 = vld [vmem:[%s3845_s28 + $0x1b8] sm:$0xf0] }
  0xc1   : > { %4756 = vst [vmem:[#allocation11_spill] sm:$0xff] %v4144_v54  ;;  %v3400_v48 = vld [vmem:[%s3845_s28 + $0x1b0] sm:$0xf]  ;;  %2560 = vmatpush.bf16.msrb.mxu1 %v3719_v32 }
  0xc2   : > { %v1287_v3 = vadd.f32 %v4091_v49, %v1175_v2 }
  0xc3   : > { %v1096_v5 = vpop.f32.mrf.mxu1 }
  0xc4   : > { %1351 = vst [vmem:[#allocation2 + $0x110] sm:$0xff] %v1287_v3  ;;  %v1097_v11 = vadd.f32 %v1096_v5, %v687_v4  ;;  %v3702_v5 = vld [vmem:[%s4720_s3 + $0x88] sm:$0xff] }
  0xc5   : > { %1533 = vmatpush.bf16.msrb.mxu2 %v3702_v5  ;;  %v3656_v5 = vld [vmem:[%s3845_s28 + $0xb8] sm:$0xf0] }
  0xc6   : > { %v1256_v24 = vadd.f32 %v4091_v49, %v1097_v11  ;;  %v767_v28 = vpop.f32.mrf.mxu2 }
  0xc7   : > { %v1176_v31 = vpop.f32.mrf.mxu3 }
  0xc8   : > { %v1177_v52 = vadd.f32 %v1176_v31, %v767_v28  ;;  %1320 = vst [vmem:[#allocation2 + $0x18] sm:$0xff] %v1256_v24  ;;  %v690_v2 = vpop.f32.mrf.mxu0  ;;  %v3240_v28 = vld [vmem:[%s3845_s28 + $0x1b4] sm:$0xf] }
  0xca   : > { %v1288_v63 = vadd.f32 %v4091_v49, %v1177_v52  ;;  %v3640_v52 = vld [vmem:[%s3845_s28 + $0x1b4] sm:$0xf0] }
  0xcb   : > { %v1099_v3 = vpop.f32.mrf.mxu1  ;;  %809 = vmatmul.bf16.gmra.mxu2 %v4142_v53  ;;  %729 = vmatmul.bf16.gmra.mxu0 %v4147_v0 }
  0xcc   : > { %1352 = vst [vmem:[#allocation2 + $0x118] sm:$0xff] %v1288_v63  ;;  %1218 = vmatmul.bf16.gmra.mxu3 %v4144_v54  ;;  %v1100_v4 = vadd.f32 %v1099_v3, %v690_v2  ;;  %v3176_v2 = vld [vmem:[%s3845_s28 + $0xb4] sm:$0xf] }
  0xce   : > { %v1257_v11 = vadd.f32 %v4091_v49, %v1100_v4  ;;  %1138 = vmatmul.bf16.gmra.mxu1 %v4149_v1  ;;  %v770_v12 = vpop.f32.mrf.mxu2 }
  0xcf   : > { %v1179_v13 = vpop.f32.mrf.mxu3 }
  0xd0   : > { %v1180_v18 = vadd.f32 %v1179_v13, %v770_v12  ;;  %1321 = vst [vmem:[#allocation2 + $0x20] sm:$0xff] %v1257_v11  ;;  %v692_v24 = vpop.f32.mrf.mxu0  ;;  %v3624_v11 = vld [vmem:[%s3845_s28 + $0xb4] sm:$0xf0]  ;;  %v4175_v13 = vor.u32 %v3672_v33, %v3240_v28 }
  0xd2   : > { %v1289_v23 = vadd.f32 %v4091_v49, %v1180_v18  ;;  %4757 = vst [vmem:[#allocation12_spill] sm:$0xff] %v4175_v13  ;;  %v4177_v18 = vor.u32 %v3640_v52, %v3400_v48 }
  0xd3   : > { %v1101_v25 = vpop.f32.mrf.mxu1 }
  0xd4   : > { %1353 = vst [vmem:[#allocation2 + $0x120] sm:$0xff] %v1289_v23  ;;  %v1102_v31 = vadd.f32 %v1101_v25, %v692_v24  ;;  %v4180_v24 = vor.u32 %v3656_v5, %v3176_v2  ;;  %v4182_v25 = vor.u32 %v3624_v11, %v3336_v10  ;;  %v3710_v5 = vld [vmem:[%s4719_s2 + $0x8] sm:$0xff]  ;;  %v3404_v11 = vld [vmem:[%s3845_s28 + $0x1c0] sm:$0xf] }
  0xd5   : > { %4758 = vst [vmem:[#allocation13_spill] sm:$0xff] %v4177_v18  ;;  %v3673_v10 = vld [vmem:[%s3845_s28 + $0x1c8] sm:$0xf0]  ;;  %2168 = vmatpush.bf16.msrb.mxu0 %v3710_v5 }
  0xd6   : > { %v1258_v63 = vadd.f32 %v4091_v49, %v1102_v31  ;;  %v772_v3 = vpop.f32.mrf.mxu2 }
  0xd7   : > { %v1181_v4 = vpop.f32.mrf.mxu3 }
  0xd8   : > { %v1182_v12 = vadd.f32 %v1181_v4, %v772_v3  ;;  %1322 = vst [vmem:[#allocation2 + $0x28] sm:$0xff] %v1258_v63  ;;  %v695_v31 = vpop.f32.mrf.mxu0  ;;  %v3244_v3 = vld [vmem:[%s3845_s28 + $0x1c4] sm:$0xf] }
  0xda   : > { %v1290_v23 = vadd.f32 %v4091_v49, %v1182_v12  ;;  %v3641_v12 = vld [vmem:[%s3845_s28 + $0x1c4] sm:$0xf0] }
  0xdb   : > { %v1104_v54 = vpop.f32.mrf.mxu1  ;;  %814 = vmatmul.bf16.gmra.mxu2 %v4175_v13  ;;  %734 = vmatmul.bf16.gmra.mxu0 %v4180_v24 }
  0xdc   : > { %1354 = vst [vmem:[#allocation2 + $0x128] sm:$0xff] %v1290_v23  ;;  %1223 = vmatmul.bf16.gmra.mxu3 %v4177_v18  ;;  %v1105_v28 = vadd.f32 %v1104_v54, %v695_v31  ;;  %v3180_v31 = vld [vmem:[%s3845_s28 + $0xc4] sm:$0xf] }
  0xde   : > { %v1259_v32 = vadd.f32 %v4091_v49, %v1105_v28  ;;  %1143 = vmatmul.bf16.gmra.mxu1 %v4182_v25  ;;  %v775_v33 = vpop.f32.mrf.mxu2 }
  0xdf   : > { %v1184_v48 = vpop.f32.mrf.mxu3 }
  0xe0   : > { %v1185_v52 = vadd.f32 %v1184_v48, %v775_v33  ;;  %1323 = vst [vmem:[#allocation2 + $0x30] sm:$0xff] %v1259_v32  ;;  %v697_v2 = vpop.f32.mrf.mxu0  ;;  %v3657_v33 = vld [vmem:[%s3845_s28 + $0xc8] sm:$0xf0]  ;;  %v3340_v48 = vld [vmem:[%s3845_s28 + $0xc0] sm:$0xf] }
  0xe1   : > { %v4207_v13 = vor.u32 %v3657_v33, %v3180_v31 }
  0xe2   : > { %v1291_v63 = vadd.f32 %v4091_v49, %v1185_v52  ;;  %v3625_v52 = vld [vmem:[%s3845_s28 + $0xc4] sm:$0xf0] }
  0xe3   : > { %v1106_v54 = vpop.f32.mrf.mxu1  ;;  %v4209_v53 = vor.u32 %v3625_v52, %v3340_v48  ;;  %v3718_v48 = vld [vmem:[%s4720_s3 + $0x8] sm:$0xff]  ;;  %v3674_v52 = vld [vmem:[%s3845_s28 + $0x1d8] sm:$0xf0] }
  0xe4   : > { %1355 = vst [vmem:[#allocation2 + $0x130] sm:$0xff] %v1291_v63  ;;  %v1107_v4 = vadd.f32 %v1106_v54, %v697_v2  ;;  %v4202_v63 = vor.u32 %v3673_v10, %v3244_v3  ;;  %v4204_v2 = vor.u32 %v3641_v12, %v3404_v11  ;;  %v3701_v3 = vld [vmem:[%s4720_s3 + $0x80] sm:$0xff]  ;;  %2561 = vmatpush.bf16.msrb.mxu1 %v3718_v48 }
  0xe5   : > { %1534 = vmatpush.bf16.msrb.mxu2 %v3701_v3  ;;  %v3184_v3 = vld [vmem:[%s3845_s28 + $0xd4] sm:$0xf] }
  0xe6   : > { %v1260_v23 = vadd.f32 %v4091_v49, %v1107_v4  ;;  %v777_v28 = vpop.f32.mrf.mxu2  ;;  %4759 = vst [vmem:[#allocation14_spill] sm:$0xff] %v4202_v63 }
  0xe7   : > { %v1186_v32 = vpop.f32.mrf.mxu3  ;;  %4760 = vst [vmem:[#allocation15_spill] sm:$0xff] %v4204_v2 }
  0xe8   : > { %v1187_v18 = vadd.f32 %v1186_v32, %v777_v28  ;;  %1324 = vst [vmem:[#allocation2 + $0x38] sm:$0xff] %v1260_v23  ;;  %v700_v4 = vpop.f32.mrf.mxu0  ;;  %v3248_v32 = vld [vmem:[%s3845_s28 + $0x1d4] sm:$0xf] }
  0xea   : > { %v1292_v54 = vadd.f32 %v4091_v49, %v1187_v18  ;;  %v3693_v18 = vld [vmem:[%s4720_s3 + $0x40] sm:$0xff] }
  0xeb   : > { %v1109_v47 = vpop.f32.mrf.mxu1  ;;  %819 = vmatmul.bf16.gmra.mxu2 %v4202_v63  ;;  %739 = vmatmul.bf16.gmra.mxu0 %v4207_v13 }
  0xec   : > { %1356 = vst [vmem:[#allocation2 + $0x138] sm:$0xff] %v1292_v54  ;;  %1228 = vmatmul.bf16.gmra.mxu3 %v4204_v2  ;;  %v1110_v5 = vadd.f32 %v1109_v47, %v700_v4  ;;  %v3408_v54 = vld [vmem:[%s3845_s28 + $0x1d0] sm:$0xf]  ;;  %v3642_v4 = vld [vmem:[%s3845_s28 + $0x1d4] sm:$0xf0] }
  0xed   : > { %1751 = vmatpush.bf16.msrb.mxu3 %v3693_v18 }
  0xee   : > { %v1261_v10 = vadd.f32 %v4091_v49, %v1110_v5  ;;  %1148 = vmatmul.bf16.gmra.mxu1 %v4209_v53  ;;  %v780_v11 = vpop.f32.mrf.mxu2 }
  0xef   : > { %v1189_v47 = vpop.f32.mrf.mxu3 }
  0xf0   : > { %v1190_v12 = vadd.f32 %v1189_v47, %v780_v11  ;;  %1325 = vst [vmem:[#allocation2 + $0x40] sm:$0xff] %v1261_v10  ;;  %v702_v31 = vpop.f32.mrf.mxu0  ;;  %v3658_v11 = vld [vmem:[%s3845_s28 + $0xd8] sm:$0xf0]  ;;  %v3344_v47 = vld [vmem:[%s3845_s28 + $0xd0] sm:$0xf] }
  0xf1   : > { %v4240_v63 = vor.u32 %v3658_v11, %v3184_v3  ;;  %v3252_v3 = vld [vmem:[%s3845_s28 + $0x1e4] sm:$0xf]  ;;  %v3675_v11 = vld [vmem:[%s3845_s28 + $0x1e8] sm:$0xf0] }
  0xf2   : > { %v1293_v23 = vadd.f32 %v4091_v49, %v1190_v12  ;;  %v3626_v12 = vld [vmem:[%s3845_s28 + $0xd4] sm:$0xf0] }
  0xf3   : > { %v1111_v28 = vpop.f32.mrf.mxu1  ;;  %v4242_v34 = vor.u32 %v3626_v12, %v3344_v47  ;;  %v3412_v47 = vld [vmem:[%s3845_s28 + $0x1e0] sm:$0xf]  ;;  %v3643_v12 = vld [vmem:[%s3845_s28 + $0x1e4] sm:$0xf0] }
  0xf4   : > { %1357 = vst [vmem:[#allocation2 + $0x140] sm:$0xff] %v1293_v23  ;;  %v1112_v33 = vadd.f32 %v1111_v28, %v702_v31  ;;  %v4235_v23 = vor.u32 %v3674_v52, %v3248_v32  ;;  %v4237_v31 = vor.u32 %v3642_v4, %v3408_v54 }
  0xf6   : > { %v1262_v5 = vadd.f32 %v4091_v49, %v1112_v33  ;;  %v782_v18 = vpop.f32.mrf.mxu2  ;;  %4761 = vst [vmem:[#allocation16_spill] sm:$0xff] %v4235_v23 }
  0xf7   : > { %v1191_v10 = vpop.f32.mrf.mxu3  ;;  %4762 = vst [vmem:[#allocation17_spill] sm:$0xff] %v4237_v31 }
  0xf8   : > { %v1192_v2 = vadd.f32 %v1191_v10, %v782_v18  ;;  %1326 = vst [vmem:[#allocation2 + $0x48] sm:$0xff] %v1262_v5  ;;  %v705_v33 = vpop.f32.mrf.mxu0  ;;  %v3709_v10 = vld [vmem:[%s4719_s2] sm:$0xff] }
  0xf9   : > { %2169 = vmatpush.bf16.msrb.mxu0 %v3709_v10 }
  0xfa   : > { %v1294_v28 = vadd.f32 %v4091_v49, %v1192_v2 }
  0xfb   : > { %v1114_v36 = vpop.f32.mrf.mxu1  ;;  %824 = vmatmul.bf16.gmra.mxu2 %v4235_v23  ;;  %744 = vmatmul.bf16.gmra.mxu0 %v4240_v63 }
  0xfc   : > { %1358 = vst [vmem:[#allocation2 + $0x148] sm:$0xff] %v1294_v28  ;;  %1233 = vmatmul.bf16.gmra.mxu3 %v4237_v31  ;;  %v1115_v32 = vadd.f32 %v1114_v36, %v705_v33  ;;  %v3188_v33 = vld [vmem:[%s3845_s28 + $0xe4] sm:$0xf] }
  0xfe   : > { %v1263_v48 = vadd.f32 %v4091_v49, %v1115_v32  ;;  %1153 = vmatmul.bf16.gmra.mxu1 %v4242_v34  ;;  %v785_v2 = vpop.f32.mrf.mxu2 }
  0xff   : > { %v1194_v52 = vpop.f32.mrf.mxu3 }
 0x100   : > { %v1195_v54 = vadd.f32 %v1194_v52, %v785_v2  ;;  %1327 = vst [vmem:[#allocation2 + $0x50] sm:$0xff] %v1263_v48  ;;  %v707_v5 = vpop.f32.mrf.mxu0  ;;  %v3659_v2 = vld [vmem:[%s3845_s28 + $0xe8] sm:$0xf0]  ;;  %v3348_v52 = vld [vmem:[%s3845_s28 + $0xe0] sm:$0xf] }
 0x101   : > { %v4267_v23 = vor.u32 %v3659_v2, %v3188_v33  ;;  %v3256_v33 = vld [vmem:[%s3845_s28 + $0x1f4] sm:$0xf]  ;;  %v3676_v2 = vld [vmem:[%s3845_s28 + $0x1f8] sm:$0xf0] }
 0x102   : > { %v1295_v4 = vadd.f32 %v4091_v49, %v1195_v54  ;;  %v3627_v54 = vld [vmem:[%s3845_s28 + $0xe4] sm:$0xf0] }
 0x103   : > { %v1116_v36 = vpop.f32.mrf.mxu1  ;;  %v4269_v35 = vor.u32 %v3627_v54, %v3348_v52  ;;  %v3416_v52 = vld [vmem:[%s3845_s28 + $0x1f0] sm:$0xf]  ;;  %v3644_v54 = vld [vmem:[%s3845_s28 + $0x1f4] sm:$0xf0] }
 0x104   : > { %1359 = vst [vmem:[#allocation2 + $0x150] sm:$0xff] %v1295_v4  ;;  %v1117_v18 = vadd.f32 %v1116_v36, %v707_v5  ;;  %v4262_v4 = vor.u32 %v3675_v11, %v3252_v3  ;;  %v4264_v5 = vor.u32 %v3643_v12, %v3412_v47 }
 0x106   : > { %v1264_v28 = vadd.f32 %v4091_v49, %v1117_v18  ;;  %v787_v32 = vpop.f32.mrf.mxu2  ;;  %4763 = vst [vmem:[#allocation18_spill] sm:$0xff] %v4262_v4 }
 0x107   : > { %v1196_v48 = vpop.f32.mrf.mxu3  ;;  %4764 = vst [vmem:[#allocation19_spill] sm:$0xff] %v4264_v5 }
 0x108   : > { %v1197_v31 = vadd.f32 %v1196_v48, %v787_v32  ;;  %1328 = vst [vmem:[#allocation2 + $0x58] sm:$0xff] %v1264_v28  ;;  %v710_v18 = vpop.f32.mrf.mxu0  ;;  %v3717_v48 = vld [vmem:[%s4720_s3] sm:$0xff] }
 0x109   : > { %2562 = vmatpush.bf16.msrb.mxu1 %v3717_v48 }
 0x10a   : > { %v1296_v36 = vadd.f32 %v4091_v49, %v1197_v31 }
 0x10b   : > { %v1119_v15 = vpop.f32.mrf.mxu1  ;;  %829 = vmatmul.bf16.gmra.mxu2 %v4262_v4  ;;  %749 = vmatmul.bf16.gmra.mxu0 %v4267_v23 }
 0x10c   : > { %1360 = vst [vmem:[#allocation2 + $0x158] sm:$0xff] %v1296_v36  ;;  %1238 = vmatmul.bf16.gmra.mxu3 %v4264_v5  ;;  %v1120_v3 = vadd.f32 %v1119_v15, %v710_v18  ;;  %v3192_v18 = vld [vmem:[%s3845_s28 + $0xf4] sm:$0xf] }
 0x10e   : > { %v1265_v10 = vadd.f32 %v4091_v49, %v1120_v3  ;;  %1158 = vmatmul.bf16.gmra.mxu1 %v4269_v35  ;;  %v790_v31 = vpop.f32.mrf.mxu2 }
 0x10f   : > { %v1199_v11 = vpop.f32.mrf.mxu3 }
 0x110   : > { %v1200_v47 = vadd.f32 %v1199_v11, %v790_v31  ;;  %1329 = vst [vmem:[#allocation2 + $0x60] sm:$0xff] %v1265_v10  ;;  %v712_v28 = vpop.f32.mrf.mxu0  ;;  %v3660_v31 = vld [vmem:[%s3845_s28 + $0xf8] sm:$0xf0]  ;;  %v3352_v11 = vld [vmem:[%s3845_s28 + $0xf0] sm:$0xf] }
 0x111   : > { %v4294_v4 = vor.u32 %v3660_v31, %v3192_v18 }
 0x112   : > { %v1297_v12 = vadd.f32 %v4091_v49, %v1200_v47  ;;  %v3628_v47 = vld [vmem:[%s3845_s28 + $0xf4] sm:$0xf0] }
 0x113   : > { %v1121_v15 = vpop.f32.mrf.mxu1  ;;  %v4296_v14 = vor.u32 %v3628_v47, %v3352_v11 }
 0x114   : > { %1361 = vst [vmem:[#allocation2 + $0x160] sm:$0xff] %v1297_v12  ;;  %v1122_v32 = vadd.f32 %v1121_v15, %v712_v28  ;;  %v4289_v12 = vor.u32 %v3676_v2, %v3256_v33  ;;  %v4291_v28 = vor.u32 %v3644_v54, %v3416_v52 }
 0x116   : > { %v1266_v36 = vadd.f32 %v4091_v49, %v1122_v32  ;;  %v792_v3 = vpop.f32.mrf.mxu2 }
 0x117   : > { %v1201_v10 = vpop.f32.mrf.mxu3 }
 0x118   : > { %v1202_v5 = vadd.f32 %v1201_v10, %v792_v3  ;;  %1330 = vst [vmem:[#allocation2 + $0x68] sm:$0xff] %v1266_v36  ;;  %v715_v32 = vpop.f32.mrf.mxu0 }
 0x11a   : > { %v1298_v15 = vadd.f32 %v4091_v49, %v1202_v5 }
 0x11b   : > { %v1124_v60 = vpop.f32.mrf.mxu1  ;;  %834 = vmatmul.bf16.gmra.mxu2 %v4289_v12  ;;  %754 = vmatmul.bf16.gmra.mxu0 %v4294_v4 }
 0x11c   : > { %1362 = vst [vmem:[#allocation2 + $0x168] sm:$0xff] %v1298_v15  ;;  %1243 = vmatmul.bf16.gmra.mxu3 %v4291_v28  ;;  %v1125_v48 = vadd.f32 %v1124_v60, %v715_v32 }
 0x11e   : > { %v1267_v33 = vadd.f32 %v4091_v49, %v1125_v48  ;;  %1163 = vmatmul.bf16.gmra.mxu1 %v4296_v14  ;;  %v795_v2 = vpop.f32.mrf.mxu2 }
 0x11f   : > { %v1204_v5 = vpop.f32.mrf.mxu3 }
 0x120   : > { %v1205_v52 = vadd.f32 %v1204_v5, %v795_v2  ;;  %1331 = vst [vmem:[#allocation2 + $0x70] sm:$0xff] %v1267_v33  ;;  %v717_v36 = vpop.f32.mrf.mxu0  ;;  %v252_v2 = vld [vmem:[%s4310_s10] sm:$0x1] }
 0x121   : > { %260 = vst [vmem:[%s4323_s14] sm:$0x1] %v252_v2 }
 0x122   : > { %v1299_v54 = vadd.f32 %v4091_v49, %v1205_v52 }
 0x123   : > { %v1126_v18 = vpop.f32.mrf.mxu1 }
 0x124   : > { %1363 = vst [vmem:[#allocation2 + $0x170] sm:$0xff] %v1299_v54  ;;  %v1127_v3 = vadd.f32 %v1126_v18, %v717_v36  ;;  %v253_v54 = vld [vmem:[%s4310_s10 + $0x1] sm:$0x1]  ;;  %v255_v18 = vld [vmem:[%s4310_s10 + $0x3] sm:$0x1] }
 0x125   : > { %261 = vst [vmem:[%s4323_s14 + $0x48] sm:$0x1] %v253_v54 }
 0x126   : > { %v1268_v10 = vadd.f32 %v4091_v49, %v1127_v3  ;;  %v797_v60 = vpop.f32.mrf.mxu2  ;;  %263 = vst [vmem:[%s4323_s14 + $0xd8] sm:$0x1] %v255_v18 }
 0x127   : > { %v1206_v31 = vpop.f32.mrf.mxu3 }
 0x128   : > { %v1207_v11 = vadd.f32 %v1206_v31, %v797_v60  ;;  %1332 = vst [vmem:[#allocation2 + $0x78] sm:$0xff] %v1268_v10  ;;  %v720_v15 = vpop.f32.mrf.mxu0  ;;  %v256_v60 = vld [vmem:[%s4310_s10 + $0x4] sm:$0x1] }
 0x129   : > { %264 = vst [vmem:[%s4323_s14 + $0x120] sm:$0x1] %v256_v60 }
 0x12a   : > { %v1300_v47 = vadd.f32 %v4091_v49, %v1207_v11  ;;  %v257_v11 = vld [vmem:[%s4310_s10 + $0x5] sm:$0x1] }
 0x12b   : > { %v1129_v32 = vpop.f32.mrf.mxu1  ;;  %1535 = vmatmul.bf16.vlgmr.msrb.gmra.mxu2 %v3874_v29  ;;  %2170 = vmatmul.bf16.vlgmr.msrb.gmra.mxu0 %v3874_v29  ;;  %265 = vst [vmem:[%s4323_s14 + $0x168] sm:$0x1] %v257_v11 }
 0x12c   : > { %1364 = vst [vmem:[#allocation2 + $0x178] sm:$0xff] %v1300_v47  ;;  %1752 = vmatmul.bf16.vlgmr.msrb.gmra.mxu3 %v3876_v30  ;;  %v1130_v48 = vadd.f32 %v1129_v32, %v720_v15  ;;  %v258_v15 = vld [vmem:[%s4310_s10 + $0x6] sm:$0x1] }
 0x12d   : > { %266 = vst [vmem:[%s4323_s14 + $0x1b0] sm:$0x1] %v258_v15 }
 0x12e   : > { %v1269_v33 = vadd.f32 %v4091_v49, %v1130_v48  ;;  %2563 = vmatmul.bf16.vlgmr.msrb.gmra.mxu1 %v3874_v29  ;;  %v800_v5 = vpop.f32.mrf.mxu2  ;;  %v254_v29 = vld [vmem:[%s4310_s10 + $0x2] sm:$0x1] }
 0x12f   : > { %v1209_v52 = vpop.f32.mrf.mxu3  ;;  %262 = vst [vmem:[%s4323_s14 + $0x90] sm:$0x1] %v254_v29 }
 0x130   : > { %v1210_v36 = vadd.f32 %v1209_v52, %v800_v5  ;;  %1333 = vst [vmem:[#allocation2 + $0x80] sm:$0xff] %v1269_v33  ;;  %v722_v3 = vpop.f32.mrf.mxu0  ;;  %v259_v33 = vld [vmem:[%s4310_s10 + $0x7] sm:$0x1] }
 0x131   : > { %267 = vst [vmem:[%s4323_s14 + $0x1f8] sm:$0x1] %v259_v33 }
 0x132   : > { %v1301_v30 = vadd.f32 %v4091_v49, %v1210_v36 }
 0x133   : > { %v1131_v10 = vpop.f32.mrf.mxu1 }
 0x134   : > { %1365 = vst [vmem:[#allocation2 + $0x180] sm:$0xff] %v1301_v30  ;;  %v1132_v31 = vadd.f32 %v1131_v10, %v722_v3 }
 0x136   : > { %v1270_v47 = vadd.f32 %v4091_v49, %v1132_v31  ;;  %v802_v32 = vpop.f32.mrf.mxu2 }
 0x137   : > { %v1211_v48 = vpop.f32.mrf.mxu3 }
 0x138   : > { %v1212_v2 = vadd.f32 %v1211_v48, %v802_v32  ;;  %1334 = vst [vmem:[#allocation2 + $0x88] sm:$0xff] %v1270_v47  ;;  %v725_v52 = vpop.f32.mrf.mxu0 }
 0x13a   : > { %v1302_v5 = vadd.f32 %v4091_v49, %v1212_v2 }
 0x13b   : > { %v1134_v54 = vpop.f32.mrf.mxu1  ;;  %1540 = vmatmul.bf16.gmra.mxu2 %v3903_v44  ;;  %2175 = vmatmul.bf16.gmra.mxu0 %v3903_v44 }
 0x13c   : > { %1366 = vst [vmem:[#allocation2 + $0x188] sm:$0xff] %v1302_v5  ;;  %1757 = vmatmul.bf16.gmra.mxu3 %v3905_v45  ;;  %v1135_v36 = vadd.f32 %v1134_v54, %v725_v52 }
 0x13e   : > { %v1271_v29 = vadd.f32 %v4091_v49, %v1135_v36  ;;  %2568 = vmatmul.bf16.gmra.mxu1 %v3903_v44  ;;  %v805_v30 = vpop.f32.mrf.mxu2 }
 0x13f   : > { %v1214_v18 = vpop.f32.mrf.mxu3 }
 0x140   : > { %v1215_v3 = vadd.f32 %v1214_v18, %v805_v30  ;;  %1335 = vst [vmem:[#allocation2 + $0x90] sm:$0xff] %v1271_v29  ;;  %v727_v60 = vpop.f32.mrf.mxu0 }
 0x142   : > { %v1303_v10 = vadd.f32 %v4091_v49, %v1215_v3 }
 0x143   : > { %v1136_v31 = vpop.f32.mrf.mxu1 }
 0x144   : > { %1367 = vst [vmem:[#allocation2 + $0x190] sm:$0xff] %v1303_v10  ;;  %v1137_v11 = vadd.f32 %v1136_v31, %v727_v60 }
 0x146   : > { %v1272_v47 = vadd.f32 %v4091_v49, %v1137_v11  ;;  %v807_v45 = vpop.f32.mrf.mxu2 }
 0x147   : > { %v1216_v15 = vpop.f32.mrf.mxu3 }
 0x148   : > { %v1217_v32 = vadd.f32 %v1216_v15, %v807_v45  ;;  %1336 = vst [vmem:[#allocation2 + $0x98] sm:$0xff] %v1272_v47  ;;  %v730_v33 = vpop.f32.mrf.mxu0 }
 0x14a   : > { %v1304_v48 = vadd.f32 %v4091_v49, %v1217_v32 }
 0x14b   : > { %v1139_v44 = vpop.f32.mrf.mxu1  ;;  %1545 = vmatmul.bf16.gmra.mxu2 %v3926_v57  ;;  %2180 = vmatmul.bf16.gmra.mxu0 %v3926_v57 }
 0x14c   : > { %1368 = vst [vmem:[#allocation2 + $0x198] sm:$0xff] %v1304_v48  ;;  %1762 = vmatmul.bf16.gmra.mxu3 %v3928_v58  ;;  %v1140_v2 = vadd.f32 %v1139_v44, %v730_v33 }
 0x14e   : > { %v1273_v5 = vadd.f32 %v4091_v49, %v1140_v2  ;;  %2573 = vmatmul.bf16.gmra.mxu1 %v3926_v57  ;;  %v810_v52 = vpop.f32.mrf.mxu2 }
 0x14f   : > { %v1219_v54 = vpop.f32.mrf.mxu3 }
 0x150   : > { %v1220_v36 = vadd.f32 %v1219_v54, %v810_v52  ;;  %1337 = vst [vmem:[#allocation2 + $0xa0] sm:$0xff] %v1273_v5  ;;  %v732_v30 = vpop.f32.mrf.mxu0 }
 0x152   : > { %v1305_v29 = vadd.f32 %v4091_v49, %v1220_v36 }
 0x153   : > { %v1141_v18 = vpop.f32.mrf.mxu1 }
 0x154   : > { %1369 = vst [vmem:[#allocation2 + $0x1a0] sm:$0xff] %v1305_v29  ;;  %v1142_v3 = vadd.f32 %v1141_v18, %v732_v30 }
 0x156   : > { %v1274_v10 = vadd.f32 %v4091_v49, %v1142_v3  ;;  %v812_v58 = vpop.f32.mrf.mxu2 }
 0x157   : > { %v1221_v60 = vpop.f32.mrf.mxu3 }
 0x158   : > { %v1222_v31 = vadd.f32 %v1221_v60, %v812_v58  ;;  %1338 = vst [vmem:[#allocation2 + $0xa8] sm:$0xff] %v1274_v10  ;;  %v735_v47 = vpop.f32.mrf.mxu0 }
 0x15a   : > { %v1306_v11 = vadd.f32 %v4091_v49, %v1222_v31 }
 0x15b   : > { %v1144_v57 = vpop.f32.mrf.mxu1  ;;  %1550 = vmatmul.bf16.gmra.mxu2 %v3955_v8  ;;  %2185 = vmatmul.bf16.gmra.mxu0 %v3955_v8 }
 0x15c   : > { %1370 = vst [vmem:[#allocation2 + $0x1a8] sm:$0xff] %v1306_v11  ;;  %1767 = vmatmul.bf16.gmra.mxu3 %v3957_v9  ;;  %v1145_v45 = vadd.f32 %v1144_v57, %v735_v47 }
 0x15e   : > { %v1275_v15 = vadd.f32 %v4091_v49, %v1145_v45  ;;  %2578 = vmatmul.bf16.gmra.mxu1 %v3955_v8  ;;  %v815_v32 = vpop.f32.mrf.mxu2 }
 0x15f   : > { %v1224_v48 = vpop.f32.mrf.mxu3 }
 0x160   : > { %v1225_v33 = vadd.f32 %v1224_v48, %v815_v32  ;;  %1339 = vst [vmem:[#allocation2 + $0xb0] sm:$0xff] %v1275_v15  ;;  %v737_v2 = vpop.f32.mrf.mxu0 }
 0x162   : > { %v1307_v44 = vadd.f32 %v4091_v49, %v1225_v33 }
 0x163   : > { %v1146_v5 = vpop.f32.mrf.mxu1 }
 0x164   : > { %1371 = vst [vmem:[#allocation2 + $0x1b0] sm:$0xff] %v1307_v44  ;;  %v1147_v52 = vadd.f32 %v1146_v5, %v737_v2 }
 0x166   : > { %v1276_v54 = vadd.f32 %v4091_v49, %v1147_v52  ;;  %v817_v9 = vpop.f32.mrf.mxu2 }
 0x167   : > { %v1226_v36 = vpop.f32.mrf.mxu3 }
 0x168   : > { %v1227_v29 = vadd.f32 %v1226_v36, %v817_v9  ;;  %1340 = vst [vmem:[#allocation2 + $0xb8] sm:$0xff] %v1276_v54  ;;  %v740_v18 = vpop.f32.mrf.mxu0 }
 0x16a   : > { %v1308_v30 = vadd.f32 %v4091_v49, %v1227_v29 }
 0x16b   : > { %v1149_v8 = vpop.f32.mrf.mxu1  ;;  %1555 = vmatmul.bf16.gmra.mxu2 %v3978_v21  ;;  %2189 = vmatmul.bf16.gmra.mxu0 %v3978_v21 }
 0x16c   : > { %1372 = vst [vmem:[#allocation2 + $0x1b8] sm:$0xff] %v1308_v30  ;;  %1772 = vmatmul.bf16.gmra.mxu3 %v3980_v22  ;;  %v1150_v3 = vadd.f32 %v1149_v8, %v740_v18 }
 0x16e   : > { %v1277_v10 = vadd.f32 %v4091_v49, %v1150_v3  ;;  %2582 = vmatmul.bf16.gmra.mxu1 %v3978_v21  ;;  %v820_v58 = vpop.f32.mrf.mxu2 }
 0x16f   : > { %v1229_v60 = vpop.f32.mrf.mxu3 }
 0x170   : > { %v1230_v31 = vadd.f32 %v1229_v60, %v820_v58  ;;  %1341 = vst [vmem:[#allocation2 + $0xc0] sm:$0xff] %v1277_v10  ;;  %v742_v47 = vpop.f32.mrf.mxu0 }
 0x172   : > { %v1309_v11 = vadd.f32 %v4091_v49, %v1230_v31 }
 0x173   : > { %v1151_v57 = vpop.f32.mrf.mxu1 }
 0x174   : > { %1373 = vst [vmem:[#allocation2 + $0x1c0] sm:$0xff] %v1309_v11  ;;  %v1152_v45 = vadd.f32 %v1151_v57, %v742_v47 }
 0x176   : > { %v1278_v15 = vadd.f32 %v4091_v49, %v1152_v45  ;;  %v822_v22 = vpop.f32.mrf.mxu2 }
 0x177   : > { %v1231_v32 = vpop.f32.mrf.mxu3 }
 0x178   : > { %v1232_v48 = vadd.f32 %v1231_v32, %v822_v22  ;;  %1342 = vst [vmem:[#allocation2 + $0xc8] sm:$0xff] %v1278_v15  ;;  %v745_v44 = vpop.f32.mrf.mxu0 }
 0x17a   : > { %v1310_v33 = vadd.f32 %v4091_v49, %v1232_v48 }
 0x17b   : > { %v1154_v21 = vpop.f32.mrf.mxu1  ;;  %1560 = vmatmul.bf16.gmra.mxu2 %v4007_v40  ;;  %2194 = vmatmul.bf16.gmra.mxu0 %v4007_v40 }
 0x17c   : > { %1374 = vst [vmem:[#allocation2 + $0x1c8] sm:$0xff] %v1310_v33  ;;  %1777 = vmatmul.bf16.gmra.mxu3 %v4009_v41  ;;  %v1155_v2 = vadd.f32 %v1154_v21, %v745_v44 }
 0x17e   : > { %v1279_v5 = vadd.f32 %v4091_v49, %v1155_v2  ;;  %2587 = vmatmul.bf16.gmra.mxu1 %v4007_v40  ;;  %v825_v52 = vpop.f32.mrf.mxu2 }
 0x17f   : > { %v1234_v54 = vpop.f32.mrf.mxu3 }
 0x180   : > { %v1235_v9 = vadd.f32 %v1234_v54, %v825_v52  ;;  %1343 = vst [vmem:[#allocation2 + $0xd0] sm:$0xff] %v1279_v5  ;;  %v747_v29 = vpop.f32.mrf.mxu0 }
 0x182   : > { %v1311_v36 = vadd.f32 %v4091_v49, %v1235_v9 }
 0x183   : > { %v1156_v30 = vpop.f32.mrf.mxu1 }
 0x184   : > { %1375 = vst [vmem:[#allocation2 + $0x1d0] sm:$0xff] %v1311_v36  ;;  %v1157_v18 = vadd.f32 %v1156_v30, %v747_v29 }
 0x186   : > { %v1280_v8 = vadd.f32 %v4091_v49, %v1157_v18  ;;  %v827_v41 = vpop.f32.mrf.mxu2 }
 0x187   : > { %v1236_v3 = vpop.f32.mrf.mxu3 }
 0x188   : > { %v1237_v10 = vadd.f32 %v1236_v3, %v827_v41  ;;  %1344 = vst [vmem:[#allocation2 + $0xd8] sm:$0xff] %v1280_v8  ;;  %v750_v60 = vpop.f32.mrf.mxu0 }
 0x18a   : > { %v1312_v58 = vadd.f32 %v4091_v49, %v1237_v10 }
 0x18b   : > { %v1159_v40 = vpop.f32.mrf.mxu1  ;;  %1565 = vmatmul.bf16.gmra.mxu2 %v4030_v61  ;;  %2199 = vmatmul.bf16.gmra.mxu0 %v4030_v61 }
 0x18c   : > { %1376 = vst [vmem:[#allocation2 + $0x1d8] sm:$0xff] %v1312_v58  ;;  %1782 = vmatmul.bf16.gmra.mxu3 %v4032_v62  ;;  %v1160_v31 = vadd.f32 %v1159_v40, %v750_v60 }
 0x18e   : > { %v1281_v11 = vadd.f32 %v4091_v49, %v1160_v31  ;;  %2592 = vmatmul.bf16.gmra.mxu1 %v4030_v61  ;;  %v830_v47 = vpop.f32.mrf.mxu2 }
 0x18f   : > { %v1239_v57 = vpop.f32.mrf.mxu3 }
 0x190   : > { %v1240_v45 = vadd.f32 %v1239_v57, %v830_v47  ;;  %1345 = vst [vmem:[#allocation2 + $0xe0] sm:$0xff] %v1281_v11  ;;  %v752_v22 = vpop.f32.mrf.mxu0  ;;  %v1381_v57 = vld [vmem:[#allocation2 + $0x1] sm:$0x7f] }
 0x192   : > { %v1313_v15 = vadd.f32 %v4091_v49, %v1240_v45 }
 0x193   : > { %v1161_v32 = vpop.f32.mrf.mxu1 }
 0x194   : > { %1377 = vst [vmem:[#allocation2 + $0x1e0] sm:$0xff] %v1313_v15  ;;  %v1162_v48 = vadd.f32 %v1161_v32, %v752_v22 }
 0x196   : > { %v1282_v33 = vadd.f32 %v4091_v49, %v1162_v48  ;;  %v832_v62 = vpop.f32.mrf.mxu2 }
 0x197   : > { %v1241_v44 = vpop.f32.mrf.mxu3 }
 0x198   : > { %v1242_v21 = vadd.f32 %v1241_v44, %v832_v62  ;;  %1346 = vst [vmem:[#allocation2 + $0xe8] sm:$0xff] %v1282_v33  ;;  %v755_v5 = vpop.f32.mrf.mxu0  ;;  %v1382_v33 = vld [vmem:[#allocation2 + $0x9] sm:$0x7f] }
 0x19a   : > { %v1314_v2 = vadd.f32 %v4091_v49, %v1242_v21 }
 0x19b   : > { %v1164_v61 = vpop.f32.mrf.mxu1  ;;  %1570 = vmatmul.bf16.gmra.mxu2 %v4059_v16  ;;  %2204 = vmatmul.bf16.gmra.mxu0 %v4059_v16 }
 0x19c   : > { %1378 = vst [vmem:[#allocation2 + $0x1e8] sm:$0xff] %v1314_v2  ;;  %1787 = vmatmul.bf16.gmra.mxu3 %v4061_v17  ;;  %v1165_v52 = vadd.f32 %v1164_v61, %v755_v5  ;;  %v1383_v61 = vld [vmem:[#allocation2 + $0x11] sm:$0x7f] }
 0x19e   : > { %v1283_v54 = vadd.f32 %v4091_v49, %v1165_v52  ;;  %2597 = vmatmul.bf16.gmra.mxu1 %v4059_v16  ;;  %v835_v9 = vpop.f32.mrf.mxu2 }
 0x19f   : > { %v1244_v36 = vpop.f32.mrf.mxu3 }
 0x1a0   : > { %v1245_v29 = vadd.f32 %v1244_v36, %v835_v9  ;;  %1347 = vst [vmem:[#allocation2 + $0xf0] sm:$0xff] %v1283_v54  ;;  %v757_v18 = vpop.f32.mrf.mxu0 }
 0x1a2   : > { %v1315_v30 = vadd.f32 %v4091_v49, %v1245_v29 }
 0x1a3   : > { %v1166_v8 = vpop.f32.mrf.mxu1 }
 0x1a4   : > { %1379 = vst [vmem:[#allocation2 + $0x1f0] sm:$0xff] %v1315_v30  ;;  %v1167_v41 = vadd.f32 %v1166_v8, %v757_v18  ;;  %v1384_v8 = vld [vmem:[#allocation2 + $0x19] sm:$0x7f] }
 0x1a6   : > { %v1284_v3 = vadd.f32 %v4091_v49, %v1167_v41  ;;  %v837_v17 = vpop.f32.mrf.mxu2 }
 0x1a7   : > { %v1246_v10 = vpop.f32.mrf.mxu3 }
 0x1a8   : > { %v1247_v58 = vadd.f32 %v1246_v10, %v837_v17  ;;  %1348 = vst [vmem:[#allocation2 + $0xf8] sm:$0xff] %v1284_v3  ;;  %v2171_v40 = vpop.f32.mrf.mxu0 }
 0x1aa   : > { %v1316_v60 = vadd.f32 %v4091_v49, %v1247_v58 }
 0x1ab   : > { %v2564_v16 = vpop.f32.mrf.mxu1  ;;  %1575 = vmatmul.bf16.gmra.mxu2 %v4082_v37  ;;  %2208 = vmatmul.bf16.gmra.mxu0 %v4082_v37 }
 0x1ac   : > { %1380 = vst [vmem:[#allocation2 + $0x1f8] sm:$0xff] %v1316_v60  ;;  %1792 = vmatmul.bf16.gmra.mxu3 %v4084_v46 }
 0x1ae   : > { %2601 = vmatmul.bf16.gmra.mxu1 %v4082_v37  ;;  %v1536_v31 = vpop.f32.mrf.mxu2 }
 0x1af   : > { %v1753_v11 = vpop.f32.mrf.mxu3 }
 0x1b0   : > { %v1754_v47 = vadd.f32 %v1753_v11, %v1536_v31  ;;  %v2173_v15 = vpop.f32.mrf.mxu0 }
 0x1b2   : > { %v1913_v45 = vadd.f32 %v1754_v47, %v1381_v57  ;;  %v1385_v47 = vld [vmem:[#allocation2 + $0x21] sm:$0x7f] }
 0x1b3   : > { %v2566_v22 = vpop.f32.mrf.mxu1 }
 0x1b4   : > { %1977 = vst [vmem:[#allocation2 + $0x1] sm:$0x7f] %v1913_v45 }
 0x1b6   : > { %v1538_v49 = vpop.f32.mrf.mxu2 }
 0x1b7   : > { %v1755_v32 = vpop.f32.mrf.mxu3 }
 0x1b8   : > { %v1756_v48 = vadd.f32 %v1755_v32, %v1538_v49  ;;  %v2176_v46 = vpop.f32.mrf.mxu0 }
 0x1ba   : > { %v1914_v62 = vadd.f32 %v1756_v48, %v1382_v33 }
 0x1bb   : > { %v2828_v44 = vld [vmem:[#allocation2] sm:$0xff]  ;;  %v4402_v21 = vpop.f32.mrf.mxu1  ;;  %1580 = vmatmul.bf16.gmra.mxu2 %v4120_v50  ;;  %2213 = vmatmul.bf16.gmra.mxu0 %v4120_v50 }
 0x1bc   : > { %2892 = vst [vmem:[%s4323_s14 + $0x1] sm:$0xff] %v2828_v44  ;;  %1797 = vmatmul.bf16.gmra.mxu3 %v4122_v51  ;;  %v1386_v44 = vld [vmem:[#allocation2 + $0x29] sm:$0x7f] }
 0x1bd   : > { %1978 = vst [vmem:[#allocation2 + $0x9] sm:$0x7f] %v1914_v62 }
 0x1be   : > { %2606 = vmatmul.bf16.gmra.mxu1 %v4120_v50  ;;  %v1541_v37 = vpop.f32.mrf.mxu2 }
 0x1bf   : > { %v1758_v2 = vpop.f32.mrf.mxu3 }
 0x1c0   : > { %v1759_v5 = vadd.f32 %v1758_v2, %v1541_v37  ;;  %v2178_v54 = vpop.f32.mrf.mxu0 }
 0x1c2   : > { %v1915_v52 = vadd.f32 %v1759_v5, %v1383_v61 }
 0x1c3   : > { %v4409_v9 = vpop.f32.mrf.mxu1 }
 0x1c4   : > { %v2042_v36 = vld [vmem:[#allocation2 + $0x8] sm:$0xff]  ;;  %1979 = vst [vmem:[#allocation2 + $0x11] sm:$0x7f] %v1915_v52 }
 0x1c5   : > { %v2323_v29 = vadd.f32 %v2171_v40, %v2042_v36 }
 0x1c6   : > { %v1543_v30 = vpop.f32.mrf.mxu2 }
 0x1c7   : > { %2379 = vst [vmem:[#allocation2 + $0x8] sm:$0xff] %v2323_v29  ;;  %v1760_v18 = vpop.f32.mrf.mxu3 }
 0x1c8   : > { %v1761_v51 = vadd.f32 %v1760_v18, %v1543_v30  ;;  %v2181_v17 = vpop.f32.mrf.mxu0 }
 0x1ca   : > { %v1916_v41 = vadd.f32 %v1761_v51, %v1384_v8 }
 0x1cb   : > { %v2043_v3 = vld [vmem:[#allocation2 + $0x10] sm:$0xff]  ;;  %v4411_v50 = vpop.f32.mrf.mxu1  ;;  %1585 = vmatmul.bf16.gmra.mxu2 %v4147_v0  ;;  %2218 = vmatmul.bf16.gmra.mxu0 %v4147_v0 }
 0x1cc   : > { %v2324_v10 = vadd.f32 %v2173_v15, %v2043_v3  ;;  %1980 = vst [vmem:[#allocation2 + $0x19] sm:$0x7f] %v1916_v41  ;;  %1802 = vmatmul.bf16.gmra.mxu3 %v4149_v1 }
 0x1ce   : > { %2380 = vst [vmem:[#allocation2 + $0x10] sm:$0xff] %v2324_v10  ;;  %v2435_v58 = vld [vmem:[#allocation2 + $0x9] sm:$0x7f]  ;;  %2611 = vmatmul.bf16.gmra.mxu1 %v4147_v0  ;;  %v1546_v40 = vpop.f32.mrf.mxu2 }
 0x1cf   : > { %v2716_v60 = vadd.f32 %v2564_v16, %v2435_v58  ;;  %v1763_v31 = vpop.f32.mrf.mxu3 }
 0x1d0   : > { %v1764_v11 = vadd.f32 %v1763_v31, %v1546_v40  ;;  %v2183_v15 = vpop.f32.mrf.mxu0  ;;  %v1388_v31 = vld [vmem:[#allocation2 + $0x39] sm:$0x7f] }
 0x1d1   : > { %2772 = vst [vmem:[#allocation2 + $0x9] sm:$0x7f] %v2716_v60 }
 0x1d2   : > { %v1917_v57 = vadd.f32 %v1764_v11, %v1385_v47 }
 0x1d3   : > { %v2044_v45 = vld [vmem:[#allocation2 + $0x18] sm:$0xff]  ;;  %v4417_v49 = vpop.f32.mrf.mxu1 }
 0x1d4   : > { %v2325_v32 = vadd.f32 %v2176_v46, %v2044_v45  ;;  %1981 = vst [vmem:[#allocation2 + $0x21] sm:$0x7f] %v1917_v57 }
 0x1d5   : > { %v2436_v1 = vld [vmem:[#allocation2 + $0x11] sm:$0x7f] }
 0x1d6   : > { %2381 = vst [vmem:[#allocation2 + $0x18] sm:$0xff] %v2325_v32  ;;  %v2717_v48 = vadd.f32 %v2566_v22, %v2436_v1  ;;  %v1548_v33 = vpop.f32.mrf.mxu2 }
 0x1d7   : > { %v1765_v62 = vpop.f32.mrf.mxu3 }
 0x1d8   : > { %v2829_v0 = vld [vmem:[#allocation2 + $0x8] sm:$0xff]  ;;  %2773 = vst [vmem:[#allocation2 + $0x11] sm:$0x7f] %v2717_v48  ;;  %v1766_v16 = vadd.f32 %v1765_v62, %v1548_v33  ;;  %v2186_v5 = vpop.f32.mrf.mxu0 }
 0x1d9   : > { %2893 = vst [vmem:[%s4323_s14 + $0x9] sm:$0xff] %v2829_v0 }
 0x1da   : > { %v1918_v37 = vadd.f32 %v1766_v16, %v1386_v44 }
 0x1db   : > { %v2045_v2 = vld [vmem:[#allocation2 + $0x20] sm:$0xff]  ;;  %v4420_v61 = vpop.f32.mrf.mxu1  ;;  %1590 = vmatmul.bf16.gmra.mxu2 %v4180_v24  ;;  %2223 = vmatmul.bf16.gmra.mxu0 %v4180_v24 }
 0x1dc   : > { %v2326_v52 = vadd.f32 %v2178_v54, %v2045_v2  ;;  %1982 = vst [vmem:[#allocation2 + $0x29] sm:$0x7f] %v1918_v37  ;;  %1807 = vmatmul.bf16.gmra.mxu3 %v4182_v25  ;;  %v1387_v54 = vld [vmem:[#allocation2 + $0x31] sm:$0x7f] }
 0x1dd   : > { %v2437_v22 = vld [vmem:[#allocation2 + $0x19] sm:$0x7f] }
 0x1de   : > { %2382 = vst [vmem:[#allocation2 + $0x20] sm:$0xff] %v2326_v52  ;;  %v2718_v46 = vadd.f32 %v4402_v21, %v2437_v22  ;;  %2616 = vmatmul.bf16.gmra.mxu1 %v4180_v24  ;;  %v1551_v29 = vpop.f32.mrf.mxu2 }
 0x1df   : > { %v2830_v36 = vld [vmem:[#allocation2 + $0x10] sm:$0xff]  ;;  %v1768_v30 = vpop.f32.mrf.mxu3 }
 0x1e0   : > { %2894 = vst [vmem:[%s4323_s14 + $0x11] sm:$0xff] %v2830_v36  ;;  %v1769_v18 = vadd.f32 %v1768_v30, %v1551_v29  ;;  %v2188_v41 = vpop.f32.mrf.mxu0  ;;  %v1390_v36 = vld [vmem:[#allocation2 + $0x49] sm:$0x7f] }
 0x1e1   : > { %2774 = vst [vmem:[#allocation2 + $0x19] sm:$0x7f] %v2718_v46 }
 0x1e2   : > { %v1919_v51 = vadd.f32 %v1769_v18, %v1387_v54 }
 0x1e3   : > { %v2046_v8 = vld [vmem:[#allocation2 + $0x28] sm:$0xff]  ;;  %v2581_v25 = vpop.f32.mrf.mxu1 }
 0x1e4   : > { %v2327_v3 = vadd.f32 %v2181_v17, %v2046_v8  ;;  %1983 = vst [vmem:[#allocation2 + $0x31] sm:$0x7f] %v1919_v51 }
 0x1e5   : > { %v2438_v10 = vld [vmem:[#allocation2 + $0x21] sm:$0x7f] }
 0x1e6   : > { %2383 = vst [vmem:[#allocation2 + $0x28] sm:$0xff] %v2327_v3  ;;  %v2719_v21 = vadd.f32 %v4409_v9, %v2438_v10  ;;  %v1553_v58 = vpop.f32.mrf.mxu2  ;;  %v1391_v3 = vld [vmem:[#allocation2 + $0x51] sm:$0x7f] }
 0x1e7   : > { %v1770_v24 = vpop.f32.mrf.mxu3 }
 0x1e8   : > { %v2831_v60 = vld [vmem:[#allocation2 + $0x18] sm:$0xff]  ;;  %2775 = vst [vmem:[#allocation2 + $0x21] sm:$0x7f] %v2719_v21  ;;  %v1771_v40 = vadd.f32 %v1770_v24, %v1553_v58  ;;  %v2190_v57 = vpop.f32.mrf.mxu0 }
 0x1e9   : > { %2895 = vst [vmem:[%s4323_s14 + $0x19] sm:$0xff] %v2831_v60 }
 0x1ea   : > { %v1920_v11 = vadd.f32 %v1771_v40, %v1388_v31  ;;  %v1392_v31 = vld [vmem:[#allocation2 + $0x59] sm:$0x7f] }
 0x1eb   : > { %v2047_v47 = vld [vmem:[#allocation2 + $0x30] sm:$0xff]  ;;  %v4430_v45 = vpop.f32.mrf.mxu1  ;;  %1595 = vmatmul.bf16.gmra.mxu2 %v4207_v13  ;;  %2227 = vmatmul.bf16.gmra.mxu0 %v4207_v13 }
 0x1ec   : > { %v2328_v32 = vadd.f32 %v2183_v15, %v2047_v47  ;;  %1984 = vst [vmem:[#allocation2 + $0x39] sm:$0x7f] %v1920_v11  ;;  %1812 = vmatmul.bf16.gmra.mxu3 %v4209_v53  ;;  %v1389_v15 = vld [vmem:[#allocation2 + $0x41] sm:$0x7f] }
 0x1ed   : > { %v2439_v9 = vld [vmem:[#allocation2 + $0x29] sm:$0x7f] }
 0x1ee   : > { %2384 = vst [vmem:[#allocation2 + $0x30] sm:$0xff] %v2328_v32  ;;  %v2720_v17 = vadd.f32 %v4411_v50, %v2439_v9  ;;  %2620 = vmatmul.bf16.gmra.mxu1 %v4207_v13  ;;  %v1556_v48 = vpop.f32.mrf.mxu2 }
 0x1ef   : > { %v2832_v1 = vld [vmem:[#allocation2 + $0x20] sm:$0xff]  ;;  %v1773_v33 = vpop.f32.mrf.mxu3 }
 0x1f0   : > { %2896 = vst [vmem:[%s4323_s14 + $0x21] sm:$0xff] %v2832_v1  ;;  %v1774_v62 = vadd.f32 %v1773_v33, %v1556_v48  ;;  %v2192_v44 = vpop.f32.mrf.mxu0 }
 0x1f1   : > { %2776 = vst [vmem:[#allocation2 + $0x29] sm:$0x7f] %v2720_v17 }
 0x1f2   : > { %v1921_v0 = vadd.f32 %v1774_v62, %v1389_v15  ;;  %v1393_v15 = vld [vmem:[#allocation2 + $0x61] sm:$0x7f] }
 0x1f3   : > { %v2048_v16 = vld [vmem:[#allocation2 + $0x38] sm:$0xff]  ;;  %v4438_v53 = vpop.f32.mrf.mxu1 }
 0x1f4   : > { %v2329_v37 = vadd.f32 %v2186_v5, %v2048_v16  ;;  %1985 = vst [vmem:[#allocation2 + $0x41] sm:$0x7f] %v1921_v0 }
 0x1f5   : > { %v2440_v50 = vld [vmem:[#allocation2 + $0x31] sm:$0x7f] }
 0x1f6   : > { %2385 = vst [vmem:[#allocation2 + $0x38] sm:$0xff] %v2329_v37  ;;  %v2721_v13 = vadd.f32 %v4417_v49, %v2440_v50  ;;  %v1558_v2 = vpop.f32.mrf.mxu2 }
 0x1f7   : > { %v1775_v52 = vpop.f32.mrf.mxu3 }
 0x1f8   : > { %v2833_v22 = vld [vmem:[#allocation2 + $0x28] sm:$0xff]  ;;  %2777 = vst [vmem:[#allocation2 + $0x31] sm:$0x7f] %v2721_v13  ;;  %v1776_v46 = vadd.f32 %v1775_v52, %v1558_v2  ;;  %v2195_v18 = vpop.f32.mrf.mxu0 }
 0x1f9   : > { %2897 = vst [vmem:[%s4323_s14 + $0x29] sm:$0xff] %v2833_v22  ;;  %v1394_v22 = vld [vmem:[#allocation2 + $0x69] sm:$0x7f] }
 0x1fa   : > { %v1922_v29 = vadd.f32 %v1776_v46, %v1390_v36 }
 0x1fb   : > { %v2836_v30 = vld [vmem:[#allocation2 + $0x40] sm:$0xff]  ;;  %v4442_v54 = vpop.f32.mrf.mxu1  ;;  %1600 = vmatmul.bf16.gmra.mxu2 %v4240_v63  ;;  %2232 = vmatmul.bf16.gmra.mxu0 %v4240_v63 }
 0x1fc   : > { %2900 = vst [vmem:[%s4323_s14 + $0x49] sm:$0xff] %v2836_v30  ;;  %1817 = vmatmul.bf16.gmra.mxu3 %v4242_v34 }
 0x1fd   : > { %v2441_v5 = vld [vmem:[#allocation2 + $0x39] sm:$0x7f]  ;;  %1986 = vst [vmem:[#allocation2 + $0x49] sm:$0x7f] %v1922_v29 }
 0x1fe   : > { %v2722_v49 = vadd.f32 %v4420_v61, %v2441_v5  ;;  %2625 = vmatmul.bf16.gmra.mxu1 %v4240_v63  ;;  %v1561_v8 = vpop.f32.mrf.mxu2 }
 0x1ff   : > { %v2834_v51 = vld [vmem:[#allocation2 + $0x30] sm:$0xff]  ;;  %v1778_v41 = vpop.f32.mrf.mxu3 }
 0x200   : > { %2898 = vst [vmem:[%s4323_s14 + $0x31] sm:$0xff] %v2834_v51  ;;  %v1779_v25 = vadd.f32 %v1778_v41, %v1561_v8  ;;  %v2197_v21 = vpop.f32.mrf.mxu0 }
 0x201   : > { %2778 = vst [vmem:[#allocation2 + $0x39] sm:$0x7f] %v2722_v49 }
 0x202   : > { %v1923_v10 = vadd.f32 %v1779_v25, %v1391_v3  ;;  %v1395_v25 = vld [vmem:[#allocation2 + $0x71] sm:$0x7f] }
 0x203   : > { %v4451_v58 = vpop.f32.mrf.mxu1 }
 0x204   : > { %v2049_v34 = vld [vmem:[#allocation2 + $0x48] sm:$0xff]  ;;  %1987 = vst [vmem:[#allocation2 + $0x51] sm:$0x7f] %v1923_v10 }
 0x205   : > { %v2330_v24 = vadd.f32 %v2190_v57, %v2049_v34 }
 0x206   : > { %v1563_v61 = vpop.f32.mrf.mxu2 }
 0x207   : > { %2386 = vst [vmem:[#allocation2 + $0x48] sm:$0xff] %v2330_v24  ;;  %v1780_v60 = vpop.f32.mrf.mxu3 }
 0x208   : > { %v2835_v40 = vld [vmem:[#allocation2 + $0x38] sm:$0xff]  ;;  %v1781_v63 = vadd.f32 %v1780_v60, %v1563_v61  ;;  %v2200_v32 = vpop.f32.mrf.mxu0 }
 0x209   : > { %2899 = vst [vmem:[%s4323_s14 + $0x39] sm:$0xff] %v2835_v40 }
 0x20a   : > { %v1924_v11 = vadd.f32 %v1781_v63, %v1392_v31  ;;  %v1396_v63 = vld [vmem:[#allocation2 + $0x79] sm:$0x7f] }
 0x20b   : > { %v2050_v47 = vld [vmem:[#allocation2 + $0x50] sm:$0xff]  ;;  %v4454_v9 = vpop.f32.mrf.mxu1  ;;  %1605 = vmatmul.bf16.gmra.mxu2 %v4267_v23  ;;  %2237 = vmatmul.bf16.gmra.mxu0 %v4267_v23 }
 0x20c   : > { %v2331_v17 = vadd.f32 %v2192_v44, %v2050_v47  ;;  %1988 = vst [vmem:[#allocation2 + $0x59] sm:$0x7f] %v1924_v11  ;;  %1822 = vmatmul.bf16.gmra.mxu3 %v4269_v35 }
 0x20e   : > { %2387 = vst [vmem:[#allocation2 + $0x50] sm:$0xff] %v2331_v17  ;;  %v2442_v57 = vld [vmem:[#allocation2 + $0x49] sm:$0x7f]  ;;  %2630 = vmatmul.bf16.gmra.mxu1 %v4267_v23  ;;  %v1566_v48 = vpop.f32.mrf.mxu2 }
 0x20f   : > { %v2723_v1 = vadd.f32 %v4430_v45, %v2442_v57  ;;  %v1783_v33 = vpop.f32.mrf.mxu3 }
 0x210   : > { %v1784_v62 = vadd.f32 %v1783_v33, %v1566_v48  ;;  %v2202_v44 = vpop.f32.mrf.mxu0 }
 0x211   : > { %2779 = vst [vmem:[#allocation2 + $0x49] sm:$0x7f] %v2723_v1 }
 0x212   : > { %v1925_v0 = vadd.f32 %v1784_v62, %v1393_v15  ;;  %v1397_v15 = vld [vmem:[#allocation2 + $0x81] sm:$0x7f] }
 0x213   : > { %v2051_v16 = vld [vmem:[#allocation2 + $0x58] sm:$0xff]  ;;  %v4461_v37 = vpop.f32.mrf.mxu1 }
 0x214   : > { %v2332_v35 = vadd.f32 %v2195_v18, %v2051_v16  ;;  %1989 = vst [vmem:[#allocation2 + $0x61] sm:$0x7f] %v1925_v0 }
 0x215   : > { %v2443_v50 = vld [vmem:[#allocation2 + $0x51] sm:$0x7f] }
 0x216   : > { %2388 = vst [vmem:[#allocation2 + $0x58] sm:$0xff] %v2332_v35  ;;  %v2724_v13 = vadd.f32 %v4438_v53, %v2443_v50  ;;  %v1568_v23 = vpop.f32.mrf.mxu2 }
 0x217   : > { %v1785_v2 = vpop.f32.mrf.mxu3 }
 0x218   : > { %v2837_v45 = vld [vmem:[#allocation2 + $0x48] sm:$0xff]  ;;  %2780 = vst [vmem:[#allocation2 + $0x51] sm:$0x7f] %v2724_v13  ;;  %v1786_v52 = vadd.f32 %v1785_v2, %v1568_v23  ;;  %v2205_v29 = vpop.f32.mrf.mxu0 }
 0x219   : > { %2901 = vst [vmem:[%s4323_s14 + $0x51] sm:$0xff] %v2837_v45  ;;  %v1398_v45 = vld [vmem:[#allocation2 + $0x89] sm:$0x7f] }
 0x21a   : > { %v1926_v46 = vadd.f32 %v1786_v52, %v1394_v22 }
 0x21b   : > { %v2052_v36 = vld [vmem:[#allocation2 + $0x60] sm:$0xff]  ;;  %v4465_v30 = vpop.f32.mrf.mxu1  ;;  %1610 = vmatmul.bf16.gmra.mxu2 %v4294_v4  ;;  %2242 = vmatmul.bf16.gmra.mxu0 %v4294_v4 }
 0x21c   : > { %v2333_v5 = vadd.f32 %v2197_v21, %v2052_v36  ;;  %1990 = vst [vmem:[#allocation2 + $0x69] sm:$0x7f] %v1926_v46  ;;  %1827 = vmatmul.bf16.gmra.mxu3 %v4296_v14 }
 0x21d   : > { %v2444_v53 = vld [vmem:[#allocation2 + $0x59] sm:$0x7f] }
 0x21e   : > { %2389 = vst [vmem:[#allocation2 + $0x60] sm:$0xff] %v2333_v5  ;;  %v2725_v18 = vadd.f32 %v4442_v54, %v2444_v53  ;;  %2635 = vmatmul.bf16.gmra.mxu1 %v4294_v4  ;;  %v1571_v51 = vpop.f32.mrf.mxu2 }
 0x21f   : > { %v2838_v49 = vld [vmem:[#allocation2 + $0x50] sm:$0xff]  ;;  %v1788_v8 = vpop.f32.mrf.mxu3 }
 0x220   : > { %2902 = vst [vmem:[%s4323_s14 + $0x59] sm:$0xff] %v2838_v49  ;;  %v1789_v41 = vadd.f32 %v1788_v8, %v1571_v51  ;;  %v2207_v21 = vpop.f32.mrf.mxu0  ;;  %v1399_v51 = vld [vmem:[#allocation2 + $0x91] sm:$0x7f] }
 0x221   : > { %2781 = vst [vmem:[#allocation2 + $0x59] sm:$0x7f] %v2725_v18 }
 0x222   : > { %v1927_v3 = vadd.f32 %v1789_v41, %v1395_v25 }
 0x223   : > { %v2053_v10 = vld [vmem:[#allocation2 + $0x68] sm:$0xff]  ;;  %v2600_v14 = vpop.f32.mrf.mxu1 }
 0x224   : > { %v2334_v34 = vadd.f32 %v2200_v32, %v2053_v10  ;;  %1991 = vst [vmem:[#allocation2 + $0x71] sm:$0x7f] %v1927_v3  ;;  %v1400_v14 = vld [vmem:[#allocation2 + $0x99] sm:$0x7f] }
 0x225   : > { %v2445_v24 = vld [vmem:[#allocation2 + $0x61] sm:$0x7f] }
 0x226   : > { %2390 = vst [vmem:[#allocation2 + $0x68] sm:$0xff] %v2334_v34  ;;  %v2726_v54 = vadd.f32 %v4451_v58, %v2445_v24  ;;  %v1573_v61 = vpop.f32.mrf.mxu2 }
 0x227   : > { %v1790_v4 = vpop.f32.mrf.mxu3 }
 0x228   : > { %v2839_v60 = vld [vmem:[#allocation2 + $0x58] sm:$0xff]  ;;  %2782 = vst [vmem:[#allocation2 + $0x61] sm:$0x7f] %v2726_v54  ;;  %v1791_v40 = vadd.f32 %v1790_v4, %v1573_v61  ;;  %v2209_v47 = vpop.f32.mrf.mxu0 }
 0x229   : > { %2903 = vst [vmem:[%s4323_s14 + $0x61] sm:$0xff] %v2839_v60 }
 0x22a   : > { %v1928_v31 = vadd.f32 %v1791_v40, %v1396_v63 }
 0x22b   : > { %v2054_v11 = vld [vmem:[#allocation2 + $0x70] sm:$0xff]  ;;  %v4475_v17 = vpop.f32.mrf.mxu1  ;;  %1615 = vmatmul.bf16.gmra.mxu2 %v3867_v26  ;;  %2246 = vmatmul.bf16.gmra.mxu0 %v3867_v26 }
 0x22c   : > { %v2335_v57 = vadd.f32 %v2202_v44, %v2054_v11  ;;  %1992 = vst [vmem:[#allocation2 + $0x79] sm:$0x7f] %v1928_v31  ;;  %1832 = vmatmul.bf16.gmra.mxu3 %v3869_v27 }
 0x22d   : > { %v2446_v58 = vld [vmem:[#allocation2 + $0x69] sm:$0x7f] }
 0x22e   : > { %2391 = vst [vmem:[#allocation2 + $0x70] sm:$0xff] %v2335_v57  ;;  %v2727_v32 = vadd.f32 %v4454_v9, %v2446_v58  ;;  %2639 = vmatmul.bf16.gmra.mxu1 %v3867_v26  ;;  %v1576_v48 = vpop.f32.mrf.mxu2 }
 0x22f   : > { %v2840_v1 = vld [vmem:[#allocation2 + $0x60] sm:$0xff]  ;;  %v1793_v33 = vpop.f32.mrf.mxu3 }
 0x230   : > { %2904 = vst [vmem:[%s4323_s14 + $0x69] sm:$0xff] %v2840_v1  ;;  %v1794_v62 = vadd.f32 %v1793_v33, %v1576_v48  ;;  %v2211_v44 = vpop.f32.mrf.mxu0 }
 0x231   : > { %2783 = vst [vmem:[#allocation2 + $0x69] sm:$0x7f] %v2727_v32 }
 0x232   : > { %v1929_v0 = vadd.f32 %v1794_v62, %v1397_v15 }
 0x233   : > { %v2055_v16 = vld [vmem:[#allocation2 + $0x78] sm:$0xff]  ;;  %v4483_v27 = vpop.f32.mrf.mxu1 }
 0x234   : > { %v2336_v35 = vadd.f32 %v2205_v29, %v2055_v16  ;;  %1993 = vst [vmem:[#allocation2 + $0x81] sm:$0x7f] %v1929_v0  ;;  %v1402_v0 = vld [vmem:[#allocation2 + $0xa9] sm:$0x7f] }
 0x235   : > { %v2447_v9 = vld [vmem:[#allocation2 + $0x71] sm:$0x7f] }
 0x236   : > { %2392 = vst [vmem:[#allocation2 + $0x78] sm:$0xff] %v2336_v35  ;;  %v2728_v26 = vadd.f32 %v4461_v37, %v2447_v9  ;;  %v1578_v50 = vpop.f32.mrf.mxu2 }
 0x237   : > { %v1795_v13 = vpop.f32.mrf.mxu3 }
 0x238   : > { %v2841_v23 = vld [vmem:[#allocation2 + $0x68] sm:$0xff]  ;;  %2784 = vst [vmem:[#allocation2 + $0x71] sm:$0x7f] %v2728_v26  ;;  %v1796_v2 = vadd.f32 %v1795_v13, %v1578_v50  ;;  %v2214_v46 = vpop.f32.mrf.mxu0 }
 0x239   : > { %2905 = vst [vmem:[%s4323_s14 + $0x71] sm:$0xff] %v2841_v23 }
 0x23a   : > { %v1930_v52 = vadd.f32 %v1796_v2, %v1398_v45 }
 0x23b   : > { %v2844_v22 = vld [vmem:[#allocation2 + $0x80] sm:$0xff]  ;;  %v4487_v36 = vpop.f32.mrf.mxu1  ;;  %1620 = vmatmul.bf16.gmra.mxu2 %v3899_v42  ;;  %2251 = vmatmul.bf16.gmra.mxu0 %v3899_v42 }
 0x23c   : > { %2908 = vst [vmem:[%s4323_s14 + $0x91] sm:$0xff] %v2844_v22  ;;  %1837 = vmatmul.bf16.gmra.mxu3 %v3901_v43 }
 0x23d   : > { %v2448_v29 = vld [vmem:[#allocation2 + $0x79] sm:$0x7f]  ;;  %1994 = vst [vmem:[#allocation2 + $0x89] sm:$0x7f] %v1930_v52  ;;  %v1403_v52 = vld [vmem:[#allocation2 + $0xb1] sm:$0x7f] }
 0x23e   : > { %v2729_v37 = vadd.f32 %v4465_v30, %v2448_v29  ;;  %2644 = vmatmul.bf16.gmra.mxu1 %v3899_v42  ;;  %v1581_v53 = vpop.f32.mrf.mxu2 }
 0x23f   : > { %v2842_v5 = vld [vmem:[#allocation2 + $0x70] sm:$0xff]  ;;  %v1798_v18 = vpop.f32.mrf.mxu3 }
 0x240   : > { %2906 = vst [vmem:[%s4323_s14 + $0x79] sm:$0xff] %v2842_v5  ;;  %v1799_v49 = vadd.f32 %v1798_v18, %v1581_v53  ;;  %v2216_v41 = vpop.f32.mrf.mxu0 }
 0x241   : > { %2785 = vst [vmem:[#allocation2 + $0x79] sm:$0x7f] %v2729_v37 }
 0x242   : > { %v1931_v8 = vadd.f32 %v1799_v49, %v1399_v51  ;;  %v1404_v51 = vld [vmem:[#allocation2 + $0xb9] sm:$0x7f] }
 0x243   : > { %v4496_v25 = vpop.f32.mrf.mxu1 }
 0x244   : > { %v2056_v43 = vld [vmem:[#allocation2 + $0x88] sm:$0xff]  ;;  %1995 = vst [vmem:[#allocation2 + $0x91] sm:$0x7f] %v1931_v8 }
 0x245   : > { %v2337_v3 = vadd.f32 %v2209_v47, %v2056_v43  ;;  %v1401_v47 = vld [vmem:[#allocation2 + $0xa1] sm:$0x7f] }
 0x246   : > { %v1583_v30 = vpop.f32.mrf.mxu2 }
 0x247   : > { %2393 = vst [vmem:[#allocation2 + $0x88] sm:$0xff] %v2337_v3  ;;  %v1800_v10 = vpop.f32.mrf.mxu3 }
 0x248   : > { %v2843_v21 = vld [vmem:[#allocation2 + $0x78] sm:$0xff]  ;;  %v1801_v42 = vadd.f32 %v1800_v10, %v1583_v30  ;;  %v2219_v54 = vpop.f32.mrf.mxu0 }
 0x249   : > { %2907 = vst [vmem:[%s4323_s14 + $0x81] sm:$0xff] %v2843_v21 }
 0x24a   : > { %v1932_v34 = vadd.f32 %v1801_v42, %v1400_v14 }
 0x24b   : > { %v2057_v24 = vld [vmem:[#allocation2 + $0x90] sm:$0xff]  ;;  %v4499_v61 = vpop.f32.mrf.mxu1  ;;  %1625 = vmatmul.bf16.gmra.mxu2 %v3922_v55  ;;  %2256 = vmatmul.bf16.gmra.mxu0 %v3922_v55 }
 0x24c   : > { %v2338_v4 = vadd.f32 %v2211_v44, %v2057_v24  ;;  %1996 = vst [vmem:[#allocation2 + $0x99] sm:$0x7f] %v1932_v34  ;;  %1842 = vmatmul.bf16.gmra.mxu3 %v3924_v56  ;;  %v1405_v24 = vld [vmem:[#allocation2 + $0xc1] sm:$0x7f] }
 0x24e   : > { %2394 = vst [vmem:[#allocation2 + $0x90] sm:$0xff] %v2338_v4  ;;  %v2449_v60 = vld [vmem:[#allocation2 + $0x89] sm:$0x7f]  ;;  %2649 = vmatmul.bf16.gmra.mxu1 %v3922_v55  ;;  %v1586_v63 = vpop.f32.mrf.mxu2 }
 0x24f   : > { %v2730_v40 = vadd.f32 %v4475_v17, %v2449_v60  ;;  %v1803_v31 = vpop.f32.mrf.mxu3 }
 0x250   : > { %v1804_v11 = vadd.f32 %v1803_v31, %v1586_v63  ;;  %v2221_v32 = vpop.f32.mrf.mxu0 }
 0x251   : > { %2786 = vst [vmem:[#allocation2 + $0x89] sm:$0x7f] %v2730_v40 }
 0x252   : > { %v1933_v57 = vadd.f32 %v1804_v11, %v1401_v47 }
 0x253   : > { %v2058_v58 = vld [vmem:[#allocation2 + $0x98] sm:$0xff]  ;;  %v4506_v1 = vpop.f32.mrf.mxu1 }
 0x254   : > { %v2339_v56 = vadd.f32 %v2214_v46, %v2058_v58  ;;  %1997 = vst [vmem:[#allocation2 + $0xa1] sm:$0x7f] %v1933_v57  ;;  %v1406_v57 = vld [vmem:[#allocation2 + $0xc9] sm:$0x7f] }
 0x255   : > { %v2450_v48 = vld [vmem:[#allocation2 + $0x91] sm:$0x7f] }
 0x256   : > { %2395 = vst [vmem:[#allocation2 + $0x98] sm:$0xff] %v2339_v56  ;;  %v2731_v33 = vadd.f32 %v4483_v27, %v2450_v48  ;;  %v1588_v55 = vpop.f32.mrf.mxu2 }
 0x257   : > { %v1805_v62 = vpop.f32.mrf.mxu3 }
 0x258   : > { %v2845_v17 = vld [vmem:[#allocation2 + $0x88] sm:$0xff]  ;;  %2787 = vst [vmem:[#allocation2 + $0x91] sm:$0x7f] %v2731_v33  ;;  %v1806_v15 = vadd.f32 %v1805_v62, %v1588_v55  ;;  %v2224_v35 = vpop.f32.mrf.mxu0 }
 0x259   : > { %2909 = vst [vmem:[%s4323_s14 + $0x99] sm:$0xff] %v2845_v17 }
 0x25a   : > { %v1934_v16 = vadd.f32 %v1806_v15, %v1402_v0  ;;  %v1407_v0 = vld [vmem:[#allocation2 + $0xd1] sm:$0x7f] }
 0x25b   : > { %v2059_v44 = vld [vmem:[#allocation2 + $0xa0] sm:$0xff]  ;;  %v4510_v9 = vpop.f32.mrf.mxu1  ;;  %1630 = vmatmul.bf16.gmra.mxu2 %v3951_v6  ;;  %2261 = vmatmul.bf16.gmra.mxu0 %v3951_v6 }
 0x25c   : > { %v2340_v26 = vadd.f32 %v2216_v41, %v2059_v44  ;;  %1998 = vst [vmem:[#allocation2 + $0xa9] sm:$0x7f] %v1934_v16  ;;  %1847 = vmatmul.bf16.gmra.mxu3 %v3953_v7 }
 0x25d   : > { %v2451_v27 = vld [vmem:[#allocation2 + $0x99] sm:$0x7f] }
 0x25e   : > { %2396 = vst [vmem:[#allocation2 + $0xa0] sm:$0xff] %v2340_v26  ;;  %v2732_v50 = vadd.f32 %v4487_v36, %v2451_v27  ;;  %2654 = vmatmul.bf16.gmra.mxu1 %v3951_v6  ;;  %v1591_v23 = vpop.f32.mrf.mxu2 }
 0x25f   : > { %v2846_v13 = vld [vmem:[#allocation2 + $0x90] sm:$0xff]  ;;  %v1808_v2 = vpop.f32.mrf.mxu3 }
 0x260   : > { %2910 = vst [vmem:[%s4323_s14 + $0xa1] sm:$0xff] %v2846_v13  ;;  %v1809_v45 = vadd.f32 %v1808_v2, %v1591_v23  ;;  %v2226_v29 = vpop.f32.mrf.mxu0  ;;  %v1408_v13 = vld [vmem:[#allocation2 + $0xd9] sm:$0x7f] }
 0x261   : > { %2788 = vst [vmem:[#allocation2 + $0x99] sm:$0x7f] %v2732_v50 }
 0x262   : > { %v1935_v22 = vadd.f32 %v1809_v45, %v1403_v52 }
 0x263   : > { %v2060_v46 = vld [vmem:[#allocation2 + $0xa8] sm:$0xff]  ;;  %v2619_v7 = vpop.f32.mrf.mxu1 }
 0x264   : > { %v2341_v37 = vadd.f32 %v2219_v54, %v2060_v46  ;;  %1999 = vst [vmem:[#allocation2 + $0xb1] sm:$0x7f] %v1935_v22  ;;  %v4765_v46 = vld [vmem:[#allocation3_spill] sm:$0xff] }
 0x265   : > { %v2452_v5 = vld [vmem:[#allocation2 + $0xa1] sm:$0x7f] }
 0x266   : > { %2397 = vst [vmem:[#allocation2 + $0xa8] sm:$0xff] %v2341_v37  ;;  %v2733_v36 = vadd.f32 %v4496_v25, %v2452_v5  ;;  %v1593_v53 = vpop.f32.mrf.mxu2 }
 0x267   : > { %v1810_v6 = vpop.f32.mrf.mxu3 }
 0x268   : > { %v2847_v18 = vld [vmem:[#allocation2 + $0x98] sm:$0xff]  ;;  %2789 = vst [vmem:[#allocation2 + $0xa1] sm:$0x7f] %v2733_v36  ;;  %v1811_v49 = vadd.f32 %v1810_v6, %v1593_v53  ;;  %v2228_v43 = vpop.f32.mrf.mxu0  ;;  %v1409_v53 = vld [vmem:[#allocation2 + $0xe1] sm:$0x7f] }
 0x269   : > { %2911 = vst [vmem:[%s4323_s14 + $0xa9] sm:$0xff] %v2847_v18 }
 0x26a   : > { %v1936_v8 = vadd.f32 %v1811_v49, %v1404_v51 }
 0x26b   : > { %v2061_v41 = vld [vmem:[#allocation2 + $0xb0] sm:$0xff]  ;;  %v4520_v3 = vpop.f32.mrf.mxu1  ;;  %1635 = vmatmul.bf16.gmra.mxu2 %v3974_v19  ;;  %2265 = vmatmul.bf16.gmra.mxu0 %v3974_v19 }
 0x26c   : > { %v2342_v30 = vadd.f32 %v2221_v32, %v2061_v41  ;;  %2000 = vst [vmem:[#allocation2 + $0xb9] sm:$0x7f] %v1936_v8  ;;  %1852 = vmatmul.bf16.gmra.mxu3 %v3976_v20 }
 0x26d   : > { %v2453_v25 = vld [vmem:[#allocation2 + $0xa9] sm:$0x7f] }
 0x26e   : > { %2398 = vst [vmem:[#allocation2 + $0xb0] sm:$0xff] %v2342_v30  ;;  %v2734_v10 = vadd.f32 %v4499_v61, %v2453_v25  ;;  %2658 = vmatmul.bf16.gmra.mxu1 %v3974_v19  ;;  %v1596_v42 = vpop.f32.mrf.mxu2 }
 0x26f   : > { %v2848_v21 = vld [vmem:[#allocation2 + $0xa0] sm:$0xff]  ;;  %v1813_v14 = vpop.f32.mrf.mxu3 }
 0x270   : > { %2912 = vst [vmem:[%s4323_s14 + $0xb1] sm:$0xff] %v2848_v21  ;;  %v1814_v34 = vadd.f32 %v1813_v14, %v1596_v42  ;;  %v2230_v60 = vpop.f32.mrf.mxu0 }
 0x271   : > { %2790 = vst [vmem:[#allocation2 + $0xa9] sm:$0x7f] %v2734_v10  ;;  %v1410_v10 = vld [vmem:[#allocation2 + $0xe9] sm:$0x7f] }
 0x272   : > { %v1937_v54 = vadd.f32 %v1814_v34, %v1405_v24 }
 0x273   : > { %v2062_v4 = vld [vmem:[#allocation2 + $0xb8] sm:$0xff]  ;;  %v4528_v20 = vpop.f32.mrf.mxu1 }
 0x274   : > { %v2343_v40 = vadd.f32 %v2224_v35, %v2062_v4  ;;  %2001 = vst [vmem:[#allocation2 + $0xc1] sm:$0x7f] %v1937_v54  ;;  %v4766_v54 = vld [vmem:[#allocation4_spill] sm:$0xff]  ;;  %v4767_v4 = vld [vmem:[#allocation5_spill] sm:$0xff] }
 0x275   : > { %v2454_v61 = vld [vmem:[#allocation2 + $0xb1] sm:$0x7f] }
 0x276   : > { %2399 = vst [vmem:[#allocation2 + $0xb8] sm:$0xff] %v2343_v40  ;;  %v2735_v19 = vadd.f32 %v4506_v1, %v2454_v61  ;;  %v1598_v63 = vpop.f32.mrf.mxu2 }
 0x277   : > { %v1815_v31 = vpop.f32.mrf.mxu3 }
 0x278   : > { %v2849_v11 = vld [vmem:[#allocation2 + $0xa8] sm:$0xff]  ;;  %2791 = vst [vmem:[#allocation2 + $0xb1] sm:$0x7f] %v2735_v19  ;;  %v1816_v47 = vadd.f32 %v1815_v31, %v1598_v63  ;;  %v2233_v56 = vpop.f32.mrf.mxu0  ;;  %v1411_v31 = vld [vmem:[#allocation2 + $0xf1] sm:$0x7f] }
 0x279   : > { %2913 = vst [vmem:[%s4323_s14 + $0xb9] sm:$0xff] %v2849_v11 }
 0x27a   : > { %v1938_v58 = vadd.f32 %v1816_v47, %v1406_v57 }
 0x27b   : > { %v2852_v32 = vld [vmem:[#allocation2 + $0xc0] sm:$0xff]  ;;  %v4532_v48 = vpop.f32.mrf.mxu1  ;;  %1640 = vmatmul.bf16.gmra.mxu2 %v4003_v38  ;;  %2270 = vmatmul.bf16.gmra.mxu0 %v4003_v38 }
 0x27c   : > { %2916 = vst [vmem:[%s4323_s14 + $0xd9] sm:$0xff] %v2852_v32  ;;  %1857 = vmatmul.bf16.gmra.mxu3 %v4005_v39 }
 0x27d   : > { %v2455_v33 = vld [vmem:[#allocation2 + $0xb9] sm:$0x7f]  ;;  %2002 = vst [vmem:[#allocation2 + $0xc9] sm:$0x7f] %v1938_v58 }
 0x27e   : > { %v2736_v1 = vadd.f32 %v4510_v9, %v2455_v33  ;;  %2663 = vmatmul.bf16.gmra.mxu1 %v4003_v38  ;;  %v1601_v62 = vpop.f32.mrf.mxu2 }
 0x27f   : > { %v2850_v55 = vld [vmem:[#allocation2 + $0xb0] sm:$0xff]  ;;  %v1818_v17 = vpop.f32.mrf.mxu3 }
 0x280   : > { %2914 = vst [vmem:[%s4323_s14 + $0xc1] sm:$0xff] %v2850_v55  ;;  %v1819_v15 = vadd.f32 %v1818_v17, %v1601_v62  ;;  %v2235_v44 = vpop.f32.mrf.mxu0  ;;  %v1412_v17 = vld [vmem:[#allocation2 + $0xf9] sm:$0x7f] }
 0x281   : > { %2792 = vst [vmem:[#allocation2 + $0xb9] sm:$0x7f] %v2736_v1 }
 0x282   : > { %v1939_v16 = vadd.f32 %v1819_v15, %v1407_v0 }
 0x283   : > { %v4541_v35 = vpop.f32.mrf.mxu1 }
 0x284   : > { %v2063_v39 = vld [vmem:[#allocation2 + $0xc8] sm:$0xff]  ;;  %2003 = vst [vmem:[#allocation2 + $0xd1] sm:$0x7f] %v1939_v16 }
 0x285   : > { %v2344_v26 = vadd.f32 %v2228_v43, %v2063_v39 }
 0x286   : > { %v1603_v9 = vpop.f32.mrf.mxu2 }
 0x287   : > { %2400 = vst [vmem:[#allocation2 + $0xc8] sm:$0xff] %v2344_v26  ;;  %v1820_v27 = vpop.f32.mrf.mxu3  ;;  %v4768_v26 = vld [vmem:[#allocation6_spill] sm:$0xff] }
 0x288   : > { %v2851_v50 = vld [vmem:[#allocation2 + $0xb8] sm:$0xff]  ;;  %v1821_v38 = vadd.f32 %v1820_v27, %v1603_v9  ;;  %v2238_v45 = vpop.f32.mrf.mxu0  ;;  %v4769_v9 = vld [vmem:[#allocation7_spill] sm:$0xff] }
 0x289   : > { %2915 = vst [vmem:[%s4323_s14 + $0xc9] sm:$0xff] %v2851_v50 }
 0x28a   : > { %v1940_v23 = vadd.f32 %v1821_v38, %v1408_v13 }
 0x28b   : > { %v2064_v2 = vld [vmem:[#allocation2 + $0xd0] sm:$0xff]  ;;  %v4544_v52 = vpop.f32.mrf.mxu1  ;;  %1645 = vmatmul.bf16.gmra.mxu2 %v4026_v59  ;;  %2275 = vmatmul.bf16.gmra.mxu0 %v4026_v59 }
 0x28c   : > { %v2345_v22 = vadd.f32 %v2230_v60, %v2064_v2  ;;  %2004 = vst [vmem:[#allocation2 + $0xd9] sm:$0x7f] %v1940_v23  ;;  %1862 = vmatmul.bf16.gmra.mxu3 %v4765_v46  ;;  %v1413_v2 = vld [vmem:[#allocation2 + $0x101] sm:$0x7f] }
 0x28e   : > { %2401 = vst [vmem:[#allocation2 + $0xd0] sm:$0xff] %v2345_v22  ;;  %v2456_v29 = vld [vmem:[#allocation2 + $0xc9] sm:$0x7f]  ;;  %2668 = vmatmul.bf16.gmra.mxu1 %v4026_v59  ;;  %v1606_v37 = vpop.f32.mrf.mxu2 }
 0x28f   : > { %v2737_v7 = vadd.f32 %v4520_v3, %v2456_v29  ;;  %v1823_v5 = vpop.f32.mrf.mxu3 }
 0x290   : > { %v1824_v36 = vadd.f32 %v1823_v5, %v1606_v37  ;;  %v2240_v49 = vpop.f32.mrf.mxu0 }
 0x291   : > { %2793 = vst [vmem:[#allocation2 + $0xc9] sm:$0x7f] %v2737_v7 }
 0x292   : > { %v1941_v6 = vadd.f32 %v1824_v36, %v1409_v53 }
 0x293   : > { %v2065_v18 = vld [vmem:[#allocation2 + $0xd8] sm:$0xff]  ;;  %v4551_v51 = vpop.f32.mrf.mxu1 }
 0x294   : > { %v2346_v8 = vadd.f32 %v2233_v56, %v2065_v18  ;;  %2005 = vst [vmem:[#allocation2 + $0xe1] sm:$0x7f] %v1941_v6  ;;  %v1414_v18 = vld [vmem:[#allocation2 + $0x109] sm:$0x7f] }
 0x295   : > { %v2457_v41 = vld [vmem:[#allocation2 + $0xd1] sm:$0x7f] }
 0x296   : > { %2402 = vst [vmem:[#allocation2 + $0xd8] sm:$0xff] %v2346_v8  ;;  %v2738_v43 = vadd.f32 %v4528_v20, %v2457_v41  ;;  %v1608_v59 = vpop.f32.mrf.mxu2 }
 0x297   : > { %v1825_v30 = vpop.f32.mrf.mxu3 }
 0x298   : > { %v2853_v3 = vld [vmem:[#allocation2 + $0xc8] sm:$0xff]  ;;  %2794 = vst [vmem:[#allocation2 + $0xd1] sm:$0x7f] %v2738_v43  ;;  %v1826_v25 = vadd.f32 %v1825_v30, %v1608_v59  ;;  %v2243_v14 = vpop.f32.mrf.mxu0  ;;  %v4771_v30 = vld [vmem:[#allocation9_spill] sm:$0xff] }
 0x299   : > { %2917 = vst [vmem:[%s4323_s14 + $0xe1] sm:$0xff] %v2853_v3  ;;  %v4770_v59 = vld [vmem:[#allocation8_spill] sm:$0xff] }
 0x29a   : > { %v1942_v21 = vadd.f32 %v1826_v25, %v1410_v10 }
 0x29b   : > { %v2066_v42 = vld [vmem:[#allocation2 + $0xe0] sm:$0xff]  ;;  %v4555_v34 = vpop.f32.mrf.mxu1  ;;  %1650 = vmatmul.bf16.gmra.mxu2 %v4766_v54  ;;  %2280 = vmatmul.bf16.gmra.mxu0 %v4766_v54 }
 0x29c   : > { %v2347_v24 = vadd.f32 %v2235_v44, %v2066_v42  ;;  %2006 = vst [vmem:[#allocation2 + $0xe9] sm:$0x7f] %v1942_v21  ;;  %1867 = vmatmul.bf16.gmra.mxu3 %v4767_v4 }
 0x29d   : > { %v2458_v60 = vld [vmem:[#allocation2 + $0xd9] sm:$0x7f] }
 0x29e   : > { %2403 = vst [vmem:[#allocation2 + $0xe0] sm:$0xff] %v2347_v24  ;;  %v2739_v20 = vadd.f32 %v4532_v48, %v2458_v60  ;;  %2673 = vmatmul.bf16.gmra.mxu1 %v4766_v54  ;;  %v1611_v61 = vpop.f32.mrf.mxu2 }
 0x29f   : > { %v2854_v40 = vld [vmem:[#allocation2 + $0xd0] sm:$0xff]  ;;  %v1828_v19 = vpop.f32.mrf.mxu3 }
 0x2a0   : > { %2918 = vst [vmem:[%s4323_s14 + $0xe9] sm:$0xff] %v2854_v40  ;;  %v1829_v63 = vadd.f32 %v1828_v19, %v1611_v61  ;;  %v2245_v57 = vpop.f32.mrf.mxu0 }
 0x2a1   : > { %2795 = vst [vmem:[#allocation2 + $0xd9] sm:$0x7f] %v2739_v20 }
 0x2a2   : > { %v1943_v11 = vadd.f32 %v1829_v63, %v1411_v31  ;;  %v1416_v63 = vld [vmem:[#allocation2 + $0x119] sm:$0x7f] }
 0x2a3   : > { %v2067_v47 = vld [vmem:[#allocation2 + $0xe8] sm:$0xff]  ;;  %v2638_v58 = vpop.f32.mrf.mxu1 }
 0x2a4   : > { %v2348_v32 = vadd.f32 %v2238_v45, %v2067_v47  ;;  %2007 = vst [vmem:[#allocation2 + $0xf1] sm:$0x7f] %v1943_v11 }
 0x2a5   : > { %v2459_v56 = vld [vmem:[#allocation2 + $0xe1] sm:$0x7f] }
 0x2a6   : > { %2404 = vst [vmem:[#allocation2 + $0xe8] sm:$0xff] %v2348_v32  ;;  %v2740_v48 = vadd.f32 %v4541_v35, %v2459_v56  ;;  %v1613_v33 = vpop.f32.mrf.mxu2  ;;  %v4772_v32 = vld [vmem:[#allocation10_spill] sm:$0xff]  ;;  %v4773_v56 = vld [vmem:[#allocation11_spill] sm:$0xff] }
 0x2a7   : > { %v1830_v1 = vpop.f32.mrf.mxu3 }
 0x2a8   : > { %v2855_v55 = vld [vmem:[#allocation2 + $0xd8] sm:$0xff]  ;;  %2796 = vst [vmem:[#allocation2 + $0xe1] sm:$0x7f] %v2740_v48  ;;  %v1831_v62 = vadd.f32 %v1830_v1, %v1613_v33  ;;  %v2247_v16 = vpop.f32.mrf.mxu0 }
 0x2a9   : > { %2919 = vst [vmem:[%s4323_s14 + $0xf1] sm:$0xff] %v2855_v55 }
 0x2aa   : > { %v1944_v15 = vadd.f32 %v1831_v62, %v1412_v17  ;;  %v1417_v17 = vld [vmem:[#allocation2 + $0x121] sm:$0x7f] }
 0x2ab   : > { %v2068_v0 = vld [vmem:[#allocation2 + $0xf0] sm:$0xff]  ;;  %v4565_v44 = vpop.f32.mrf.mxu1  ;;  %1655 = vmatmul.bf16.gmra.mxu2 %v4768_v26  ;;  %2284 = vmatmul.bf16.gmra.mxu0 %v4768_v26 }
 0x2ac   : > { %v2349_v39 = vadd.f32 %v2240_v49, %v2068_v0  ;;  %2008 = vst [vmem:[#allocation2 + $0xf9] sm:$0x7f] %v1944_v15  ;;  %1872 = vmatmul.bf16.gmra.mxu3 %v4769_v9 }
 0x2ad   : > { %v2460_v35 = vld [vmem:[#allocation2 + $0xe9] sm:$0x7f] }
 0x2ae   : > { %2405 = vst [vmem:[#allocation2 + $0xf0] sm:$0xff] %v2349_v39  ;;  %v2741_v27 = vadd.f32 %v4544_v52, %v2460_v35  ;;  %2677 = vmatmul.bf16.gmra.mxu1 %v4768_v26  ;;  %v1616_v38 = vpop.f32.mrf.mxu2 }
 0x2af   : > { %v2856_v50 = vld [vmem:[#allocation2 + $0xe0] sm:$0xff]  ;;  %v1833_v13 = vpop.f32.mrf.mxu3 }
 0x2b0   : > { %2920 = vst [vmem:[%s4323_s14 + $0xf9] sm:$0xff] %v2856_v50  ;;  %v1834_v23 = vadd.f32 %v1833_v13, %v1616_v38  ;;  %v2249_v46 = vpop.f32.mrf.mxu0  ;;  %v1418_v13 = vld [vmem:[#allocation2 + $0x129] sm:$0x7f] }
 0x2b1   : > { %2797 = vst [vmem:[#allocation2 + $0xe9] sm:$0x7f] %v2741_v27 }
 0x2b2   : > { %v1945_v45 = vadd.f32 %v1834_v23, %v1413_v2 }
 0x2b3   : > { %v2069_v22 = vld [vmem:[#allocation2 + $0xf8] sm:$0xff]  ;;  %v4573_v29 = vpop.f32.mrf.mxu1 }
 0x2b4   : > { %v2350_v7 = vadd.f32 %v2243_v14, %v2069_v22  ;;  %2009 = vst [vmem:[#allocation2 + $0x101] sm:$0x7f] %v1945_v45  ;;  %v1415_v14 = vld [vmem:[#allocation2 + $0x111] sm:$0x7f] }
 0x2b5   : > { %v2461_v52 = vld [vmem:[#allocation2 + $0xf1] sm:$0x7f] }
 0x2b6   : > { %2406 = vst [vmem:[#allocation2 + $0xf8] sm:$0xff] %v2350_v7  ;;  %v2742_v37 = vadd.f32 %v4551_v51, %v2461_v52  ;;  %v1618_v5 = vpop.f32.mrf.mxu2  ;;  %v4774_v7 = vld [vmem:[#allocation12_spill] sm:$0xff]  ;;  %v4775_v52 = vld [vmem:[#allocation13_spill] sm:$0xff] }
 0x2b7   : > { %v1835_v36 = vpop.f32.mrf.mxu3 }
 0x2b8   : > { %v2857_v53 = vld [vmem:[#allocation2 + $0xe8] sm:$0xff]  ;;  %2798 = vst [vmem:[#allocation2 + $0xf1] sm:$0x7f] %v2742_v37  ;;  %v1836_v6 = vadd.f32 %v1835_v36, %v1618_v5  ;;  %v2252_v41 = vpop.f32.mrf.mxu0 }
 0x2b9   : > { %2921 = vst [vmem:[%s4323_s14 + $0x101] sm:$0xff] %v2857_v53 }
 0x2ba   : > { %v1946_v49 = vadd.f32 %v1836_v6, %v1414_v18  ;;  %v1419_v18 = vld [vmem:[#allocation2 + $0x131] sm:$0x7f] }
 0x2bb   : > { %v2860_v8 = vld [vmem:[#allocation2 + $0x100] sm:$0xff]  ;;  %v4577_v43 = vpop.f32.mrf.mxu1  ;;  %1660 = vmatmul.bf16.gmra.mxu2 %v4770_v59  ;;  %2289 = vmatmul.bf16.gmra.mxu0 %v4770_v59 }
 0x2bc   : > { %2924 = vst [vmem:[%s4323_s14 + $0x121] sm:$0xff] %v2860_v8  ;;  %1877 = vmatmul.bf16.gmra.mxu3 %v4771_v30 }
 0x2bd   : > { %v2462_v3 = vld [vmem:[#allocation2 + $0xf9] sm:$0x7f]  ;;  %2010 = vst [vmem:[#allocation2 + $0x109] sm:$0x7f] %v1946_v49 }
 0x2be   : > { %v2743_v51 = vadd.f32 %v4555_v34, %v2462_v3  ;;  %2682 = vmatmul.bf16.gmra.mxu1 %v4770_v59  ;;  %v1621_v10 = vpop.f32.mrf.mxu2 }
 0x2bf   : > { %v2858_v25 = vld [vmem:[#allocation2 + $0xf0] sm:$0xff]  ;;  %v1838_v21 = vpop.f32.mrf.mxu3 }
 0x2c0   : > { %2922 = vst [vmem:[%s4323_s14 + $0x109] sm:$0xff] %v2858_v25  ;;  %v1839_v42 = vadd.f32 %v1838_v21, %v1621_v10  ;;  %v2254_v54 = vpop.f32.mrf.mxu0 }
 0x2c1   : > { %2799 = vst [vmem:[#allocation2 + $0xf9] sm:$0x7f] %v2743_v51 }
 0x2c2   : > { %v1947_v24 = vadd.f32 %v1839_v42, %v1415_v14  ;;  %v1420_v42 = vld [vmem:[#allocation2 + $0x139] sm:$0x7f] }
 0x2c3   : > { %v4586_v4 = vpop.f32.mrf.mxu1 }
 0x2c4   : > { %v2070_v60 = vld [vmem:[#allocation2 + $0x108] sm:$0xff]  ;;  %2011 = vst [vmem:[#allocation2 + $0x111] sm:$0x7f] %v1947_v24 }
 0x2c5   : > { %v2351_v20 = vadd.f32 %v2247_v16, %v2070_v60 }
 0x2c6   : > { %v1623_v34 = vpop.f32.mrf.mxu2 }
 0x2c7   : > { %2407 = vst [vmem:[#allocation2 + $0x108] sm:$0xff] %v2351_v20  ;;  %v1840_v40 = vpop.f32.mrf.mxu3 }
 0x2c8   : > { %v2859_v61 = vld [vmem:[#allocation2 + $0xf8] sm:$0xff]  ;;  %v1841_v19 = vadd.f32 %v1840_v40, %v1623_v34  ;;  %v2257_v47 = vpop.f32.mrf.mxu0  ;;  %v4777_v40 = vld [vmem:[#allocation15_spill] sm:$0xff] }
 0x2c9   : > { %2923 = vst [vmem:[%s4323_s14 + $0x111] sm:$0xff] %v2859_v61  ;;  %v4776_v34 = vld [vmem:[#allocation14_spill] sm:$0xff] }
 0x2ca   : > { %v1948_v31 = vadd.f32 %v1841_v19, %v1416_v63 }
 0x2cb   : > { %v2071_v11 = vld [vmem:[#allocation2 + $0x110] sm:$0xff]  ;;  %v4589_v57 = vpop.f32.mrf.mxu1  ;;  %1665 = vmatmul.bf16.gmra.mxu2 %v4772_v32  ;;  %2294 = vmatmul.bf16.gmra.mxu0 %v4772_v32 }
 0x2cc   : > { %v2352_v58 = vadd.f32 %v2249_v46, %v2071_v11  ;;  %2012 = vst [vmem:[#allocation2 + $0x119] sm:$0x7f] %v1948_v31  ;;  %1882 = vmatmul.bf16.gmra.mxu3 %v4773_v56 }
 0x2ce   : > { %2408 = vst [vmem:[#allocation2 + $0x110] sm:$0xff] %v2352_v58  ;;  %v2463_v48 = vld [vmem:[#allocation2 + $0x109] sm:$0x7f]  ;;  %2687 = vmatmul.bf16.gmra.mxu1 %v4772_v32  ;;  %v1626_v1 = vpop.f32.mrf.mxu2 }
 0x2cf   : > { %v2744_v33 = vadd.f32 %v4565_v44, %v2463_v48  ;;  %v1843_v55 = vpop.f32.mrf.mxu3 }
 0x2d0   : > { %v1844_v62 = vadd.f32 %v1843_v55, %v1626_v1  ;;  %v2259_v16 = vpop.f32.mrf.mxu0 }
 0x2d1   : > { %2800 = vst [vmem:[#allocation2 + $0x109] sm:$0x7f] %v2744_v33 }
 0x2d2   : > { %v1949_v15 = vadd.f32 %v1844_v62, %v1417_v17 }
 0x2d3   : > { %v2072_v0 = vld [vmem:[#allocation2 + $0x118] sm:$0xff]  ;;  %v4596_v39 = vpop.f32.mrf.mxu1 }
 0x2d4   : > { %v2353_v26 = vadd.f32 %v2252_v41, %v2072_v0  ;;  %2013 = vst [vmem:[#allocation2 + $0x121] sm:$0x7f] %v1949_v15  ;;  %v1422_v0 = vld [vmem:[#allocation2 + $0x149] sm:$0x7f] }
 0x2d5   : > { %v2464_v9 = vld [vmem:[#allocation2 + $0x111] sm:$0x7f] }
 0x2d6   : > { %2409 = vst [vmem:[#allocation2 + $0x118] sm:$0xff] %v2353_v26  ;;  %v2745_v35 = vadd.f32 %v4573_v29, %v2464_v9  ;;  %v1628_v27 = vpop.f32.mrf.mxu2 }
 0x2d7   : > { %v1845_v50 = vpop.f32.mrf.mxu3 }
 0x2d8   : > { %v2861_v44 = vld [vmem:[#allocation2 + $0x108] sm:$0xff]  ;;  %2801 = vst [vmem:[#allocation2 + $0x111] sm:$0x7f] %v2745_v35  ;;  %v1846_v38 = vadd.f32 %v1845_v50, %v1628_v27  ;;  %v2262_v45 = vpop.f32.mrf.mxu0  ;;  %v4779_v50 = vld [vmem:[#allocation17_spill] sm:$0xff] }
 0x2d9   : > { %2925 = vst [vmem:[%s4323_s14 + $0x129] sm:$0xff] %v2861_v44  ;;  %v4778_v27 = vld [vmem:[#allocation16_spill] sm:$0xff] }
 0x2da   : > { %v1950_v23 = vadd.f32 %v1846_v38, %v1418_v13 }
 0x2db   : > { %v2073_v2 = vld [vmem:[#allocation2 + $0x120] sm:$0xff]  ;;  %v4600_v22 = vpop.f32.mrf.mxu1  ;;  %1670 = vmatmul.bf16.gmra.mxu2 %v4774_v7  ;;  %2299 = vmatmul.bf16.gmra.mxu0 %v4774_v7 }
 0x2dc   : > { %v2354_v46 = vadd.f32 %v2254_v54, %v2073_v2  ;;  %2014 = vst [vmem:[#allocation2 + $0x129] sm:$0x7f] %v1950_v23  ;;  %1887 = vmatmul.bf16.gmra.mxu3 %v4775_v52 }
 0x2dd   : > { %v2465_v29 = vld [vmem:[#allocation2 + $0x119] sm:$0x7f] }
 0x2de   : > { %2410 = vst [vmem:[#allocation2 + $0x120] sm:$0xff] %v2354_v46  ;;  %v2746_v37 = vadd.f32 %v4577_v43, %v2465_v29  ;;  %2692 = vmatmul.bf16.gmra.mxu1 %v4774_v7  ;;  %v1631_v36 = vpop.f32.mrf.mxu2 }
 0x2df   : > { %v2862_v5 = vld [vmem:[#allocation2 + $0x110] sm:$0xff]  ;;  %v1848_v53 = vpop.f32.mrf.mxu3 }
 0x2e0   : > { %2926 = vst [vmem:[%s4323_s14 + $0x131] sm:$0xff] %v2862_v5  ;;  %v1849_v6 = vadd.f32 %v1848_v53, %v1631_v36  ;;  %v2264_v41 = vpop.f32.mrf.mxu0 }
 0x2e1   : > { %2802 = vst [vmem:[#allocation2 + $0x119] sm:$0x7f] %v2746_v37 }
 0x2e2   : > { %v1951_v49 = vadd.f32 %v1849_v6, %v1419_v18  ;;  %v1424_v6 = vld [vmem:[#allocation2 + $0x159] sm:$0x7f] }
 0x2e3   : > { %v2074_v8 = vld [vmem:[#allocation2 + $0x128] sm:$0xff]  ;;  %v2657_v59 = vpop.f32.mrf.mxu1 }
 0x2e4   : > { %v2355_v30 = vadd.f32 %v2257_v47, %v2074_v8  ;;  %2015 = vst [vmem:[#allocation2 + $0x131] sm:$0x7f] %v1951_v49  ;;  %v1421_v47 = vld [vmem:[#allocation2 + $0x141] sm:$0x7f] }
 0x2e5   : > { %v2466_v3 = vld [vmem:[#allocation2 + $0x121] sm:$0x7f] }
 0x2e6   : > { %2411 = vst [vmem:[#allocation2 + $0x128] sm:$0xff] %v2355_v30  ;;  %v2747_v43 = vadd.f32 %v4586_v4, %v2466_v3  ;;  %v1633_v51 = vpop.f32.mrf.mxu2  ;;  %v4780_v30 = vld [vmem:[#allocation18_spill] sm:$0xff]  ;;  %v4781_v3 = vld [vmem:[#allocation19_spill] sm:$0xff] }
 0x2e7   : > { %v1850_v25 = vpop.f32.mrf.mxu3 }
 0x2e8   : > { %v2863_v10 = vld [vmem:[#allocation2 + $0x118] sm:$0xff]  ;;  %2803 = vst [vmem:[#allocation2 + $0x121] sm:$0x7f] %v2747_v43  ;;  %v1851_v21 = vadd.f32 %v1850_v25, %v1633_v51  ;;  %v2266_v54 = vpop.f32.mrf.mxu0 }
 0x2e9   : > { %2927 = vst [vmem:[%s4323_s14 + $0x139] sm:$0xff] %v2863_v10 }
 0x2ea   : > { %v1952_v14 = vadd.f32 %v1851_v21, %v1420_v42  ;;  %v1425_v42 = vld [vmem:[#allocation2 + $0x161] sm:$0x7f] }
 0x2eb   : > { %v2075_v24 = vld [vmem:[#allocation2 + $0x130] sm:$0xff]  ;;  %v4610_v60 = vpop.f32.mrf.mxu1  ;;  %1675 = vmatmul.bf16.gmra.mxu2 %v4776_v34  ;;  %2303 = vmatmul.bf16.gmra.mxu0 %v4776_v34 }
 0x2ec   : > { %v2356_v20 = vadd.f32 %v2259_v16, %v2075_v24  ;;  %2016 = vst [vmem:[#allocation2 + $0x139] sm:$0x7f] %v1952_v14  ;;  %1892 = vmatmul.bf16.gmra.mxu3 %v4777_v40 }
 0x2ed   : > { %v2467_v4 = vld [vmem:[#allocation2 + $0x129] sm:$0x7f] }
 0x2ee   : > { %2412 = vst [vmem:[#allocation2 + $0x130] sm:$0xff] %v2356_v20  ;;  %v2748_v61 = vadd.f32 %v4589_v57, %v2467_v4  ;;  %2696 = vmatmul.bf16.gmra.mxu1 %v4776_v34  ;;  %v1636_v63 = vpop.f32.mrf.mxu2 }
 0x2ef   : > { %v2864_v19 = vld [vmem:[#allocation2 + $0x120] sm:$0xff]  ;;  %v1853_v31 = vpop.f32.mrf.mxu3 }
 0x2f0   : > { %2928 = vst [vmem:[%s4323_s14 + $0x141] sm:$0xff] %v2864_v19  ;;  %v1854_v11 = vadd.f32 %v1853_v31, %v1636_v63  ;;  %v2268_v56 = vpop.f32.mrf.mxu0  ;;  %v1426_v31 = vld [vmem:[#allocation2 + $0x169] sm:$0x7f] }
 0x2f1   : > { %2804 = vst [vmem:[#allocation2 + $0x129] sm:$0x7f] %v2748_v61 }
 0x2f2   : > { %v1953_v58 = vadd.f32 %v1854_v11, %v1421_v47 }
 0x2f3   : > { %v2076_v32 = vld [vmem:[#allocation2 + $0x138] sm:$0xff]  ;;  %v4618_v48 = vpop.f32.mrf.mxu1 }
 0x2f4   : > { %v2357_v33 = vadd.f32 %v2262_v45, %v2076_v32  ;;  %2017 = vst [vmem:[#allocation2 + $0x141] sm:$0x7f] %v1953_v58  ;;  %v1423_v45 = vld [vmem:[#allocation2 + $0x151] sm:$0x7f] }
 0x2f5   : > { %v2468_v57 = vld [vmem:[#allocation2 + $0x131] sm:$0x7f] }
 0x2f6   : > { %2413 = vst [vmem:[#allocation2 + $0x138] sm:$0xff] %v2357_v33  ;;  %v2749_v1 = vadd.f32 %v4596_v39, %v2468_v57  ;;  %v1638_v55 = vpop.f32.mrf.mxu2 }
 0x2f7   : > { %v1855_v62 = vpop.f32.mrf.mxu3 }
 0x2f8   : > { %v2865_v17 = vld [vmem:[#allocation2 + $0x128] sm:$0xff]  ;;  %2805 = vst [vmem:[#allocation2 + $0x131] sm:$0x7f] %v2749_v1  ;;  %v1856_v15 = vadd.f32 %v1855_v62, %v1638_v55  ;;  %v2271_v9 = vpop.f32.mrf.mxu0 }
 0x2f9   : > { %2929 = vst [vmem:[%s4323_s14 + $0x149] sm:$0xff] %v2865_v17  ;;  %v1427_v17 = vld [vmem:[#allocation2 + $0x171] sm:$0x7f] }
 0x2fa   : > { %v1954_v16 = vadd.f32 %v1856_v15, %v1422_v0 }
 0x2fb   : > { %v2868_v26 = vld [vmem:[#allocation2 + $0x140] sm:$0xff]  ;;  %v4622_v35 = vpop.f32.mrf.mxu1  ;;  %1680 = vmatmul.bf16.gmra.mxu2 %v4778_v27  ;;  %2308 = vmatmul.bf16.gmra.mxu0 %v4778_v27 }
 0x2fc   : > { %2932 = vst [vmem:[%s4323_s14 + $0x169] sm:$0xff] %v2868_v26  ;;  %1897 = vmatmul.bf16.gmra.mxu3 %v4779_v50 }
 0x2fd   : > { %v2469_v44 = vld [vmem:[#allocation2 + $0x139] sm:$0x7f]  ;;  %2018 = vst [vmem:[#allocation2 + $0x149] sm:$0x7f] %v1954_v16 }
 0x2fe   : > { %v2750_v39 = vadd.f32 %v4600_v22, %v2469_v44  ;;  %2701 = vmatmul.bf16.gmra.mxu1 %v4778_v27  ;;  %v1641_v13 = vpop.f32.mrf.mxu2 }
 0x2ff   : > { %v2866_v38 = vld [vmem:[#allocation2 + $0x130] sm:$0xff]  ;;  %v1858_v23 = vpop.f32.mrf.mxu3 }
 0x300   : > { %2930 = vst [vmem:[%s4323_s14 + $0x151] sm:$0xff] %v2866_v38  ;;  %v1859_v2 = vadd.f32 %v1858_v23, %v1641_v13  ;;  %v2273_v7 = vpop.f32.mrf.mxu0 }
 0x301   : > { %2806 = vst [vmem:[#allocation2 + $0x139] sm:$0x7f] %v2750_v39  ;;  %v1428_v39 = vld [vmem:[#allocation2 + $0x179] sm:$0x7f] }
 0x302   : > { %v1955_v46 = vadd.f32 %v1859_v2, %v1423_v45 }
 0x303   : > { %v4631_v52 = vpop.f32.mrf.mxu1 }
 0x304   : > { %v2077_v29 = vld [vmem:[#allocation2 + $0x148] sm:$0xff]  ;;  %2019 = vst [vmem:[#allocation2 + $0x151] sm:$0x7f] %v1955_v46 }
 0x305   : > { %v2358_v37 = vadd.f32 %v2266_v54, %v2077_v29 }
 0x306   : > { %v1643_v22 = vpop.f32.mrf.mxu2 }
 0x307   : > { %2414 = vst [vmem:[#allocation2 + $0x148] sm:$0xff] %v2358_v37  ;;  %v1860_v5 = vpop.f32.mrf.mxu3 }
 0x308   : > { %v2867_v36 = vld [vmem:[#allocation2 + $0x138] sm:$0xff]  ;;  %v1861_v53 = vadd.f32 %v1860_v5, %v1643_v22  ;;  %v2276_v8 = vpop.f32.mrf.mxu0  ;;  %v1429_v5 = vld [vmem:[#allocation2 + $0x181] sm:$0x7f] }
 0x309   : > { %2931 = vst [vmem:[%s4323_s14 + $0x159] sm:$0xff] %v2867_v36 }
 0x30a   : > { %v1956_v18 = vadd.f32 %v1861_v53, %v1424_v6 }
 0x30b   : > { %v2078_v49 = vld [vmem:[#allocation2 + $0x150] sm:$0xff]  ;;  %v4634_v41 = vpop.f32.mrf.mxu1  ;;  %1685 = vmatmul.bf16.gmra.mxu2 %v4780_v30  ;;  %2313 = vmatmul.bf16.gmra.mxu0 %v4780_v30 }
 0x30c   : > { %v2359_v59 = vadd.f32 %v2268_v56, %v2078_v49  ;;  %2020 = vst [vmem:[#allocation2 + $0x159] sm:$0x7f] %v1956_v18  ;;  %1902 = vmatmul.bf16.gmra.mxu3 %v4781_v3 }
 0x30e   : > { %2415 = vst [vmem:[#allocation2 + $0x150] sm:$0xff] %v2359_v59  ;;  %v2470_v43 = vld [vmem:[#allocation2 + $0x149] sm:$0x7f]  ;;  %2706 = vmatmul.bf16.gmra.mxu1 %v4780_v30  ;;  %v1646_v25 = vpop.f32.mrf.mxu2 }
 0x30f   : > { %v2751_v51 = vadd.f32 %v4610_v60, %v2470_v43  ;;  %v1863_v10 = vpop.f32.mrf.mxu3 }
 0x310   : > { %v1864_v21 = vadd.f32 %v1863_v10, %v1646_v25  ;;  %v2278_v54 = vpop.f32.mrf.mxu0 }
 0x311   : > { %2807 = vst [vmem:[#allocation2 + $0x149] sm:$0x7f] %v2751_v51  ;;  %v1430_v51 = vld [vmem:[#allocation2 + $0x189] sm:$0x7f] }
 0x312   : > { %v1957_v14 = vadd.f32 %v1864_v21, %v1425_v42 }
 0x313   : > { %v2079_v24 = vld [vmem:[#allocation2 + $0x158] sm:$0xff]  ;;  %v4641_v20 = vpop.f32.mrf.mxu1 }
 0x314   : > { %v2360_v34 = vadd.f32 %v2271_v9, %v2079_v24  ;;  %2021 = vst [vmem:[#allocation2 + $0x161] sm:$0x7f] %v1957_v14 }
 0x315   : > { %v2471_v40 = vld [vmem:[#allocation2 + $0x151] sm:$0x7f] }
 0x316   : > { %2416 = vst [vmem:[#allocation2 + $0x158] sm:$0xff] %v2360_v34  ;;  %v2752_v4 = vadd.f32 %v4618_v48, %v2471_v40  ;;  %v1648_v61 = vpop.f32.mrf.mxu2 }
 0x317   : > { %v1865_v19 = vpop.f32.mrf.mxu3 }
 0x318   : > { %v2869_v60 = vld [vmem:[#allocation2 + $0x148] sm:$0xff]  ;;  %2808 = vst [vmem:[#allocation2 + $0x151] sm:$0x7f] %v2752_v4  ;;  %v1866_v63 = vadd.f32 %v1865_v19, %v1648_v61  ;;  %v2281_v58 = vpop.f32.mrf.mxu0  ;;  %v1431_v4 = vld [vmem:[#allocation2 + $0x191] sm:$0x7f] }
 0x319   : > { %2933 = vst [vmem:[%s4323_s14 + $0x171] sm:$0xff] %v2869_v60 }
 0x31a   : > { %v1958_v11 = vadd.f32 %v1866_v63, %v1426_v31 }
 0x31b   : > { %v2080_v47 = vld [vmem:[#allocation2 + $0x160] sm:$0xff]  ;;  %v4645_v32 = vpop.f32.mrf.mxu1  ;;  %1690 = vmatmul.bf16.gmra.mxu2 %v4289_v12  ;;  %2318 = vmatmul.bf16.gmra.mxu0 %v4289_v12 }
 0x31c   : > { %v2361_v56 = vadd.f32 %v2273_v7, %v2080_v47  ;;  %2022 = vst [vmem:[#allocation2 + $0x169] sm:$0x7f] %v1958_v11  ;;  %1907 = vmatmul.bf16.gmra.mxu3 %v4291_v28 }
 0x31d   : > { %v2472_v48 = vld [vmem:[#allocation2 + $0x159] sm:$0x7f] }
 0x31e   : > { %2417 = vst [vmem:[#allocation2 + $0x160] sm:$0xff] %v2361_v56  ;;  %v2753_v33 = vadd.f32 %v4622_v35, %v2472_v48  ;;  %2711 = vmatmul.bf16.gmra.mxu1 %v4289_v12  ;;  %v1651_v1 = vpop.f32.mrf.mxu2  ;;  %v1432_v56 = vld [vmem:[#allocation2 + $0x199] sm:$0x7f] }
 0x31f   : > { %v2870_v57 = vld [vmem:[#allocation2 + $0x150] sm:$0xff]  ;;  %v1868_v55 = vpop.f32.mrf.mxu3 }
 0x320   : > { %2934 = vst [vmem:[%s4323_s14 + $0x179] sm:$0xff] %v2870_v57  ;;  %v1869_v62 = vadd.f32 %v1868_v55, %v1651_v1  ;;  %v2283_v16 = vpop.f32.mrf.mxu0 }
 0x321   : > { %2809 = vst [vmem:[#allocation2 + $0x159] sm:$0x7f] %v2753_v33 }
 0x322   : > { %v1959_v15 = vadd.f32 %v1869_v62, %v1427_v17 }
 0x323   : > { %v2081_v0 = vld [vmem:[#allocation2 + $0x168] sm:$0xff]  ;;  %v2676_v28 = vpop.f32.mrf.mxu1 }
 0x324   : > { %v2362_v26 = vadd.f32 %v2276_v8, %v2081_v0  ;;  %2023 = vst [vmem:[#allocation2 + $0x171] sm:$0x7f] %v1959_v15  ;;  %v1433_v28 = vld [vmem:[#allocation2 + $0x1a1] sm:$0x7f] }
 0x325   : > { %v2473_v9 = vld [vmem:[#allocation2 + $0x161] sm:$0x7f] }
 0x326   : > { %2418 = vst [vmem:[#allocation2 + $0x168] sm:$0xff] %v2362_v26  ;;  %v2754_v35 = vadd.f32 %v4631_v52, %v2473_v9  ;;  %v1653_v27 = vpop.f32.mrf.mxu2 }
 0x327   : > { %v1870_v12 = vpop.f32.mrf.mxu3 }
 0x328   : > { %v2871_v50 = vld [vmem:[#allocation2 + $0x158] sm:$0xff]  ;;  %2810 = vst [vmem:[#allocation2 + $0x161] sm:$0x7f] %v2754_v35  ;;  %v1871_v44 = vadd.f32 %v1870_v12, %v1653_v27  ;;  %v2285_v23 = vpop.f32.mrf.mxu0 }
 0x329   : > { %2935 = vst [vmem:[%s4323_s14 + $0x181] sm:$0xff] %v2871_v50 }
 0x32a   : > { %v1960_v38 = vadd.f32 %v1871_v44, %v1428_v39 }
 0x32b   : > { %v2082_v13 = vld [vmem:[#allocation2 + $0x170] sm:$0xff]  ;;  %v4655_v2 = vpop.f32.mrf.mxu1 }
 0x32c   : > { %v2363_v45 = vadd.f32 %v2278_v54, %v2082_v13  ;;  %2024 = vst [vmem:[#allocation2 + $0x179] sm:$0x7f] %v1960_v38 }
 0x32d   : > { %v2474_v46 = vld [vmem:[#allocation2 + $0x169] sm:$0x7f] }
 0x32e   : > { %2419 = vst [vmem:[#allocation2 + $0x170] sm:$0xff] %v2363_v45  ;;  %v2755_v7 = vadd.f32 %v4634_v41, %v2474_v46  ;;  %v1656_v29 = vpop.f32.mrf.mxu2 }
 0x32f   : > { %v2872_v52 = vld [vmem:[#allocation2 + $0x160] sm:$0xff]  ;;  %v1873_v37 = vpop.f32.mrf.mxu3 }
 0x330   : > { %2936 = vst [vmem:[%s4323_s14 + $0x189] sm:$0xff] %v2872_v52  ;;  %v1874_v22 = vadd.f32 %v1873_v37, %v1656_v29  ;;  %v2287_v6 = vpop.f32.mrf.mxu0 }
 0x331   : > { %2811 = vst [vmem:[#allocation2 + $0x169] sm:$0x7f] %v2755_v7 }
 0x332   : > { %v1961_v36 = vadd.f32 %v1874_v22, %v1429_v5 }
 0x333   : > { %v2083_v53 = vld [vmem:[#allocation2 + $0x178] sm:$0xff]  ;;  %v4659_v18 = vpop.f32.mrf.mxu1 }
 0x334   : > { %v2364_v49 = vadd.f32 %v2281_v58, %v2083_v53  ;;  %2025 = vst [vmem:[#allocation2 + $0x181] sm:$0x7f] %v1961_v36 }
 0x335   : > { %v2475_v8 = vld [vmem:[#allocation2 + $0x171] sm:$0x7f] }
 0x336   : > { %2420 = vst [vmem:[#allocation2 + $0x178] sm:$0xff] %v2364_v49  ;;  %v2756_v41 = vadd.f32 %v4641_v20, %v2475_v8  ;;  %v1658_v59 = vpop.f32.mrf.mxu2 }
 0x337   : > { %v1875_v30 = vpop.f32.mrf.mxu3 }
 0x338   : > { %v2873_v3 = vld [vmem:[#allocation2 + $0x168] sm:$0xff]  ;;  %2812 = vst [vmem:[#allocation2 + $0x171] sm:$0x7f] %v2756_v41  ;;  %v1876_v43 = vadd.f32 %v1875_v30, %v1658_v59  ;;  %v2290_v21 = vpop.f32.mrf.mxu0 }
 0x339   : > { %2937 = vst [vmem:[%s4323_s14 + $0x191] sm:$0xff] %v2873_v3 }
 0x33a   : > { %v1962_v25 = vadd.f32 %v1876_v43, %v1430_v51 }
 0x33b   : > { %v2876_v10 = vld [vmem:[#allocation2 + $0x180] sm:$0xff]  ;;  %v4663_v42 = vpop.f32.mrf.mxu1 }
 0x33c   : > { %2940 = vst [vmem:[%s4323_s14 + $0x1b1] sm:$0xff] %v2876_v10 }
 0x33d   : > { %v2476_v14 = vld [vmem:[#allocation2 + $0x179] sm:$0x7f]  ;;  %2026 = vst [vmem:[#allocation2 + $0x189] sm:$0x7f] %v1962_v25 }
 0x33e   : > { %v2757_v24 = vadd.f32 %v4645_v32, %v2476_v14  ;;  %v1661_v20 = vpop.f32.mrf.mxu2 }
 0x33f   : > { %v2874_v54 = vld [vmem:[#allocation2 + $0x170] sm:$0xff]  ;;  %v1878_v34 = vpop.f32.mrf.mxu3 }
 0x340   : > { %2938 = vst [vmem:[%s4323_s14 + $0x199] sm:$0xff] %v2874_v54  ;;  %v1879_v40 = vadd.f32 %v1878_v34, %v1661_v20  ;;  %v2292_v19 = vpop.f32.mrf.mxu0 }
 0x341   : > { %2813 = vst [vmem:[#allocation2 + $0x179] sm:$0x7f] %v2757_v24 }
 0x342   : > { %v1963_v61 = vadd.f32 %v1879_v40, %v1431_v4 }
 0x343   : > { %v4668_v60 = vpop.f32.mrf.mxu1 }
 0x344   : > { %v2084_v63 = vld [vmem:[#allocation2 + $0x188] sm:$0xff]  ;;  %2027 = vst [vmem:[#allocation2 + $0x191] sm:$0x7f] %v1963_v61 }
 0x345   : > { %v2365_v31 = vadd.f32 %v2285_v23, %v2084_v63 }
 0x346   : > { %v1663_v11 = vpop.f32.mrf.mxu2 }
 0x347   : > { %2421 = vst [vmem:[#allocation2 + $0x188] sm:$0xff] %v2365_v31  ;;  %v1880_v47 = vpop.f32.mrf.mxu3  ;;  %v1437_v31 = vld [vmem:[#allocation2 + $0x1c1] sm:$0x7f] }
 0x348   : > { %v2875_v58 = vld [vmem:[#allocation2 + $0x178] sm:$0xff]  ;;  %v1881_v32 = vadd.f32 %v1880_v47, %v1663_v11  ;;  %v2295_v57 = vpop.f32.mrf.mxu0 }
 0x349   : > { %2939 = vst [vmem:[%s4323_s14 + $0x1a1] sm:$0xff] %v2875_v58 }
 0x34a   : > { %v1964_v48 = vadd.f32 %v1881_v32, %v1432_v56 }
 0x34b   : > { %v2085_v33 = vld [vmem:[#allocation2 + $0x190] sm:$0xff]  ;;  %v4671_v1 = vpop.f32.mrf.mxu1 }
 0x34c   : > { %v2366_v55 = vadd.f32 %v2287_v6, %v2085_v33  ;;  %2028 = vst [vmem:[#allocation2 + $0x199] sm:$0x7f] %v1964_v48 }
 0x34e   : > { %2422 = vst [vmem:[#allocation2 + $0x190] sm:$0xff] %v2366_v55  ;;  %v2477_v62 = vld [vmem:[#allocation2 + $0x189] sm:$0x7f]  ;;  %v1666_v15 = vpop.f32.mrf.mxu2 }
 0x34f   : > { %v2758_v17 = vadd.f32 %v4655_v2, %v2477_v62  ;;  %v1883_v0 = vpop.f32.mrf.mxu3  ;;  %v1434_v2 = vld [vmem:[#allocation2 + $0x1a9] sm:$0x7f] }
 0x350   : > { %v1884_v16 = vadd.f32 %v1883_v0, %v1666_v15  ;;  %v2297_v35 = vpop.f32.mrf.mxu0 }
 0x351   : > { %2814 = vst [vmem:[#allocation2 + $0x189] sm:$0x7f] %v2758_v17  ;;  %v1438_v17 = vld [vmem:[#allocation2 + $0x1c9] sm:$0x7f] }
 0x352   : > { %v1965_v26 = vadd.f32 %v1884_v16, %v1433_v28 }
 0x353   : > { %v2086_v9 = vld [vmem:[#allocation2 + $0x198] sm:$0xff]  ;;  %v4674_v27 = vpop.f32.mrf.mxu1 }
 0x354   : > { %v2367_v12 = vadd.f32 %v2290_v21, %v2086_v9  ;;  %2029 = vst [vmem:[#allocation2 + $0x1a1] sm:$0x7f] %v1965_v26 }
 0x355   : > { %v2478_v50 = vld [vmem:[#allocation2 + $0x191] sm:$0x7f] }
 0x356   : > { %2423 = vst [vmem:[#allocation2 + $0x198] sm:$0xff] %v2367_v12  ;;  %v2759_v44 = vadd.f32 %v4659_v18, %v2478_v50  ;;  %v1668_v39 = vpop.f32.mrf.mxu2  ;;  %v1435_v18 = vld [vmem:[#allocation2 + $0x1b1] sm:$0x7f] }
 0x357   : > { %v1885_v38 = vpop.f32.mrf.mxu3 }
 0x358   : > { %v2877_v13 = vld [vmem:[#allocation2 + $0x188] sm:$0xff]  ;;  %2815 = vst [vmem:[#allocation2 + $0x191] sm:$0x7f] %v2759_v44  ;;  %v1886_v23 = vadd.f32 %v1885_v38, %v1668_v39  ;;  %v2300_v7 = vpop.f32.mrf.mxu0  ;;  %v1439_v44 = vld [vmem:[#allocation2 + $0x1d1] sm:$0x7f] }
 0x359   : > { %2941 = vst [vmem:[%s4323_s14 + $0x1b9] sm:$0xff] %v2877_v13 }
 0x35a   : > { %v1966_v45 = vadd.f32 %v1886_v23, %v1434_v2 }
 0x35b   : > { %v2087_v46 = vld [vmem:[#allocation2 + $0x1a0] sm:$0xff]  ;;  %v4678_v52 = vpop.f32.mrf.mxu1 }
 0x35c   : > { %v2368_v29 = vadd.f32 %v2292_v19, %v2087_v46  ;;  %2030 = vst [vmem:[#allocation2 + $0x1a9] sm:$0x7f] %v1966_v45 }
 0x35d   : > { %v2479_v37 = vld [vmem:[#allocation2 + $0x199] sm:$0x7f] }
 0x35e   : > { %2424 = vst [vmem:[#allocation2 + $0x1a0] sm:$0xff] %v2368_v29  ;;  %v2760_v22 = vadd.f32 %v4663_v42, %v2479_v37  ;;  %v1671_v36 = vpop.f32.mrf.mxu2  ;;  %v1436_v42 = vld [vmem:[#allocation2 + $0x1b9] sm:$0x7f] }
 0x35f   : > { %v2878_v5 = vld [vmem:[#allocation2 + $0x190] sm:$0xff]  ;;  %v1888_v53 = vpop.f32.mrf.mxu3  ;;  %v1440_v29 = vld [vmem:[#allocation2 + $0x1d9] sm:$0x7f] }
 0x360   : > { %2942 = vst [vmem:[%s4323_s14 + $0x1c1] sm:$0xff] %v2878_v5  ;;  %v1889_v6 = vadd.f32 %v1888_v53, %v1671_v36  ;;  %v2302_v41 = vpop.f32.mrf.mxu0 }
 0x361   : > { %2816 = vst [vmem:[#allocation2 + $0x199] sm:$0x7f] %v2760_v22 }
 0x362   : > { %v1967_v49 = vadd.f32 %v1889_v6, %v1435_v18 }
 0x363   : > { %v2088_v8 = vld [vmem:[#allocation2 + $0x1a8] sm:$0xff]  ;;  %v2695_v59 = vpop.f32.mrf.mxu1 }
 0x364   : > { %v2369_v30 = vadd.f32 %v2295_v57, %v2088_v8  ;;  %2031 = vst [vmem:[#allocation2 + $0x1b1] sm:$0x7f] %v1967_v49  ;;  %v1441_v59 = vld [vmem:[#allocation2 + $0x1e1] sm:$0x7f] }
 0x365   : > { %v2480_v3 = vld [vmem:[#allocation2 + $0x1a1] sm:$0x7f] }
 0x366   : > { %2425 = vst [vmem:[#allocation2 + $0x1a8] sm:$0xff] %v2369_v30  ;;  %v2761_v43 = vadd.f32 %v4668_v60, %v2480_v3  ;;  %v1673_v51 = vpop.f32.mrf.mxu2 }
 0x367   : > { %v1890_v25 = vpop.f32.mrf.mxu3 }
 0x368   : > { %v2879_v10 = vld [vmem:[#allocation2 + $0x198] sm:$0xff]  ;;  %2817 = vst [vmem:[#allocation2 + $0x1a1] sm:$0x7f] %v2761_v43  ;;  %v1891_v21 = vadd.f32 %v1890_v25, %v1673_v51  ;;  %v2304_v54 = vpop.f32.mrf.mxu0 }
 0x369   : > { %2943 = vst [vmem:[%s4323_s14 + $0x1c9] sm:$0xff] %v2879_v10 }
 0x36a   : > { %v1968_v14 = vadd.f32 %v1891_v21, %v1436_v42 }
 0x36b   : > { %v2089_v24 = vld [vmem:[#allocation2 + $0x1b0] sm:$0xff]  ;;  %v4684_v20 = vpop.f32.mrf.mxu1 }
 0x36c   : > { %v2370_v34 = vadd.f32 %v2297_v35, %v2089_v24  ;;  %2032 = vst [vmem:[#allocation2 + $0x1b9] sm:$0x7f] %v1968_v14 }
 0x36d   : > { %v2481_v40 = vld [vmem:[#allocation2 + $0x1a9] sm:$0x7f] }
 0x36e   : > { %2426 = vst [vmem:[#allocation2 + $0x1b0] sm:$0xff] %v2370_v34  ;;  %v2762_v4 = vadd.f32 %v4671_v1, %v2481_v40  ;;  %v1676_v19 = vpop.f32.mrf.mxu2 }
 0x36f   : > { %v2880_v61 = vld [vmem:[#allocation2 + $0x1a0] sm:$0xff]  ;;  %v1893_v60 = vpop.f32.mrf.mxu3 }
 0x370   : > { %2944 = vst [vmem:[%s4323_s14 + $0x1d1] sm:$0xff] %v2880_v61  ;;  %v1894_v63 = vadd.f32 %v1893_v60, %v1676_v19  ;;  %v2306_v58 = vpop.f32.mrf.mxu0 }
 0x371   : > { %2818 = vst [vmem:[#allocation2 + $0x1a9] sm:$0x7f] %v2762_v4 }
 0x372   : > { %v1969_v11 = vadd.f32 %v1894_v63, %v1437_v31 }
 0x373   : > { %v2090_v47 = vld [vmem:[#allocation2 + $0x1b8] sm:$0xff]  ;;  %v4688_v32 = vpop.f32.mrf.mxu1 }
 0x374   : > { %v2371_v56 = vadd.f32 %v2300_v7, %v2090_v47  ;;  %2033 = vst [vmem:[#allocation2 + $0x1c1] sm:$0x7f] %v1969_v11 }
 0x375   : > { %v2482_v48 = vld [vmem:[#allocation2 + $0x1b1] sm:$0x7f] }
 0x376   : > { %2427 = vst [vmem:[#allocation2 + $0x1b8] sm:$0xff] %v2371_v56  ;;  %v2763_v33 = vadd.f32 %v4674_v27, %v2482_v48  ;;  %v1678_v57 = vpop.f32.mrf.mxu2 }
 0x377   : > { %v1895_v1 = vpop.f32.mrf.mxu3 }
 0x378   : > { %v2881_v55 = vld [vmem:[#allocation2 + $0x1a8] sm:$0xff]  ;;  %2819 = vst [vmem:[#allocation2 + $0x1b1] sm:$0x7f] %v2763_v33  ;;  %v1896_v62 = vadd.f32 %v1895_v1, %v1678_v57  ;;  %v2309_v16 = vpop.f32.mrf.mxu0 }
 0x379   : > { %2945 = vst [vmem:[%s4323_s14 + $0x1d9] sm:$0xff] %v2881_v55 }
 0x37a   : > { %v1970_v15 = vadd.f32 %v1896_v62, %v1438_v17 }
 0x37b   : > { %v2884_v0 = vld [vmem:[#allocation2 + $0x1c0] sm:$0xff]  ;;  %v4692_v28 = vpop.f32.mrf.mxu1 }
 0x37c   : > { %2948 = vst [vmem:[%s4323_s14 + $0x1f9] sm:$0xff] %v2884_v0 }
 0x37d   : > { %v2483_v26 = vld [vmem:[#allocation2 + $0x1b9] sm:$0x7f]  ;;  %2034 = vst [vmem:[#allocation2 + $0x1c9] sm:$0x7f] %v1970_v15 }
 0x37e   : > { %v2764_v9 = vadd.f32 %v4678_v52, %v2483_v26  ;;  %v1681_v27 = vpop.f32.mrf.mxu2 }
 0x37f   : > { %v2882_v35 = vld [vmem:[#allocation2 + $0x1b0] sm:$0xff]  ;;  %v1898_v12 = vpop.f32.mrf.mxu3 }
 0x380   : > { %2946 = vst [vmem:[%s4323_s14 + $0x1e1] sm:$0xff] %v2882_v35  ;;  %v1899_v50 = vadd.f32 %v1898_v12, %v1681_v27  ;;  %v2311_v38 = vpop.f32.mrf.mxu0 }
 0x381   : > { %2820 = vst [vmem:[#allocation2 + $0x1b9] sm:$0x7f] %v2764_v9 }
 0x382   : > { %v1971_v39 = vadd.f32 %v1899_v50, %v1439_v44 }
 0x383   : > { %v4697_v13 = vpop.f32.mrf.mxu1 }
 0x384   : > { %v2091_v23 = vld [vmem:[#allocation2 + $0x1c8] sm:$0xff]  ;;  %2035 = vst [vmem:[#allocation2 + $0x1d1] sm:$0x7f] %v1971_v39 }
 0x385   : > { %v2372_v2 = vadd.f32 %v2304_v54, %v2091_v23 }
 0x386   : > { %v1683_v45 = vpop.f32.mrf.mxu2 }
 0x387   : > { %2428 = vst [vmem:[#allocation2 + $0x1c8] sm:$0xff] %v2372_v2  ;;  %v1900_v46 = vpop.f32.mrf.mxu3 }
 0x388   : > { %v2883_v7 = vld [vmem:[#allocation2 + $0x1b8] sm:$0xff]  ;;  %v1901_v52 = vadd.f32 %v1900_v46, %v1683_v45  ;;  %v2314_v5 = vpop.f32.mrf.mxu0 }
 0x389   : > { %2947 = vst [vmem:[%s4323_s14 + $0x1e9] sm:$0xff] %v2883_v7 }
 0x38a   : > { %v1972_v37 = vadd.f32 %v1901_v52, %v1440_v29 }
 0x38b   : > { %v2092_v22 = vld [vmem:[#allocation2 + $0x1d0] sm:$0xff]  ;;  %v4700_v36 = vpop.f32.mrf.mxu1 }
 0x38c   : > { %v2373_v53 = vadd.f32 %v2306_v58, %v2092_v22  ;;  %2036 = vst [vmem:[#allocation2 + $0x1d9] sm:$0x7f] %v1972_v37 }
 0x38e   : > { %2429 = vst [vmem:[#allocation2 + $0x1d0] sm:$0xff] %v2373_v53  ;;  %v2484_v6 = vld [vmem:[#allocation2 + $0x1c9] sm:$0x7f]  ;;  %v1686_v49 = vpop.f32.mrf.mxu2 }
 0x38f   : > { %v2765_v18 = vadd.f32 %v4684_v20, %v2484_v6  ;;  %v1903_v8 = vpop.f32.mrf.mxu3  ;;  %v1442_v20 = vld [vmem:[#allocation2 + $0x1e9] sm:$0x7f] }
 0x390   : > { %v1904_v41 = vadd.f32 %v1903_v8, %v1686_v49  ;;  %v2316_v43 = vpop.f32.mrf.mxu0 }
 0x391   : > { %2821 = vst [vmem:[#allocation2 + $0x1c9] sm:$0x7f] %v2765_v18 }
 0x392   : > { %v1973_v30 = vadd.f32 %v1904_v41, %v1441_v59 }
 0x393   : > { %v2093_v3 = vld [vmem:[#allocation2 + $0x1d8] sm:$0xff]  ;;  %v2709_v51 = vpop.f32.mrf.mxu1 }
 0x394   : > { %v2374_v25 = vadd.f32 %v2309_v16, %v2093_v3  ;;  %2037 = vst [vmem:[#allocation2 + $0x1e1] sm:$0x7f] %v1973_v30 }
 0x395   : > { %v2485_v10 = vld [vmem:[#allocation2 + $0x1d1] sm:$0x7f] }
 0x396   : > { %2430 = vst [vmem:[#allocation2 + $0x1d8] sm:$0xff] %v2374_v25  ;;  %v2766_v21 = vadd.f32 %v4688_v32, %v2485_v10  ;;  %v1688_v42 = vpop.f32.mrf.mxu2  ;;  %v1443_v32 = vld [vmem:[#allocation2 + $0x1f1] sm:$0x7f] }
 0x397   : > { %v1905_v14 = vpop.f32.mrf.mxu3 }
 0x398   : > { %v2885_v24 = vld [vmem:[#allocation2 + $0x1c8] sm:$0xff]  ;;  %2822 = vst [vmem:[#allocation2 + $0x1d1] sm:$0x7f] %v2766_v21  ;;  %v1906_v54 = vadd.f32 %v1905_v14, %v1688_v42  ;;  %v2319_v4 = vpop.f32.mrf.mxu0 }
 0x399   : > { %2949 = vst [vmem:[%s4323_s14 + $0x201] sm:$0xff] %v2885_v24 }
 0x39a   : > { %v1974_v34 = vadd.f32 %v1906_v54, %v1442_v20 }
 0x39b   : > { %v2094_v40 = vld [vmem:[#allocation2 + $0x1e0] sm:$0xff]  ;;  %v2712_v61 = vpop.f32.mrf.mxu1 }
 0x39c   : > { %v2375_v19 = vadd.f32 %v2311_v38, %v2094_v40  ;;  %2038 = vst [vmem:[#allocation2 + $0x1e9] sm:$0x7f] %v1974_v34 }
 0x39d   : > { %v2486_v60 = vld [vmem:[#allocation2 + $0x1d9] sm:$0x7f] }
 0x39e   : > { %2431 = vst [vmem:[#allocation2 + $0x1e0] sm:$0xff] %v2375_v19  ;;  %v2767_v63 = vadd.f32 %v4692_v28, %v2486_v60  ;;  %v1691_v11 = vpop.f32.mrf.mxu2  ;;  %v1444_v28 = vld [vmem:[#allocation2 + $0x1f9] sm:$0x7f] }
 0x39f   : > { %v2886_v31 = vld [vmem:[#allocation2 + $0x1d0] sm:$0xff]  ;;  %v1908_v47 = vpop.f32.mrf.mxu3 }
 0x3a0   : > { %2950 = vst [vmem:[%s4323_s14 + $0x209] sm:$0xff] %v2886_v31  ;;  %v1909_v58 = vadd.f32 %v1908_v47, %v1691_v11  ;;  %v2321_v33 = vpop.f32.mrf.mxu0 }
 0x3a1   : > { %2823 = vst [vmem:[#allocation2 + $0x1d9] sm:$0x7f] %v2767_v63 }
 0x3a2   : > { %v1975_v56 = vadd.f32 %v1909_v58, %v1443_v32 }
 0x3a3   : > { %v2095_v48 = vld [vmem:[#allocation2 + $0x1e8] sm:$0xff]  ;;  %v2714_v57 = vpop.f32.mrf.mxu1 }
 0x3a4   : > { %v2376_v1 = vadd.f32 %v2314_v5, %v2095_v48  ;;  %2039 = vst [vmem:[#allocation2 + $0x1f1] sm:$0x7f] %v1975_v56 }
 0x3a5   : > { %v2487_v55 = vld [vmem:[#allocation2 + $0x1e1] sm:$0x7f] }
 0x3a6   : > { %2432 = vst [vmem:[#allocation2 + $0x1e8] sm:$0xff] %v2376_v1  ;;  %v2768_v62 = vadd.f32 %v4697_v13, %v2487_v55  ;;  %v1693_v17 = vpop.f32.mrf.mxu2 }
 0x3a7   : > { %v1910_v15 = vpop.f32.mrf.mxu3 }
 0x3a8   : > { %v2887_v0 = vld [vmem:[#allocation2 + $0x1d8] sm:$0xff]  ;;  %2824 = vst [vmem:[#allocation2 + $0x1e1] sm:$0x7f] %v2768_v62  ;;  %v1911_v16 = vadd.f32 %v1910_v15, %v1693_v17 }
 0x3a9   : > { %2951 = vst [vmem:[%s4323_s14 + $0x211] sm:$0xff] %v2887_v0 }
 0x3aa   : > { %v1976_v26 = vadd.f32 %v1911_v16, %v1444_v28 }
 0x3ab   : > { %v2096_v9 = vld [vmem:[#allocation2 + $0x1f0] sm:$0xff] }
 0x3ac   : > { %v2377_v35 = vadd.f32 %v2316_v43, %v2096_v9  ;;  %2040 = vst [vmem:[#allocation2 + $0x1f9] sm:$0x7f] %v1976_v26 }
 0x3ad   : > { %v2488_v27 = vld [vmem:[#allocation2 + $0x1e9] sm:$0x7f] }
 0x3ae   : > { %2433 = vst [vmem:[#allocation2 + $0x1f0] sm:$0xff] %v2377_v35  ;;  %v2769_v12 = vadd.f32 %v4700_v36, %v2488_v27 }
 0x3af   : > { %v2888_v50 = vld [vmem:[#allocation2 + $0x1e0] sm:$0xff] }
 0x3b0   : > { %2952 = vst [vmem:[%s4323_s14 + $0x219] sm:$0xff] %v2888_v50 }
 0x3b1   : > { %2825 = vst [vmem:[#allocation2 + $0x1e9] sm:$0x7f] %v2769_v12 }
 0x3b3   : > { %v2097_v44 = vld [vmem:[#allocation2 + $0x1f8] sm:$0xff] }
 0x3b4   : > { %v2378_v39 = vadd.f32 %v2319_v4, %v2097_v44 }
 0x3b5   : > { %v2489_v38 = vld [vmem:[#allocation2 + $0x1f1] sm:$0x7f] }
 0x3b6   : > { %2434 = vst [vmem:[#allocation2 + $0x1f8] sm:$0xff] %v2378_v39  ;;  %v2770_v13 = vadd.f32 %v2709_v51, %v2489_v38 }
 0x3b8   : > { %v2889_v23 = vld [vmem:[#allocation2 + $0x1e8] sm:$0xff]  ;;  %2826 = vst [vmem:[#allocation2 + $0x1f1] sm:$0x7f] %v2770_v13 }
 0x3b9   : > { %2953 = vst [vmem:[%s4323_s14 + $0x221] sm:$0xff] %v2889_v23 }
 0x3bd   : > { %v2490_v2 = vld [vmem:[#allocation2 + $0x1f9] sm:$0x7f] }
 0x3be   : > { %v2771_v45 = vadd.f32 %v2712_v61, %v2490_v2 }
 0x3bf   : > { %v2890_v46 = vld [vmem:[#allocation2 + $0x1f0] sm:$0xff] }
 0x3c0   : > { %2954 = vst [vmem:[%s4323_s14 + $0x229] sm:$0xff] %v2890_v46 }
 0x3c1   : > { %2827 = vst [vmem:[#allocation2 + $0x1f9] sm:$0x7f] %v2771_v45 }
 0x3c8   : > { %v2891_v7 = vld [vmem:[#allocation2 + $0x1f8] sm:$0xff] }
 0x3c9   : > { %2955 = vst [vmem:[%s4323_s14 + $0x231] sm:$0xff] %v2891_v7 }
 0x3ca PF: > { %s15_s18 = sadd.s32 1, %s3757_s18  }
 0x3cb   : > { %p12_p4 = scmp.ge.s32.totalorder %s15_s18, 4  }
 0x3cd   :  { %14 = sbr.rel (!%p12_p4) target bundleno = 1 (0x1), region = 79 }

</bundles_post_ra>
